<compile_context>
chip_gen: v6e
topology: v6e:2x2x1
jax: 0.10.0
libtpu: 0.0.40
codegen_flags: <defaults>
</compile_context>

<pallas_src>
import functools
import math

import jax
import jax.numpy as jnp
from jax.experimental import pallas as pl
from jax.experimental.pallas import tpu as pltpu


TIME_BLOCK = 32        # timesteps per grid step; sweep {16,32,64,128} per gen
UNROLL = 8             # partial unroll of the per-timestep loop (serial dep)
NUM_BATCH_BLOCKS = 1   # set to 2 on v7x (needs Bp >= 16) to run independent
                       # batch shards of the recurrence on both TensorCores
SUBLANE = 8            # f32 sublane
LANE = 128             # lane width


def _round_up(x, m):
    return ((x + m - 1) // m) * m


# ----------------------------------------------------------------------------
# Pallas kernel: recurrent part of one LSTM layer.
#   grid = (num_batch_blocks, T_pad // TT): batch axis "parallel",
#   time axis "arbitrary" (sequential recurrence).
# ----------------------------------------------------------------------------
def _lstm_recurrent_kernel(gx_ref, whh_hbm, h0_ref, c0_ref,
                           y_ref, hn_ref, cn_ref,
                           whh_vmem, whh_sem, h_sc, c_sc,
                           *, tt, tail, unroll):
    """gx_ref : (tt, bb, 4*Hp) precomputed x @ W_ih^T + (b_ih + b_hh)
       whh_hbm: (Hp, 4*Hp)     W_hh^T in HBM (memory_space=ANY), DMA'd once
       h0/c0  : (bb, Hp)       initial state for this batch block
       y_ref  : (tt, bb, Hp)   hidden outputs for this block
       hn/cn  : (bb, Hp)       final state, written on the last time block only
    """
    ti = pl.program_id(1)
    last = pl.num_programs(1) - 1

    @pl.when(ti == 0)
    def _():
        # One-shot DMA of W_hh^T into a single-buffered VMEM scratch buffer;
        # overlap the h0/c0 init with the copy.
        cp = pltpu.make_async_copy(whh_hbm, whh_vmem, whh_sem)
        cp.start()
        h_sc[...] = h0_ref[...]
        c_sc[...] = c0_ref[...]
        cp.wait()

    hp = h_sc.shape[-1]

    def run_steps(nsteps):
        def step(lt, carry):
            h, c = carry
            # Gates: (bb, 4*Hp), PyTorch gate order [i, f, g, o]; slices are
            # lane-aligned because Hp is a multiple of 128.
            gates = gx_ref[lt].astype(jnp.float32) + jnp.dot(
                h.astype(whh_vmem.dtype), whh_vmem[...],
                preferred_element_type=jnp.float32)
            i = jax.nn.sigmoid(gates[:, 0 * hp:1 * hp])
            f = jax.nn.sigmoid(gates[:, 1 * hp:2 * hp])
            g = jnp.tanh(gates[:, 2 * hp:3 * hp])
            o = jax.nn.sigmoid(gates[:, 3 * hp:4 * hp])
            c_new = f * c + i * g
            h_new = o * jnp.tanh(c_new)
            y_ref[lt] = h_new.astype(y_ref.dtype)
            return (h_new, c_new)

        # h/c live in vregs as loop carries; scratch is touched once per block.
        h_fin, c_fin = jax.lax.fori_loop(
            0, nsteps, step, (h_sc[...], c_sc[...]),
            unroll=max(1, min(unroll, nsteps)))
        h_sc[...] = h_fin
        c_sc[...] = c_fin

    if tail == tt:
        run_steps(tt)                       # no padded timesteps anywhere
    else:
        # Only the last time block has padded timesteps: run a statically
        # shorter loop there instead of masking dead steps in every block.
        @pl.when(ti < last)
        def _():
            run_steps(tt)

        @pl.when(ti == last)
        def _():
            run_steps(tail)

    @pl.when(ti == last)
    def _():
        hn_ref[...] = h_sc[...].astype(hn_ref.dtype)
        cn_ref[...] = c_sc[...].astype(cn_ref.dtype)


def lstm_recurrent_pallas(gx, whh_t_pad, h0_pad, c0_pad, *, tt, t_real,
                          num_batch_blocks=1):
    """Run the recurrence.  gx: (T_pad, Bp, 4*Hp).  Returns (y, h_n, c_n)."""
    t_pad, bp, g4 = gx.shape
    hp = whh_t_pad.shape[0]
    n_tb = t_pad // tt
    if bp % (SUBLANE * num_batch_blocks) != 0:
        num_batch_blocks = 1
    bb = bp // num_batch_blocks
    tail = t_real - (n_tb - 1) * tt          # steps in the last time block

    kernel = functools.partial(_lstm_recurrent_kernel,
                               tt=tt, tail=tail, unroll=UNROLL)

    cdt = gx.dtype
    csz = jnp.dtype(cdt).itemsize
    # Explicit VMEM budget (matters on v7x: 64 MiB physical / 32 MiB scoped).
    need = (2 * tt * bb * 4 * hp * csz       # gx blocks (double-buffered)
            + 2 * tt * bb * hp * csz         # y blocks (double-buffered)
            + hp * 4 * hp * csz              # W_hh^T scratch (single buffer)
            + 10 * bb * hp * 4)              # h0/c0/hn/cn blocks + h/c scratch
    vmem_limit = int(min(need + (8 << 20), 100 << 20))

    y, hn, cn = pl.pallas_call(
        kernel,
        out_shape=(jax.ShapeDtypeStruct((t_pad, bp, hp), cdt),
                   jax.ShapeDtypeStruct((bp, hp), jnp.float32),
                   jax.ShapeDtypeStruct((bp, hp), jnp.float32)),
        grid_spec=pltpu.PrefetchScalarGridSpec(
            num_scalar_prefetch=0,
            grid=(num_batch_blocks, n_tb),
            in_specs=[
                pl.BlockSpec((tt, bb, g4), lambda bi, ti: (ti, bi, 0)),  # gx
                pl.BlockSpec(memory_space=pl.ANY),                       # W_hh^T
                pl.BlockSpec((bb, hp), lambda bi, ti: (bi, 0)),          # h0
                pl.BlockSpec((bb, hp), lambda bi, ti: (bi, 0)),          # c0
            ],
            out_specs=[
                pl.BlockSpec((tt, bb, hp), lambda bi, ti: (ti, bi, 0)),  # y
                pl.BlockSpec((bb, hp), lambda bi, ti: (bi, 0)),          # h_n
                pl.BlockSpec((bb, hp), lambda bi, ti: (bi, 0)),          # c_n
            ],
            scratch_shapes=[
                pltpu.VMEM((hp, g4), cdt),          # W_hh^T (single-buffered)
                pltpu.SemaphoreType.DMA,            # its DMA semaphore
                pltpu.VMEM((bb, hp), jnp.float32),  # h carry
                pltpu.VMEM((bb, hp), jnp.float32),  # c carry
            ]),
        compiler_params=pltpu.CompilerParams(
            dimension_semantics=("parallel", "arbitrary"),
            vmem_limit_bytes=vmem_limit),
    )(gx, whh_t_pad, h0_pad, c0_pad)
    return y, hn, cn


# ----------------------------------------------------------------------------
# Jitted multi-layer forward (pure function of params / inputs).
# ----------------------------------------------------------------------------
def _cpcar_forward(prepared, x, h0_all, c0_all, *, dim_output, compute_dtype,
                   num_batch_blocks):
    B, T, _ = x.shape
    H = dim_output
    hp = _round_up(H, LANE)
    bp = _round_up(B, SUBLANE)
    tt = min(T, TIME_BLOCK)
    t_pad = _round_up(T, tt)

    # One layout change + one pad for the whole stack: (B,T,E) -> (T_pad,Bp,E).
    # Activations stay in (T, B, ...) between layers; the (B, T, H) transpose
    # happens exactly once on the final output.
    out = jnp.transpose(x, (1, 0, 2))
    out = jnp.pad(out, ((0, t_pad - T), (0, bp - B), (0, 0)))
    out = out.astype(compute_dtype)

    hn_list, cn_list = [], []
    for layer, (wih_t_pad, bias_pad, whh_t_pad) in enumerate(prepared):
        in_dim = out.shape[-1]
        # Hoisted, non-recurrent input projection over all timesteps at once.
        # Output padding is folded into the pre-padded weights/bias, so the
        # result is directly (T_pad*Bp, 4*Hp) with no activation-side jnp.pad.
        gx = jnp.dot(out.reshape(t_pad * bp, in_dim), wih_t_pad,
                     preferred_element_type=jnp.float32) + bias_pad
        gx = gx.reshape(t_pad, bp, 4 * hp).astype(compute_dtype)

        h0p = jnp.pad(h0_all[layer], ((0, bp - B), (0, hp - H)))
        c0p = jnp.pad(c0_all[layer], ((0, bp - B), (0, hp - H)))

        y, hn, cn = lstm_recurrent_pallas(
            gx, whh_t_pad, h0p, c0p, tt=tt, t_real=T,
            num_batch_blocks=num_batch_blocks)
        out = y                              # (T_pad, Bp, Hp) feeds next layer
        hn_list.append(hn[:B, :H])
        cn_list.append(cn[:B, :H])

    y_out = jnp.transpose(out[:T, :B, :H], (1, 0, 2)).astype(jnp.float32)
    return y_out, jnp.stack(hn_list), jnp.stack(cn_list)


# ----------------------------------------------------------------------------
# CPCAR module replica.
# ----------------------------------------------------------------------------
class CPCARPallas:
    def __init__(self, dim_encoded, dim_output, keep_hidden, num_layers, key,
                 compute_dtype=jnp.float32, num_batch_blocks=NUM_BATCH_BLOCKS):
        self.dim_encoded = dim_encoded
        self.dim_output = dim_output
        self.num_layers = num_layers
        self.keep_hidden = keep_hidden
        self.hidden = None

        H = dim_output
        hp = _round_up(H, LANE)
        k = 1.0 / math.sqrt(H)

        self.params = []      # raw per-layer params (for the reference check)
        self._prepared = []   # (padded W_ih^T, padded fused bias, padded W_hh^T)
        for layer in range(num_layers):
            in_dim = dim_encoded if layer == 0 else H
            key, k1, k2, k3, k4 = jax.random.split(key, 5)
            w_ih = jax.random.uniform(k1, (4 * H, in_dim), jnp.float32, -k, k)
            w_hh = jax.random.uniform(k2, (4 * H, H), jnp.float32, -k, k)
            b_ih = jax.random.uniform(k3, (4 * H,), jnp.float32, -k, k)
            b_hh = jax.random.uniform(k4, (4 * H,), jnp.float32, -k, k)
            self.params.append((w_ih, w_hh, b_ih, b_hh))

            # Layer > 0 consumes the previous layer's Hp-padded output, so its
            # W_ih^T input rows are padded too (they multiply the provably-zero
            # padded hidden lanes, contributing nothing).
            in_dim_p = in_dim if layer == 0 else hp

            # NOTE (padding invariant): padded hidden lanes of h/c stay exactly
            # zero because (a) the padded *output* columns of W_ih^T, W_hh^T
            # and the fused bias are zero -> padded gate lanes are 0 ->
            # i=f=o=0.5, g=0, and (b) h0/c0 are zero-padded -> c_pad stays 0 ->
            # h_pad = 0.5*tanh(0) = 0.  Do not change the padding scheme
            # without re-deriving this.
            wih_t = jnp.transpose(w_ih).reshape(in_dim, 4, H)
            wih_t_pad = jnp.pad(
                wih_t, ((0, in_dim_p - in_dim), (0, 0), (0, hp - H)))
            wih_t_pad = wih_t_pad.reshape(in_dim_p, 4 * hp).astype(compute_dtype)

            bias_pad = jnp.pad((b_ih + b_hh).reshape(4, H),
                               ((0, 0), (0, hp - H))).reshape(1, 4 * hp)

            whh_t = jnp.transpose(w_hh).reshape(H, 4, H)
            whh_t_pad = jnp.pad(whh_t, ((0, hp - H), (0, 0), (0, hp - H)))
            whh_t_pad = whh_t_pad.reshape(hp, 4 * hp).astype(compute_dtype)

            self._prepared.append((wih_t_pad, bias_pad, whh_t_pad))

        self._forward_jit = jax.jit(functools.partial(
            _cpcar_forward, dim_output=dim_output,
            compute_dtype=compute_dtype, num_batch_blocks=num_batch_blocks))

    def get_output_dim(self):
        return self.dim_output

    def forward(self, x):
        # x: (B, T, dim_encoded), batch_first like the PyTorch module.
        B = x.shape[0]
        H = self.dim_output
        if self.hidden is None:
            h0_all = jnp.zeros((self.num_layers, B, H), jnp.float32)
            c0_all = jnp.zeros((self.num_layers, B, H), jnp.float32)
        else:
            if self.hidden[0].shape[1] != B:
                raise ValueError("keep_hidden: batch size changed between "
                                 "forward calls; reset .hidden first.")
            h0_all, c0_all = self.hidden

        y, hn_all, cn_all = self._forward_jit(self._prepared, x, h0_all, c0_all)

        if self.keep_hidden:
            self.hidden = (jax.lax.stop_gradient(hn_all),
                           jax.lax.stop_gradient(cn_all))
        return y


# ----------------------------------------------------------------------------
# Pure-JAX reference (lax.scan LSTM) for correctness checks.
# ----------------------------------------------------------------------------
def lstm_reference(x, params, h0_all, c0_all):
    H = params[0][1].shape[1]
    out = x
    hns, cns = [], []
    for layer, (w_ih, w_hh, b_ih, b_hh) in enumerate(params):
        def step(carry, x_t):
            h, c = carry
            gates = x_t @ w_ih.T + b_ih + h @ w_hh.T + b_hh
            i = jax.nn.sigmoid(gates[:, 0 * H:1 * H])
            f = jax.nn.sigmoid(gates[:, 1 * H:2 * H])
            g = jnp.tanh(gates[:, 2 * H:3 * H])
            o = jax.nn.sigmoid(gates[:, 3 * H:4 * H])
            c = f * c + i * g
            h = o * jnp.tanh(c)
            return (h, c), h
        (hn, cn), ys = jax.lax.scan(step, (h0_all[layer], c0_all[layer]),
                                    jnp.swapaxes(out, 0, 1))
        out = jnp.swapaxes(ys, 0, 1)
        hns.append(hn)
        cns.append(cn)
    return out, jnp.stack(hns), jnp.stack(cns)


if __name__ == "__main__":
    key = jax.random.PRNGKey(0)
    key, pkey, xkey, xkey2 = jax.random.split(key, 4)

    B, T = 2, 8
    dim_encoded, dim_output, num_layers = 16, 32, 2

    # --- f32 path (default): exact check vs. the f32 reference. -------------
    model = CPCARPallas(dim_encoded, dim_output, keep_hidden=True,
                        num_layers=num_layers, key=pkey)
    x = jax.random.normal(xkey, (B, T, dim_encoded), jnp.float32)

    y = jax.block_until_ready(model.forward(x))
    assert y.shape == (B, T, dim_output)
    assert model.hidden is not None                 # keep_hidden stored (h_n, c_n)

    h0_all = jnp.zeros((num_layers, B, dim_output), jnp.float32)
    c0_all = jnp.zeros((num_layers, B, dim_output), jnp.float32)
    y_ref, hn_ref, cn_ref = lstm_reference(x, model.params, h0_all, c0_all)
    assert jnp.allclose(y, y_ref, atol=1e-5, rtol=1e-5), "y mismatch vs reference"
    assert jnp.allclose(model.hidden[0], hn_ref, atol=1e-5, rtol=1e-5), "h_n mismatch"
    assert jnp.allclose(model.hidden[1], cn_ref, atol=1e-5, rtol=1e-5), "c_n mismatch"

    # --- multi-time-block + padded-tail path (T=40 -> 2 blocks, tail=8). ----
    model2 = CPCARPallas(dim_encoded, dim_output, keep_hidden=False,
                         num_layers=num_layers, key=pkey)
    x2 = jax.random.normal(xkey2, (B, 40, dim_encoded), jnp.float32)
    y2 = jax.block_until_ready(model2.forward(x2))
    y2_ref, _, _ = lstm_reference(x2, model2.params, h0_all, c0_all)
    assert jnp.allclose(y2, y2_ref, atol=1e-4, rtol=1e-4), "tail-path mismatch"

    # --- bf16 MXU-operand path (recommended on v6e/v7x), same params. -------
    model_bf16 = CPCARPallas(dim_encoded, dim_output, keep_hidden=False,
                             num_layers=num_layers, key=pkey,
                             compute_dtype=jnp.bfloat16)
    y16 = jax.block_until_ready(model_bf16.forward(x))
    assert jnp.allclose(y16, y_ref, atol=5e-2, rtol=5e-2), "bf16 path mismatch"

    print("KERNEL_OK")
</pallas_src>

<mosaic_0001>
module attributes {stable_mosaic.version = 11 : i64} {
  func.func @_lstm_recurrent_kernel(%arg0: i32, %arg1: i32, %arg2: memref<8x8x512xf32, #tpu.memory_space<vmem>>, %arg3: memref<128x512xf32, #tpu.memory_space<any>>, %arg4: memref<8x128xf32, #tpu.memory_space<vmem>>, %arg5: memref<8x128xf32, #tpu.memory_space<vmem>>, %arg6: memref<8x8x128xf32, #tpu.memory_space<vmem>>, %arg7: memref<8x128xf32, #tpu.memory_space<vmem>>, %arg8: memref<8x128xf32, #tpu.memory_space<vmem>>, %arg9: memref<128x512xf32, #tpu.memory_space<vmem>>, %arg10: memref<!tpu.dma_semaphore, #tpu.memory_space<semaphore_mem>>, %arg11: memref<8x128xf32, #tpu.memory_space<vmem>>, %arg12: memref<8x128xf32, #tpu.memory_space<vmem>>) attributes {dimension_semantics = [#tpu.dimension_semantics<parallel>, #tpu.dimension_semantics<arbitrary>], iteration_bounds = array<i64: 1, 1>, scalar_prefetch = 0 : i64, scratch_operands = 4 : i64, tpu.core_type = #tpu.core_type<tc>, window_params = [{transform_indices = @transform_0, window_bounds = array<i64: 8, 8, 512>}, {}, {transform_indices = @transform_2, window_bounds = array<i64: 8, 128>}, {transform_indices = @transform_3, window_bounds = array<i64: 8, 128>}, {transform_indices = @transform_4, window_bounds = array<i64: 8, 8, 128>}, {transform_indices = @transform_5, window_bounds = array<i64: 8, 128>}, {transform_indices = @transform_6, window_bounds = array<i64: 8, 128>}]} {
    %c0_i32 = arith.constant 0 : i32
    %0 = arith.cmpi eq, %arg1, %c0_i32 : i32
    %1 = arith.extui %0 : i1 to i32
    %c0_i32_0 = arith.constant 0 : i32
    %2 = arith.cmpi ne, %1, %c0_i32_0 : i32
    scf.if %2 {
      tpu.enqueue_dma source(%arg3 : memref<128x512xf32, #tpu.memory_space<any>>) target(%arg9 : memref<128x512xf32, #tpu.memory_space<vmem>>) target_semaphore(%arg10 : memref<!tpu.dma_semaphore, #tpu.memory_space<semaphore_mem>>)
      %c0_90 = arith.constant 0 : index
      %c0_91 = arith.constant 0 : index
      %290 = vector.load %arg4[%c0_90, %c0_91] : memref<8x128xf32, #tpu.memory_space<vmem>>, vector<8x128xf32>
      %c0_92 = arith.constant 0 : index
      %c0_93 = arith.constant 0 : index
      %291 = vector.load %arg11[%c0_92, %c0_93] : memref<8x128xf32, #tpu.memory_space<vmem>>, vector<8x128xf32>
      tpu.vector_store %arg11[%c0_92, %c0_93], %290 {strides = array<i32>} : memref<8x128xf32, #tpu.memory_space<vmem>>, vector<8x128xf32>,
      %c0_94 = arith.constant 0 : index
      %c0_95 = arith.constant 0 : index
      %292 = vector.load %arg5[%c0_94, %c0_95] : memref<8x128xf32, #tpu.memory_space<vmem>>, vector<8x128xf32>
      %c0_96 = arith.constant 0 : index
      %c0_97 = arith.constant 0 : index
      %293 = vector.load %arg12[%c0_96, %c0_97] : memref<8x128xf32, #tpu.memory_space<vmem>>, vector<8x128xf32>
      tpu.vector_store %arg12[%c0_96, %c0_97], %292 {strides = array<i32>} : memref<8x128xf32, #tpu.memory_space<vmem>>, vector<8x128xf32>,
      tpu.wait_dma2 semaphore(%arg10 : memref<!tpu.dma_semaphore, #tpu.memory_space<semaphore_mem>>) src(%arg3 : memref<128x512xf32, #tpu.memory_space<any>>) dst(%arg9 : memref<128x512xf32, #tpu.memory_space<vmem>>)
    } else {
    }
    %c0 = arith.constant 0 : index
    %c0_1 = arith.constant 0 : index
    %3 = vector.load %arg11[%c0, %c0_1] : memref<8x128xf32, #tpu.memory_space<vmem>>, vector<8x128xf32>
    %c0_2 = arith.constant 0 : index
    %c0_3 = arith.constant 0 : index
    %4 = vector.load %arg12[%c0_2, %c0_3] : memref<8x128xf32, #tpu.memory_space<vmem>>, vector<8x128xf32>
    %c0_i32_4 = arith.constant 0 : i32
    %5 = arith.index_cast %c0_i32_4 : i32 to index
    %c0_5 = arith.constant 0 : index
    %c0_6 = arith.constant 0 : index
    %6 = vector.load %arg2[%5, %c0_5, %c0_6] : memref<8x8x512xf32, #tpu.memory_space<vmem>>, vector<1x8x512xf32>
    %7 = vector.shape_cast %6 : vector<1x8x512xf32> to vector<8x512xf32>
    %c0_7 = arith.constant 0 : index
    %c0_8 = arith.constant 0 : index
    %8 = vector.load %arg9[%c0_7, %c0_8] : memref<128x512xf32, #tpu.memory_space<vmem>>, vector<128x512xf32>
    %cst = arith.constant dense<0.000000e+00> : vector<8x512xf32>
    %9 = tpu.matmul %3, %8, %cst {dimension_numbers = #tpu.dot_dimension_numbers<[1], [0], [0], [1], [0, 0, 1, 1], [], []>} : vector<8x128xf32>, vector<128x512xf32>, vector<8x512xf32> -> vector<8x512xf32>
    %10 = arith.addf %7, %9 : vector<8x512xf32>
    %11 = vector.extract_strided_slice %10 {offsets = [0, 0], sizes = [8, 128], strides = [1, 1]} : vector<8x512xf32> to vector<8x128xf32>
    %12 = arith.negf %11 : vector<8x128xf32>
    %13 = math.exp %12 : vector<8x128xf32>
    %cst_9 = arith.constant 1.000000e+00 : f32
    %14 = vector.broadcast %cst_9 : f32 to vector<8x128xf32>
    %15 = arith.addf %14, %13 : vector<8x128xf32>
    %16 = arith.divf %14, %15 : vector<8x128xf32>
    %17 = vector.extract_strided_slice %10 {offsets = [0, 128], sizes = [8, 128], strides = [1, 1]} : vector<8x512xf32> to vector<8x128xf32>
    %18 = arith.negf %17 : vector<8x128xf32>
    %19 = math.exp %18 : vector<8x128xf32>
    %cst_10 = arith.constant 1.000000e+00 : f32
    %20 = vector.broadcast %cst_10 : f32 to vector<8x128xf32>
    %21 = arith.addf %20, %19 : vector<8x128xf32>
    %22 = arith.divf %20, %21 : vector<8x128xf32>
    %23 = vector.extract_strided_slice %10 {offsets = [0, 256], sizes = [8, 128], strides = [1, 1]} : vector<8x512xf32> to vector<8x128xf32>
    %24 = math.tanh %23 : vector<8x128xf32>
    %25 = vector.extract_strided_slice %10 {offsets = [0, 384], sizes = [8, 128], strides = [1, 1]} : vector<8x512xf32> to vector<8x128xf32>
    %26 = arith.negf %25 : vector<8x128xf32>
    %27 = math.exp %26 : vector<8x128xf32>
    %cst_11 = arith.constant 1.000000e+00 : f32
    %28 = vector.broadcast %cst_11 : f32 to vector<8x128xf32>
    %29 = arith.addf %28, %27 : vector<8x128xf32>
    %30 = arith.divf %28, %29 : vector<8x128xf32>
    %31 = arith.mulf %22, %4 : vector<8x128xf32>
    %32 = arith.mulf %16, %24 : vector<8x128xf32>
    %33 = arith.addf %31, %32 : vector<8x128xf32>
    %34 = math.tanh %33 : vector<8x128xf32>
    %35 = arith.mulf %30, %34 : vector<8x128xf32>
    %36 = arith.index_cast %c0_i32_4 : i32 to index
    %c0_12 = arith.constant 0 : index
    %c0_13 = arith.constant 0 : index
    %37 = vector.load %arg6[%36, %c0_12, %c0_13] : memref<8x8x128xf32, #tpu.memory_space<vmem>>, vector<1x8x128xf32>
    %38 = vector.shape_cast %37 : vector<1x8x128xf32> to vector<8x128xf32>
    %39 = vector.shape_cast %35 : vector<8x128xf32> to vector<1x8x128xf32>
    tpu.vector_store %arg6[%36, %c0_12, %c0_13], %39 {strides = array<i32>} : memref<8x8x128xf32, #tpu.memory_space<vmem>>, vector<1x8x128xf32>,
    %c1_i32 = arith.constant 1 : i32
    %40 = arith.index_cast %c1_i32 : i32 to index
    %c0_14 = arith.constant 0 : index
    %c0_15 = arith.constant 0 : index
    %41 = vector.load %arg2[%40, %c0_14, %c0_15] : memref<8x8x512xf32, #tpu.memory_space<vmem>>, vector<1x8x512xf32>
    %42 = vector.shape_cast %41 : vector<1x8x512xf32> to vector<8x512xf32>
    %c0_16 = arith.constant 0 : index
    %c0_17 = arith.constant 0 : index
    %43 = vector.load %arg9[%c0_16, %c0_17] : memref<128x512xf32, #tpu.memory_space<vmem>>, vector<128x512xf32>
    %cst_18 = arith.constant dense<0.000000e+00> : vector<8x512xf32>
    %44 = tpu.matmul %35, %43, %cst_18 {dimension_numbers = #tpu.dot_dimension_numbers<[1], [0], [0], [1], [0, 0, 1, 1], [], []>} : vector<8x128xf32>, vector<128x512xf32>, vector<8x512xf32> -> vector<8x512xf32>
    %45 = arith.addf %42, %44 : vector<8x512xf32>
    %46 = vector.extract_strided_slice %45 {offsets = [0, 0], sizes = [8, 128], strides = [1, 1]} : vector<8x512xf32> to vector<8x128xf32>
    %47 = arith.negf %46 : vector<8x128xf32>
    %48 = math.exp %47 : vector<8x128xf32>
    %cst_19 = arith.constant 1.000000e+00 : f32
    %49 = vector.broadcast %cst_19 : f32 to vector<8x128xf32>
    %50 = arith.addf %49, %48 : vector<8x128xf32>
    %51 = arith.divf %49, %50 : vector<8x128xf32>
    %52 = vector.extract_strided_slice %45 {offsets = [0, 128], sizes = [8, 128], strides = [1, 1]} : vector<8x512xf32> to vector<8x128xf32>
    %53 = arith.negf %52 : vector<8x128xf32>
    %54 = math.exp %53 : vector<8x128xf32>
    %cst_20 = arith.constant 1.000000e+00 : f32
    %55 = vector.broadcast %cst_20 : f32 to vector<8x128xf32>
    %56 = arith.addf %55, %54 : vector<8x128xf32>
    %57 = arith.divf %55, %56 : vector<8x128xf32>
    %58 = vector.extract_strided_slice %45 {offsets = [0, 256], sizes = [8, 128], strides = [1, 1]} : vector<8x512xf32> to vector<8x128xf32>
    %59 = math.tanh %58 : vector<8x128xf32>
    %60 = vector.extract_strided_slice %45 {offsets = [0, 384], sizes = [8, 128], strides = [1, 1]} : vector<8x512xf32> to vector<8x128xf32>
    %61 = arith.negf %60 : vector<8x128xf32>
    %62 = math.exp %61 : vector<8x128xf32>
    %cst_21 = arith.constant 1.000000e+00 : f32
    %63 = vector.broadcast %cst_21 : f32 to vector<8x128xf32>
    %64 = arith.addf %63, %62 : vector<8x128xf32>
    %65 = arith.divf %63, %64 : vector<8x128xf32>
    %66 = arith.mulf %57, %33 : vector<8x128xf32>
    %67 = arith.mulf %51, %59 : vector<8x128xf32>
    %68 = arith.addf %66, %67 : vector<8x128xf32>
    %69 = math.tanh %68 : vector<8x128xf32>
    %70 = arith.mulf %65, %69 : vector<8x128xf32>
    %71 = arith.index_cast %c1_i32 : i32 to index
    %c0_22 = arith.constant 0 : index
    %c0_23 = arith.constant 0 : index
    %72 = vector.load %arg6[%71, %c0_22, %c0_23] : memref<8x8x128xf32, #tpu.memory_space<vmem>>, vector<1x8x128xf32>
    %73 = vector.shape_cast %72 : vector<1x8x128xf32> to vector<8x128xf32>
    %74 = vector.shape_cast %70 : vector<8x128xf32> to vector<1x8x128xf32>
    tpu.vector_store %arg6[%71, %c0_22, %c0_23], %74 {strides = array<i32>} : memref<8x8x128xf32, #tpu.memory_space<vmem>>, vector<1x8x128xf32>,
    %c2_i32 = arith.constant 2 : i32
    %75 = arith.index_cast %c2_i32 : i32 to index
    %c0_24 = arith.constant 0 : index
    %c0_25 = arith.constant 0 : index
    %76 = vector.load %arg2[%75, %c0_24, %c0_25] : memref<8x8x512xf32, #tpu.memory_space<vmem>>, vector<1x8x512xf32>
    %77 = vector.shape_cast %76 : vector<1x8x512xf32> to vector<8x512xf32>
    %c0_26 = arith.constant 0 : index
    %c0_27 = arith.constant 0 : index
    %78 = vector.load %arg9[%c0_26, %c0_27] : memref<128x512xf32, #tpu.memory_space<vmem>>, vector<128x512xf32>
    %cst_28 = arith.constant dense<0.000000e+00> : vector<8x512xf32>
    %79 = tpu.matmul %70, %78, %cst_28 {dimension_numbers = #tpu.dot_dimension_numbers<[1], [0], [0], [1], [0, 0, 1, 1], [], []>} : vector<8x128xf32>, vector<128x512xf32>, vector<8x512xf32> -> vector<8x512xf32>
    %80 = arith.addf %77, %79 : vector<8x512xf32>
    %81 = vector.extract_strided_slice %80 {offsets = [0, 0], sizes = [8, 128], strides = [1, 1]} : vector<8x512xf32> to vector<8x128xf32>
    %82 = arith.negf %81 : vector<8x128xf32>
    %83 = math.exp %82 : vector<8x128xf32>
    %cst_29 = arith.constant 1.000000e+00 : f32
    %84 = vector.broadcast %cst_29 : f32 to vector<8x128xf32>
    %85 = arith.addf %84, %83 : vector<8x128xf32>
    %86 = arith.divf %84, %85 : vector<8x128xf32>
    %87 = vector.extract_strided_slice %80 {offsets = [0, 128], sizes = [8, 128], strides = [1, 1]} : vector<8x512xf32> to vector<8x128xf32>
    %88 = arith.negf %87 : vector<8x128xf32>
    %89 = math.exp %88 : vector<8x128xf32>
    %cst_30 = arith.constant 1.000000e+00 : f32
    %90 = vector.broadcast %cst_30 : f32 to vector<8x128xf32>
    %91 = arith.addf %90, %89 : vector<8x128xf32>
    %92 = arith.divf %90, %91 : vector<8x128xf32>
    %93 = vector.extract_strided_slice %80 {offsets = [0, 256], sizes = [8, 128], strides = [1, 1]} : vector<8x512xf32> to vector<8x128xf32>
    %94 = math.tanh %93 : vector<8x128xf32>
    %95 = vector.extract_strided_slice %80 {offsets = [0, 384], sizes = [8, 128], strides = [1, 1]} : vector<8x512xf32> to vector<8x128xf32>
    %96 = arith.negf %95 : vector<8x128xf32>
    %97 = math.exp %96 : vector<8x128xf32>
    %cst_31 = arith.constant 1.000000e+00 : f32
    %98 = vector.broadcast %cst_31 : f32 to vector<8x128xf32>
    %99 = arith.addf %98, %97 : vector<8x128xf32>
    %100 = arith.divf %98, %99 : vector<8x128xf32>
    %101 = arith.mulf %92, %68 : vector<8x128xf32>
    %102 = arith.mulf %86, %94 : vector<8x128xf32>
    %103 = arith.addf %101, %102 : vector<8x128xf32>
    %104 = math.tanh %103 : vector<8x128xf32>
    %105 = arith.mulf %100, %104 : vector<8x128xf32>
    %106 = arith.index_cast %c2_i32 : i32 to index
    %c0_32 = arith.constant 0 : index
    %c0_33 = arith.constant 0 : index
    %107 = vector.load %arg6[%106, %c0_32, %c0_33] : memref<8x8x128xf32, #tpu.memory_space<vmem>>, vector<1x8x128xf32>
    %108 = vector.shape_cast %107 : vector<1x8x128xf32> to vector<8x128xf32>
    %109 = vector.shape_cast %105 : vector<8x128xf32> to vector<1x8x128xf32>
    tpu.vector_store %arg6[%106, %c0_32, %c0_33], %109 {strides = array<i32>} : memref<8x8x128xf32, #tpu.memory_space<vmem>>, vector<1x8x128xf32>,
    %c3_i32 = arith.constant 3 : i32
    %110 = arith.index_cast %c3_i32 : i32 to index
    %c0_34 = arith.constant 0 : index
    %c0_35 = arith.constant 0 : index
    %111 = vector.load %arg2[%110, %c0_34, %c0_35] : memref<8x8x512xf32, #tpu.memory_space<vmem>>, vector<1x8x512xf32>
    %112 = vector.shape_cast %111 : vector<1x8x512xf32> to vector<8x512xf32>
    %c0_36 = arith.constant 0 : index
    %c0_37 = arith.constant 0 : index
    %113 = vector.load %arg9[%c0_36, %c0_37] : memref<128x512xf32, #tpu.memory_space<vmem>>, vector<128x512xf32>
    %cst_38 = arith.constant dense<0.000000e+00> : vector<8x512xf32>
    %114 = tpu.matmul %105, %113, %cst_38 {dimension_numbers = #tpu.dot_dimension_numbers<[1], [0], [0], [1], [0, 0, 1, 1], [], []>} : vector<8x128xf32>, vector<128x512xf32>, vector<8x512xf32> -> vector<8x512xf32>
    %115 = arith.addf %112, %114 : vector<8x512xf32>
    %116 = vector.extract_strided_slice %115 {offsets = [0, 0], sizes = [8, 128], strides = [1, 1]} : vector<8x512xf32> to vector<8x128xf32>
    %117 = arith.negf %116 : vector<8x128xf32>
    %118 = math.exp %117 : vector<8x128xf32>
    %cst_39 = arith.constant 1.000000e+00 : f32
    %119 = vector.broadcast %cst_39 : f32 to vector<8x128xf32>
    %120 = arith.addf %119, %118 : vector<8x128xf32>
    %121 = arith.divf %119, %120 : vector<8x128xf32>
    %122 = vector.extract_strided_slice %115 {offsets = [0, 128], sizes = [8, 128], strides = [1, 1]} : vector<8x512xf32> to vector<8x128xf32>
    %123 = arith.negf %122 : vector<8x128xf32>
    %124 = math.exp %123 : vector<8x128xf32>
    %cst_40 = arith.constant 1.000000e+00 : f32
    %125 = vector.broadcast %cst_40 : f32 to vector<8x128xf32>
    %126 = arith.addf %125, %124 : vector<8x128xf32>
    %127 = arith.divf %125, %126 : vector<8x128xf32>
    %128 = vector.extract_strided_slice %115 {offsets = [0, 256], sizes = [8, 128], strides = [1, 1]} : vector<8x512xf32> to vector<8x128xf32>
    %129 = math.tanh %128 : vector<8x128xf32>
    %130 = vector.extract_strided_slice %115 {offsets = [0, 384], sizes = [8, 128], strides = [1, 1]} : vector<8x512xf32> to vector<8x128xf32>
    %131 = arith.negf %130 : vector<8x128xf32>
    %132 = math.exp %131 : vector<8x128xf32>
    %cst_41 = arith.constant 1.000000e+00 : f32
    %133 = vector.broadcast %cst_41 : f32 to vector<8x128xf32>
    %134 = arith.addf %133, %132 : vector<8x128xf32>
    %135 = arith.divf %133, %134 : vector<8x128xf32>
    %136 = arith.mulf %127, %103 : vector<8x128xf32>
    %137 = arith.mulf %121, %129 : vector<8x128xf32>
    %138 = arith.addf %136, %137 : vector<8x128xf32>
    %139 = math.tanh %138 : vector<8x128xf32>
    %140 = arith.mulf %135, %139 : vector<8x128xf32>
    %141 = arith.index_cast %c3_i32 : i32 to index
    %c0_42 = arith.constant 0 : index
    %c0_43 = arith.constant 0 : index
    %142 = vector.load %arg6[%141, %c0_42, %c0_43] : memref<8x8x128xf32, #tpu.memory_space<vmem>>, vector<1x8x128xf32>
    %143 = vector.shape_cast %142 : vector<1x8x128xf32> to vector<8x128xf32>
    %144 = vector.shape_cast %140 : vector<8x128xf32> to vector<1x8x128xf32>
    tpu.vector_store %arg6[%141, %c0_42, %c0_43], %144 {strides = array<i32>} : memref<8x8x128xf32, #tpu.memory_space<vmem>>, vector<1x8x128xf32>,
    %c4_i32 = arith.constant 4 : i32
    %145 = arith.index_cast %c4_i32 : i32 to index
    %c0_44 = arith.constant 0 : index
    %c0_45 = arith.constant 0 : index
    %146 = vector.load %arg2[%145, %c0_44, %c0_45] : memref<8x8x512xf32, #tpu.memory_space<vmem>>, vector<1x8x512xf32>
    %147 = vector.shape_cast %146 : vector<1x8x512xf32> to vector<8x512xf32>
    %c0_46 = arith.constant 0 : index
    %c0_47 = arith.constant 0 : index
    %148 = vector.load %arg9[%c0_46, %c0_47] : memref<128x512xf32, #tpu.memory_space<vmem>>, vector<128x512xf32>
    %cst_48 = arith.constant dense<0.000000e+00> : vector<8x512xf32>
    %149 = tpu.matmul %140, %148, %cst_48 {dimension_numbers = #tpu.dot_dimension_numbers<[1], [0], [0], [1], [0, 0, 1, 1], [], []>} : vector<8x128xf32>, vector<128x512xf32>, vector<8x512xf32> -> vector<8x512xf32>
    %150 = arith.addf %147, %149 : vector<8x512xf32>
    %151 = vector.extract_strided_slice %150 {offsets = [0, 0], sizes = [8, 128], strides = [1, 1]} : vector<8x512xf32> to vector<8x128xf32>
    %152 = arith.negf %151 : vector<8x128xf32>
    %153 = math.exp %152 : vector<8x128xf32>
    %cst_49 = arith.constant 1.000000e+00 : f32
    %154 = vector.broadcast %cst_49 : f32 to vector<8x128xf32>
    %155 = arith.addf %154, %153 : vector<8x128xf32>
    %156 = arith.divf %154, %155 : vector<8x128xf32>
    %157 = vector.extract_strided_slice %150 {offsets = [0, 128], sizes = [8, 128], strides = [1, 1]} : vector<8x512xf32> to vector<8x128xf32>
    %158 = arith.negf %157 : vector<8x128xf32>
    %159 = math.exp %158 : vector<8x128xf32>
    %cst_50 = arith.constant 1.000000e+00 : f32
    %160 = vector.broadcast %cst_50 : f32 to vector<8x128xf32>
    %161 = arith.addf %160, %159 : vector<8x128xf32>
    %162 = arith.divf %160, %161 : vector<8x128xf32>
    %163 = vector.extract_strided_slice %150 {offsets = [0, 256], sizes = [8, 128], strides = [1, 1]} : vector<8x512xf32> to vector<8x128xf32>
    %164 = math.tanh %163 : vector<8x128xf32>
    %165 = vector.extract_strided_slice %150 {offsets = [0, 384], sizes = [8, 128], strides = [1, 1]} : vector<8x512xf32> to vector<8x128xf32>
    %166 = arith.negf %165 : vector<8x128xf32>
    %167 = math.exp %166 : vector<8x128xf32>
    %cst_51 = arith.constant 1.000000e+00 : f32
    %168 = vector.broadcast %cst_51 : f32 to vector<8x128xf32>
    %169 = arith.addf %168, %167 : vector<8x128xf32>
    %170 = arith.divf %168, %169 : vector<8x128xf32>
    %171 = arith.mulf %162, %138 : vector<8x128xf32>
    %172 = arith.mulf %156, %164 : vector<8x128xf32>
    %173 = arith.addf %171, %172 : vector<8x128xf32>
    %174 = math.tanh %173 : vector<8x128xf32>
    %175 = arith.mulf %170, %174 : vector<8x128xf32>
    %176 = arith.index_cast %c4_i32 : i32 to index
    %c0_52 = arith.constant 0 : index
    %c0_53 = arith.constant 0 : index
    %177 = vector.load %arg6[%176, %c0_52, %c0_53] : memref<8x8x128xf32, #tpu.memory_space<vmem>>, vector<1x8x128xf32>
    %178 = vector.shape_cast %177 : vector<1x8x128xf32> to vector<8x128xf32>
    %179 = vector.shape_cast %175 : vector<8x128xf32> to vector<1x8x128xf32>
    tpu.vector_store %arg6[%176, %c0_52, %c0_53], %179 {strides = array<i32>} : memref<8x8x128xf32, #tpu.memory_space<vmem>>, vector<1x8x128xf32>,
    %c5_i32 = arith.constant 5 : i32
    %180 = arith.index_cast %c5_i32 : i32 to index
    %c0_54 = arith.constant 0 : index
    %c0_55 = arith.constant 0 : index
    %181 = vector.load %arg2[%180, %c0_54, %c0_55] : memref<8x8x512xf32, #tpu.memory_space<vmem>>, vector<1x8x512xf32>
    %182 = vector.shape_cast %181 : vector<1x8x512xf32> to vector<8x512xf32>
    %c0_56 = arith.constant 0 : index
    %c0_57 = arith.constant 0 : index
    %183 = vector.load %arg9[%c0_56, %c0_57] : memref<128x512xf32, #tpu.memory_space<vmem>>, vector<128x512xf32>
    %cst_58 = arith.constant dense<0.000000e+00> : vector<8x512xf32>
    %184 = tpu.matmul %175, %183, %cst_58 {dimension_numbers = #tpu.dot_dimension_numbers<[1], [0], [0], [1], [0, 0, 1, 1], [], []>} : vector<8x128xf32>, vector<128x512xf32>, vector<8x512xf32> -> vector<8x512xf32>
    %185 = arith.addf %182, %184 : vector<8x512xf32>
    %186 = vector.extract_strided_slice %185 {offsets = [0, 0], sizes = [8, 128], strides = [1, 1]} : vector<8x512xf32> to vector<8x128xf32>
    %187 = arith.negf %186 : vector<8x128xf32>
    %188 = math.exp %187 : vector<8x128xf32>
    %cst_59 = arith.constant 1.000000e+00 : f32
    %189 = vector.broadcast %cst_59 : f32 to vector<8x128xf32>
    %190 = arith.addf %189, %188 : vector<8x128xf32>
    %191 = arith.divf %189, %190 : vector<8x128xf32>
    %192 = vector.extract_strided_slice %185 {offsets = [0, 128], sizes = [8, 128], strides = [1, 1]} : vector<8x512xf32> to vector<8x128xf32>
    %193 = arith.negf %192 : vector<8x128xf32>
    %194 = math.exp %193 : vector<8x128xf32>
    %cst_60 = arith.constant 1.000000e+00 : f32
    %195 = vector.broadcast %cst_60 : f32 to vector<8x128xf32>
    %196 = arith.addf %195, %194 : vector<8x128xf32>
    %197 = arith.divf %195, %196 : vector<8x128xf32>
    %198 = vector.extract_strided_slice %185 {offsets = [0, 256], sizes = [8, 128], strides = [1, 1]} : vector<8x512xf32> to vector<8x128xf32>
    %199 = math.tanh %198 : vector<8x128xf32>
    %200 = vector.extract_strided_slice %185 {offsets = [0, 384], sizes = [8, 128], strides = [1, 1]} : vector<8x512xf32> to vector<8x128xf32>
    %201 = arith.negf %200 : vector<8x128xf32>
    %202 = math.exp %201 : vector<8x128xf32>
    %cst_61 = arith.constant 1.000000e+00 : f32
    %203 = vector.broadcast %cst_61 : f32 to vector<8x128xf32>
    %204 = arith.addf %203, %202 : vector<8x128xf32>
    %205 = arith.divf %203, %204 : vector<8x128xf32>
    %206 = arith.mulf %197, %173 : vector<8x128xf32>
    %207 = arith.mulf %191, %199 : vector<8x128xf32>
    %208 = arith.addf %206, %207 : vector<8x128xf32>
    %209 = math.tanh %208 : vector<8x128xf32>
    %210 = arith.mulf %205, %209 : vector<8x128xf32>
    %211 = arith.index_cast %c5_i32 : i32 to index
    %c0_62 = arith.constant 0 : index
    %c0_63 = arith.constant 0 : index
    %212 = vector.load %arg6[%211, %c0_62, %c0_63] : memref<8x8x128xf32, #tpu.memory_space<vmem>>, vector<1x8x128xf32>
    %213 = vector.shape_cast %212 : vector<1x8x128xf32> to vector<8x128xf32>
    %214 = vector.shape_cast %210 : vector<8x128xf32> to vector<1x8x128xf32>
    tpu.vector_store %arg6[%211, %c0_62, %c0_63], %214 {strides = array<i32>} : memref<8x8x128xf32, #tpu.memory_space<vmem>>, vector<1x8x128xf32>,
    %c6_i32 = arith.constant 6 : i32
    %215 = arith.index_cast %c6_i32 : i32 to index
    %c0_64 = arith.constant 0 : index
    %c0_65 = arith.constant 0 : index
    %216 = vector.load %arg2[%215, %c0_64, %c0_65] : memref<8x8x512xf32, #tpu.memory_space<vmem>>, vector<1x8x512xf32>
    %217 = vector.shape_cast %216 : vector<1x8x512xf32> to vector<8x512xf32>
    %c0_66 = arith.constant 0 : index
    %c0_67 = arith.constant 0 : index
    %218 = vector.load %arg9[%c0_66, %c0_67] : memref<128x512xf32, #tpu.memory_space<vmem>>, vector<128x512xf32>
    %cst_68 = arith.constant dense<0.000000e+00> : vector<8x512xf32>
    %219 = tpu.matmul %210, %218, %cst_68 {dimension_numbers = #tpu.dot_dimension_numbers<[1], [0], [0], [1], [0, 0, 1, 1], [], []>} : vector<8x128xf32>, vector<128x512xf32>, vector<8x512xf32> -> vector<8x512xf32>
    %220 = arith.addf %217, %219 : vector<8x512xf32>
    %221 = vector.extract_strided_slice %220 {offsets = [0, 0], sizes = [8, 128], strides = [1, 1]} : vector<8x512xf32> to vector<8x128xf32>
    %222 = arith.negf %221 : vector<8x128xf32>
    %223 = math.exp %222 : vector<8x128xf32>
    %cst_69 = arith.constant 1.000000e+00 : f32
    %224 = vector.broadcast %cst_69 : f32 to vector<8x128xf32>
    %225 = arith.addf %224, %223 : vector<8x128xf32>
    %226 = arith.divf %224, %225 : vector<8x128xf32>
    %227 = vector.extract_strided_slice %220 {offsets = [0, 128], sizes = [8, 128], strides = [1, 1]} : vector<8x512xf32> to vector<8x128xf32>
    %228 = arith.negf %227 : vector<8x128xf32>
    %229 = math.exp %228 : vector<8x128xf32>
    %cst_70 = arith.constant 1.000000e+00 : f32
    %230 = vector.broadcast %cst_70 : f32 to vector<8x128xf32>
    %231 = arith.addf %230, %229 : vector<8x128xf32>
    %232 = arith.divf %230, %231 : vector<8x128xf32>
    %233 = vector.extract_strided_slice %220 {offsets = [0, 256], sizes = [8, 128], strides = [1, 1]} : vector<8x512xf32> to vector<8x128xf32>
    %234 = math.tanh %233 : vector<8x128xf32>
    %235 = vector.extract_strided_slice %220 {offsets = [0, 384], sizes = [8, 128], strides = [1, 1]} : vector<8x512xf32> to vector<8x128xf32>
    %236 = arith.negf %235 : vector<8x128xf32>
    %237 = math.exp %236 : vector<8x128xf32>
    %cst_71 = arith.constant 1.000000e+00 : f32
    %238 = vector.broadcast %cst_71 : f32 to vector<8x128xf32>
    %239 = arith.addf %238, %237 : vector<8x128xf32>
    %240 = arith.divf %238, %239 : vector<8x128xf32>
    %241 = arith.mulf %232, %208 : vector<8x128xf32>
    %242 = arith.mulf %226, %234 : vector<8x128xf32>
    %243 = arith.addf %241, %242 : vector<8x128xf32>
    %244 = math.tanh %243 : vector<8x128xf32>
    %245 = arith.mulf %240, %244 : vector<8x128xf32>
    %246 = arith.index_cast %c6_i32 : i32 to index
    %c0_72 = arith.constant 0 : index
    %c0_73 = arith.constant 0 : index
    %247 = vector.load %arg6[%246, %c0_72, %c0_73] : memref<8x8x128xf32, #tpu.memory_space<vmem>>, vector<1x8x128xf32>
    %248 = vector.shape_cast %247 : vector<1x8x128xf32> to vector<8x128xf32>
    %249 = vector.shape_cast %245 : vector<8x128xf32> to vector<1x8x128xf32>
    tpu.vector_store %arg6[%246, %c0_72, %c0_73], %249 {strides = array<i32>} : memref<8x8x128xf32, #tpu.memory_space<vmem>>, vector<1x8x128xf32>,
    %c7_i32 = arith.constant 7 : i32
    %250 = arith.index_cast %c7_i32 : i32 to index
    %c0_74 = arith.constant 0 : index
    %c0_75 = arith.constant 0 : index
    %251 = vector.load %arg2[%250, %c0_74, %c0_75] : memref<8x8x512xf32, #tpu.memory_space<vmem>>, vector<1x8x512xf32>
    %252 = vector.shape_cast %251 : vector<1x8x512xf32> to vector<8x512xf32>
    %c0_76 = arith.constant 0 : index
    %c0_77 = arith.constant 0 : index
    %253 = vector.load %arg9[%c0_76, %c0_77] : memref<128x512xf32, #tpu.memory_space<vmem>>, vector<128x512xf32>
    %cst_78 = arith.constant dense<0.000000e+00> : vector<8x512xf32>
    %254 = tpu.matmul %245, %253, %cst_78 {dimension_numbers = #tpu.dot_dimension_numbers<[1], [0], [0], [1], [0, 0, 1, 1], [], []>} : vector<8x128xf32>, vector<128x512xf32>, vector<8x512xf32> -> vector<8x512xf32>
    %255 = arith.addf %252, %254 : vector<8x512xf32>
    %256 = vector.extract_strided_slice %255 {offsets = [0, 0], sizes = [8, 128], strides = [1, 1]} : vector<8x512xf32> to vector<8x128xf32>
    %257 = arith.negf %256 : vector<8x128xf32>
    %258 = math.exp %257 : vector<8x128xf32>
    %cst_79 = arith.constant 1.000000e+00 : f32
    %259 = vector.broadcast %cst_79 : f32 to vector<8x128xf32>
    %260 = arith.addf %259, %258 : vector<8x128xf32>
    %261 = arith.divf %259, %260 : vector<8x128xf32>
    %262 = vector.extract_strided_slice %255 {offsets = [0, 128], sizes = [8, 128], strides = [1, 1]} : vector<8x512xf32> to vector<8x128xf32>
    %263 = arith.negf %262 : vector<8x128xf32>
    %264 = math.exp %263 : vector<8x128xf32>
    %cst_80 = arith.constant 1.000000e+00 : f32
    %265 = vector.broadcast %cst_80 : f32 to vector<8x128xf32>
    %266 = arith.addf %265, %264 : vector<8x128xf32>
    %267 = arith.divf %265, %266 : vector<8x128xf32>
    %268 = vector.extract_strided_slice %255 {offsets = [0, 256], sizes = [8, 128], strides = [1, 1]} : vector<8x512xf32> to vector<8x128xf32>
    %269 = math.tanh %268 : vector<8x128xf32>
    %270 = vector.extract_strided_slice %255 {offsets = [0, 384], sizes = [8, 128], strides = [1, 1]} : vector<8x512xf32> to vector<8x128xf32>
    %271 = arith.negf %270 : vector<8x128xf32>
    %272 = math.exp %271 : vector<8x128xf32>
    %cst_81 = arith.constant 1.000000e+00 : f32
    %273 = vector.broadcast %cst_81 : f32 to vector<8x128xf32>
    %274 = arith.addf %273, %272 : vector<8x128xf32>
    %275 = arith.divf %273, %274 : vector<8x128xf32>
    %276 = arith.mulf %267, %243 : vector<8x128xf32>
    %277 = arith.mulf %261, %269 : vector<8x128xf32>
    %278 = arith.addf %276, %277 : vector<8x128xf32>
    %279 = math.tanh %278 : vector<8x128xf32>
    %280 = arith.mulf %275, %279 : vector<8x128xf32>
    %281 = arith.index_cast %c7_i32 : i32 to index
    %c0_82 = arith.constant 0 : index
    %c0_83 = arith.constant 0 : index
    %282 = vector.load %arg6[%281, %c0_82, %c0_83] : memref<8x8x128xf32, #tpu.memory_space<vmem>>, vector<1x8x128xf32>
    %283 = vector.shape_cast %282 : vector<1x8x128xf32> to vector<8x128xf32>
    %284 = vector.shape_cast %280 : vector<8x128xf32> to vector<1x8x128xf32>
    tpu.vector_store %arg6[%281, %c0_82, %c0_83], %284 {strides = array<i32>} : memref<8x8x128xf32, #tpu.memory_space<vmem>>, vector<1x8x128xf32>,
    %c8_i32 = arith.constant 8 : i32
    %c0_84 = arith.constant 0 : index
    %c0_85 = arith.constant 0 : index
    %285 = vector.load %arg11[%c0_84, %c0_85] : memref<8x128xf32, #tpu.memory_space<vmem>>, vector<8x128xf32>
    tpu.vector_store %arg11[%c0_84, %c0_85], %280 {strides = array<i32>} : memref<8x128xf32, #tpu.memory_space<vmem>>, vector<8x128xf32>,
    %c0_86 = arith.constant 0 : index
    %c0_87 = arith.constant 0 : index
    %286 = vector.load %arg12[%c0_86, %c0_87] : memref<8x128xf32, #tpu.memory_space<vmem>>, vector<8x128xf32>
    tpu.vector_store %arg12[%c0_86, %c0_87], %278 {strides = array<i32>} : memref<8x128xf32, #tpu.memory_space<vmem>>, vector<8x128xf32>,
    %c0_i32_88 = arith.constant 0 : i32
    %287 = arith.cmpi eq, %arg1, %c0_i32_88 : i32
    %288 = arith.extui %287 : i1 to i32
    %c0_i32_89 = arith.constant 0 : i32
    %289 = arith.cmpi ne, %288, %c0_i32_89 : i32
    scf.if %289 {
      %c0_90 = arith.constant 0 : index
      %c0_91 = arith.constant 0 : index
      %290 = vector.load %arg11[%c0_90, %c0_91] : memref<8x128xf32, #tpu.memory_space<vmem>>, vector<8x128xf32>
      %c0_92 = arith.constant 0 : index
      %c0_93 = arith.constant 0 : index
      %291 = vector.load %arg7[%c0_92, %c0_93] : memref<8x128xf32, #tpu.memory_space<vmem>>, vector<8x128xf32>
      tpu.vector_store %arg7[%c0_92, %c0_93], %290 {strides = array<i32>} : memref<8x128xf32, #tpu.memory_space<vmem>>, vector<8x128xf32>,
      %c0_94 = arith.constant 0 : index
      %c0_95 = arith.constant 0 : index
      %292 = vector.load %arg12[%c0_94, %c0_95] : memref<8x128xf32, #tpu.memory_space<vmem>>, vector<8x128xf32>
      %c0_96 = arith.constant 0 : index
      %c0_97 = arith.constant 0 : index
      %293 = vector.load %arg8[%c0_96, %c0_97] : memref<8x128xf32, #tpu.memory_space<vmem>>, vector<8x128xf32>
      tpu.vector_store %arg8[%c0_96, %c0_97], %292 {strides = array<i32>} : memref<8x128xf32, #tpu.memory_space<vmem>>, vector<8x128xf32>,
    } else {
    }
    return
  }
  func.func @transform_0(%arg0: i32, %arg1: i32) -> (i32, i32, i32) {
    %c0_i32 = arith.constant 0 : i32
    %c0_i32_0 = arith.constant 0 : i32
    return %arg1, %arg0, %c0_i32 : i32, i32, i32
  }
  func.func @transform_2(%arg0: i32, %arg1: i32) -> (i32, i32) {
    %c0_i32 = arith.constant 0 : i32
    %c0_i32_0 = arith.constant 0 : i32
    return %arg0, %c0_i32 : i32, i32
  }
  func.func @transform_3(%arg0: i32, %arg1: i32) -> (i32, i32) {
    %c0_i32 = arith.constant 0 : i32
    %c0_i32_0 = arith.constant 0 : i32
    return %arg0, %c0_i32 : i32, i32
  }
  func.func @transform_4(%arg0: i32, %arg1: i32) -> (i32, i32, i32) {
    %c0_i32 = arith.constant 0 : i32
    %c0_i32_0 = arith.constant 0 : i32
    return %arg1, %arg0, %c0_i32 : i32, i32, i32
  }
  func.func @transform_5(%arg0: i32, %arg1: i32) -> (i32, i32) {
    %c0_i32 = arith.constant 0 : i32
    %c0_i32_0 = arith.constant 0 : i32
    return %arg0, %c0_i32 : i32, i32
  }
  func.func @transform_6(%arg0: i32, %arg1: i32) -> (i32, i32) {
    %c0_i32 = arith.constant 0 : i32
    %c0_i32_0 = arith.constant 0 : i32
    return %arg0, %c0_i32 : i32, i32
  }
}

module attributes {stable_mosaic.version = 11 : i64} {
  func.func @_lstm_recurrent_kernel(%arg0: i32, %arg1: i32, %arg2: memref<8x8x512xf32, #tpu.memory_space<vmem>>, %arg3: memref<128x512xf32, #tpu.memory_space<any>>, %arg4: memref<8x128xf32, #tpu.memory_space<vmem>>, %arg5: memref<8x128xf32, #tpu.memory_space<vmem>>, %arg6: memref<8x8x128xf32, #tpu.memory_space<vmem>>, %arg7: memref<8x128xf32, #tpu.memory_space<vmem>>, %arg8: memref<8x128xf32, #tpu.memory_space<vmem>>, %arg9: memref<128x512xf32, #tpu.memory_space<vmem>>, %arg10: memref<!tpu.dma_semaphore, #tpu.memory_space<semaphore_mem>>, %arg11: memref<8x128xf32, #tpu.memory_space<vmem>>, %arg12: memref<8x128xf32, #tpu.memory_space<vmem>>) attributes {dimension_semantics = [#tpu.dimension_semantics<parallel>, #tpu.dimension_semantics<arbitrary>], iteration_bounds = array<i64: 1, 1>, scalar_prefetch = 0 : i64, scratch_operands = 4 : i64, tpu.core_type = #tpu.core_type<tc>, window_params = [{transform_indices = @transform_0, window_bounds = array<i64: 8, 8, 512>}, {}, {transform_indices = @transform_2, window_bounds = array<i64: 8, 128>}, {transform_indices = @transform_3, window_bounds = array<i64: 8, 128>}, {transform_indices = @transform_4, window_bounds = array<i64: 8, 8, 128>}, {transform_indices = @transform_5, window_bounds = array<i64: 8, 128>}, {transform_indices = @transform_6, window_bounds = array<i64: 8, 128>}]} {
    %c0_i32 = arith.constant 0 : i32
    %0 = arith.cmpi eq, %arg1, %c0_i32 : i32
    %1 = arith.extui %0 : i1 to i32
    %c0_i32_0 = arith.constant 0 : i32
    %2 = arith.cmpi ne, %1, %c0_i32_0 : i32
    scf.if %2 {
      tpu.enqueue_dma source(%arg3 : memref<128x512xf32, #tpu.memory_space<any>>) target(%arg9 : memref<128x512xf32, #tpu.memory_space<vmem>>) target_semaphore(%arg10 : memref<!tpu.dma_semaphore, #tpu.memory_space<semaphore_mem>>)
      %c0_90 = arith.constant 0 : index
      %c0_91 = arith.constant 0 : index
      %290 = vector.load %arg4[%c0_90, %c0_91] : memref<8x128xf32, #tpu.memory_space<vmem>>, vector<8x128xf32>
      %c0_92 = arith.constant 0 : index
      %c0_93 = arith.constant 0 : index
      %291 = vector.load %arg11[%c0_92, %c0_93] : memref<8x128xf32, #tpu.memory_space<vmem>>, vector<8x128xf32>
      tpu.vector_store %arg11[%c0_92, %c0_93], %290 {strides = array<i32>} : memref<8x128xf32, #tpu.memory_space<vmem>>, vector<8x128xf32>,
      %c0_94 = arith.constant 0 : index
      %c0_95 = arith.constant 0 : index
      %292 = vector.load %arg5[%c0_94, %c0_95] : memref<8x128xf32, #tpu.memory_space<vmem>>, vector<8x128xf32>
      %c0_96 = arith.constant 0 : index
      %c0_97 = arith.constant 0 : index
      %293 = vector.load %arg12[%c0_96, %c0_97] : memref<8x128xf32, #tpu.memory_space<vmem>>, vector<8x128xf32>
      tpu.vector_store %arg12[%c0_96, %c0_97], %292 {strides = array<i32>} : memref<8x128xf32, #tpu.memory_space<vmem>>, vector<8x128xf32>,
      tpu.wait_dma2 semaphore(%arg10 : memref<!tpu.dma_semaphore, #tpu.memory_space<semaphore_mem>>) src(%arg3 : memref<128x512xf32, #tpu.memory_space<any>>) dst(%arg9 : memref<128x512xf32, #tpu.memory_space<vmem>>)
    } else {
    }
    %c0 = arith.constant 0 : index
    %c0_1 = arith.constant 0 : index
    %3 = vector.load %arg11[%c0, %c0_1] : memref<8x128xf32, #tpu.memory_space<vmem>>, vector<8x128xf32>
    %c0_2 = arith.constant 0 : index
    %c0_3 = arith.constant 0 : index
    %4 = vector.load %arg12[%c0_2, %c0_3] : memref<8x128xf32, #tpu.memory_space<vmem>>, vector<8x128xf32>
    %c0_i32_4 = arith.constant 0 : i32
    %5 = arith.index_cast %c0_i32_4 : i32 to index
    %c0_5 = arith.constant 0 : index
    %c0_6 = arith.constant 0 : index
    %6 = vector.load %arg2[%5, %c0_5, %c0_6] : memref<8x8x512xf32, #tpu.memory_space<vmem>>, vector<1x8x512xf32>
    %7 = vector.shape_cast %6 : vector<1x8x512xf32> to vector<8x512xf32>
    %c0_7 = arith.constant 0 : index
    %c0_8 = arith.constant 0 : index
    %8 = vector.load %arg9[%c0_7, %c0_8] : memref<128x512xf32, #tpu.memory_space<vmem>>, vector<128x512xf32>
    %cst = arith.constant dense<0.000000e+00> : vector<8x512xf32>
    %9 = tpu.matmul %3, %8, %cst {dimension_numbers = #tpu.dot_dimension_numbers<[1], [0], [0], [1], [0, 0, 1, 1], [], []>} : vector<8x128xf32>, vector<128x512xf32>, vector<8x512xf32> -> vector<8x512xf32>
    %10 = arith.addf %7, %9 : vector<8x512xf32>
    %11 = vector.extract_strided_slice %10 {offsets = [0, 0], sizes = [8, 128], strides = [1, 1]} : vector<8x512xf32> to vector<8x128xf32>
    %12 = arith.negf %11 : vector<8x128xf32>
    %13 = math.exp %12 : vector<8x128xf32>
    %cst_9 = arith.constant 1.000000e+00 : f32
    %14 = vector.broadcast %cst_9 : f32 to vector<8x128xf32>
    %15 = arith.addf %14, %13 : vector<8x128xf32>
    %16 = arith.divf %14, %15 : vector<8x128xf32>
    %17 = vector.extract_strided_slice %10 {offsets = [0, 128], sizes = [8, 128], strides = [1, 1]} : vector<8x512xf32> to vector<8x128xf32>
    %18 = arith.negf %17 : vector<8x128xf32>
    %19 = math.exp %18 : vector<8x128xf32>
    %cst_10 = arith.constant 1.000000e+00 : f32
    %20 = vector.broadcast %cst_10 : f32 to vector<8x128xf32>
    %21 = arith.addf %20, %19 : vector<8x128xf32>
    %22 = arith.divf %20, %21 : vector<8x128xf32>
    %23 = vector.extract_strided_slice %10 {offsets = [0, 256], sizes = [8, 128], strides = [1, 1]} : vector<8x512xf32> to vector<8x128xf32>
    %24 = math.tanh %23 : vector<8x128xf32>
    %25 = vector.extract_strided_slice %10 {offsets = [0, 384], sizes = [8, 128], strides = [1, 1]} : vector<8x512xf32> to vector<8x128xf32>
    %26 = arith.negf %25 : vector<8x128xf32>
    %27 = math.exp %26 : vector<8x128xf32>
    %cst_11 = arith.constant 1.000000e+00 : f32
    %28 = vector.broadcast %cst_11 : f32 to vector<8x128xf32>
    %29 = arith.addf %28, %27 : vector<8x128xf32>
    %30 = arith.divf %28, %29 : vector<8x128xf32>
    %31 = arith.mulf %22, %4 : vector<8x128xf32>
    %32 = arith.mulf %16, %24 : vector<8x128xf32>
    %33 = arith.addf %31, %32 : vector<8x128xf32>
    %34 = math.tanh %33 : vector<8x128xf32>
    %35 = arith.mulf %30, %34 : vector<8x128xf32>
    %36 = arith.index_cast %c0_i32_4 : i32 to index
    %c0_12 = arith.constant 0 : index
    %c0_13 = arith.constant 0 : index
    %37 = vector.load %arg6[%36, %c0_12, %c0_13] : memref<8x8x128xf32, #tpu.memory_space<vmem>>, vector<1x8x128xf32>
    %38 = vector.shape_cast %37 : vector<1x8x128xf32> to vector<8x128xf32>
    %39 = vector.shape_cast %35 : vector<8x128xf32> to vector<1x8x128xf32>
    tpu.vector_store %arg6[%36, %c0_12, %c0_13], %39 {strides = array<i32>} : memref<8x8x128xf32, #tpu.memory_space<vmem>>, vector<1x8x128xf32>,
    %c1_i32 = arith.constant 1 : i32
    %40 = arith.index_cast %c1_i32 : i32 to index
    %c0_14 = arith.constant 0 : index
    %c0_15 = arith.constant 0 : index
    %41 = vector.load %arg2[%40, %c0_14, %c0_15] : memref<8x8x512xf32, #tpu.memory_space<vmem>>, vector<1x8x512xf32>
    %42 = vector.shape_cast %41 : vector<1x8x512xf32> to vector<8x512xf32>
    %c0_16 = arith.constant 0 : index
    %c0_17 = arith.constant 0 : index
    %43 = vector.load %arg9[%c0_16, %c0_17] : memref<128x512xf32, #tpu.memory_space<vmem>>, vector<128x512xf32>
    %cst_18 = arith.constant dense<0.000000e+00> : vector<8x512xf32>
    %44 = tpu.matmul %35, %43, %cst_18 {dimension_numbers = #tpu.dot_dimension_numbers<[1], [0], [0], [1], [0, 0, 1, 1], [], []>} : vector<8x128xf32>, vector<128x512xf32>, vector<8x512xf32> -> vector<8x512xf32>
    %45 = arith.addf %42, %44 : vector<8x512xf32>
    %46 = vector.extract_strided_slice %45 {offsets = [0, 0], sizes = [8, 128], strides = [1, 1]} : vector<8x512xf32> to vector<8x128xf32>
    %47 = arith.negf %46 : vector<8x128xf32>
    %48 = math.exp %47 : vector<8x128xf32>
    %cst_19 = arith.constant 1.000000e+00 : f32
    %49 = vector.broadcast %cst_19 : f32 to vector<8x128xf32>
    %50 = arith.addf %49, %48 : vector<8x128xf32>
    %51 = arith.divf %49, %50 : vector<8x128xf32>
    %52 = vector.extract_strided_slice %45 {offsets = [0, 128], sizes = [8, 128], strides = [1, 1]} : vector<8x512xf32> to vector<8x128xf32>
    %53 = arith.negf %52 : vector<8x128xf32>
    %54 = math.exp %53 : vector<8x128xf32>
    %cst_20 = arith.constant 1.000000e+00 : f32
    %55 = vector.broadcast %cst_20 : f32 to vector<8x128xf32>
    %56 = arith.addf %55, %54 : vector<8x128xf32>
    %57 = arith.divf %55, %56 : vector<8x128xf32>
    %58 = vector.extract_strided_slice %45 {offsets = [0, 256], sizes = [8, 128], strides = [1, 1]} : vector<8x512xf32> to vector<8x128xf32>
    %59 = math.tanh %58 : vector<8x128xf32>
    %60 = vector.extract_strided_slice %45 {offsets = [0, 384], sizes = [8, 128], strides = [1, 1]} : vector<8x512xf32> to vector<8x128xf32>
    %61 = arith.negf %60 : vector<8x128xf32>
    %62 = math.exp %61 : vector<8x128xf32>
    %cst_21 = arith.constant 1.000000e+00 : f32
    %63 = vector.broadcast %cst_21 : f32 to vector<8x128xf32>
    %64 = arith.addf %63, %62 : vector<8x128xf32>
    %65 = arith.divf %63, %64 : vector<8x128xf32>
    %66 = arith.mulf %57, %33 : vector<8x128xf32>
    %67 = arith.mulf %51, %59 : vector<8x128xf32>
    %68 = arith.addf %66, %67 : vector<8x128xf32>
    %69 = math.tanh %68 : vector<8x128xf32>
    %70 = arith.mulf %65, %69 : vector<8x128xf32>
    %71 = arith.index_cast %c1_i32 : i32 to index
    %c0_22 = arith.constant 0 : index
    %c0_23 = arith.constant 0 : index
    %72 = vector.load %arg6[%71, %c0_22, %c0_23] : memref<8x8x128xf32, #tpu.memory_space<vmem>>, vector<1x8x128xf32>
    %73 = vector.shape_cast %72 : vector<1x8x128xf32> to vector<8x128xf32>
    %74 = vector.shape_cast %70 : vector<8x128xf32> to vector<1x8x128xf32>
    tpu.vector_store %arg6[%71, %c0_22, %c0_23], %74 {strides = array<i32>} : memref<8x8x128xf32, #tpu.memory_space<vmem>>, vector<1x8x128xf32>,
    %c2_i32 = arith.constant 2 : i32
    %75 = arith.index_cast %c2_i32 : i32 to index
    %c0_24 = arith.constant 0 : index
    %c0_25 = arith.constant 0 : index
    %76 = vector.load %arg2[%75, %c0_24, %c0_25] : memref<8x8x512xf32, #tpu.memory_space<vmem>>, vector<1x8x512xf32>
    %77 = vector.shape_cast %76 : vector<1x8x512xf32> to vector<8x512xf32>
    %c0_26 = arith.constant 0 : index
    %c0_27 = arith.constant 0 : index
    %78 = vector.load %arg9[%c0_26, %c0_27] : memref<128x512xf32, #tpu.memory_space<vmem>>, vector<128x512xf32>
    %cst_28 = arith.constant dense<0.000000e+00> : vector<8x512xf32>
    %79 = tpu.matmul %70, %78, %cst_28 {dimension_numbers = #tpu.dot_dimension_numbers<[1], [0], [0], [1], [0, 0, 1, 1], [], []>} : vector<8x128xf32>, vector<128x512xf32>, vector<8x512xf32> -> vector<8x512xf32>
    %80 = arith.addf %77, %79 : vector<8x512xf32>
    %81 = vector.extract_strided_slice %80 {offsets = [0, 0], sizes = [8, 128], strides = [1, 1]} : vector<8x512xf32> to vector<8x128xf32>
    %82 = arith.negf %81 : vector<8x128xf32>
    %83 = math.exp %82 : vector<8x128xf32>
    %cst_29 = arith.constant 1.000000e+00 : f32
    %84 = vector.broadcast %cst_29 : f32 to vector<8x128xf32>
    %85 = arith.addf %84, %83 : vector<8x128xf32>
    %86 = arith.divf %84, %85 : vector<8x128xf32>
    %87 = vector.extract_strided_slice %80 {offsets = [0, 128], sizes = [8, 128], strides = [1, 1]} : vector<8x512xf32> to vector<8x128xf32>
    %88 = arith.negf %87 : vector<8x128xf32>
    %89 = math.exp %88 : vector<8x128xf32>
    %cst_30 = arith.constant 1.000000e+00 : f32
    %90 = vector.broadcast %cst_30 : f32 to vector<8x128xf32>
    %91 = arith.addf %90, %89 : vector<8x128xf32>
    %92 = arith.divf %90, %91 : vector<8x128xf32>
    %93 = vector.extract_strided_slice %80 {offsets = [0, 256], sizes = [8, 128], strides = [1, 1]} : vector<8x512xf32> to vector<8x128xf32>
    %94 = math.tanh %93 : vector<8x128xf32>
    %95 = vector.extract_strided_slice %80 {offsets = [0, 384], sizes = [8, 128], strides = [1, 1]} : vector<8x512xf32> to vector<8x128xf32>
    %96 = arith.negf %95 : vector<8x128xf32>
    %97 = math.exp %96 : vector<8x128xf32>
    %cst_31 = arith.constant 1.000000e+00 : f32
    %98 = vector.broadcast %cst_31 : f32 to vector<8x128xf32>
    %99 = arith.addf %98, %97 : vector<8x128xf32>
    %100 = arith.divf %98, %99 : vector<8x128xf32>
    %101 = arith.mulf %92, %68 : vector<8x128xf32>
    %102 = arith.mulf %86, %94 : vector<8x128xf32>
    %103 = arith.addf %101, %102 : vector<8x128xf32>
    %104 = math.tanh %103 : vector<8x128xf32>
    %105 = arith.mulf %100, %104 : vector<8x128xf32>
    %106 = arith.index_cast %c2_i32 : i32 to index
    %c0_32 = arith.constant 0 : index
    %c0_33 = arith.constant 0 : index
    %107 = vector.load %arg6[%106, %c0_32, %c0_33] : memref<8x8x128xf32, #tpu.memory_space<vmem>>, vector<1x8x128xf32>
    %108 = vector.shape_cast %107 : vector<1x8x128xf32> to vector<8x128xf32>
    %109 = vector.shape_cast %105 : vector<8x128xf32> to vector<1x8x128xf32>
    tpu.vector_store %arg6[%106, %c0_32, %c0_33], %109 {strides = array<i32>} : memref<8x8x128xf32, #tpu.memory_space<vmem>>, vector<1x8x128xf32>,
    %c3_i32 = arith.constant 3 : i32
    %110 = arith.index_cast %c3_i32 : i32 to index
    %c0_34 = arith.constant 0 : index
    %c0_35 = arith.constant 0 : index
    %111 = vector.load %arg2[%110, %c0_34, %c0_35] : memref<8x8x512xf32, #tpu.memory_space<vmem>>, vector<1x8x512xf32>
    %112 = vector.shape_cast %111 : vector<1x8x512xf32> to vector<8x512xf32>
    %c0_36 = arith.constant 0 : index
    %c0_37 = arith.constant 0 : index
    %113 = vector.load %arg9[%c0_36, %c0_37] : memref<128x512xf32, #tpu.memory_space<vmem>>, vector<128x512xf32>
    %cst_38 = arith.constant dense<0.000000e+00> : vector<8x512xf32>
    %114 = tpu.matmul %105, %113, %cst_38 {dimension_numbers = #tpu.dot_dimension_numbers<[1], [0], [0], [1], [0, 0, 1, 1], [], []>} : vector<8x128xf32>, vector<128x512xf32>, vector<8x512xf32> -> vector<8x512xf32>
    %115 = arith.addf %112, %114 : vector<8x512xf32>
    %116 = vector.extract_strided_slice %115 {offsets = [0, 0], sizes = [8, 128], strides = [1, 1]} : vector<8x512xf32> to vector<8x128xf32>
    %117 = arith.negf %116 : vector<8x128xf32>
    %118 = math.exp %117 : vector<8x128xf32>
    %cst_39 = arith.constant 1.000000e+00 : f32
    %119 = vector.broadcast %cst_39 : f32 to vector<8x128xf32>
    %120 = arith.addf %119, %118 : vector<8x128xf32>
    %121 = arith.divf %119, %120 : vector<8x128xf32>
    %122 = vector.extract_strided_slice %115 {offsets = [0, 128], sizes = [8, 128], strides = [1, 1]} : vector<8x512xf32> to vector<8x128xf32>
    %123 = arith.negf %122 : vector<8x128xf32>
    %124 = math.exp %123 : vector<8x128xf32>
    %cst_40 = arith.constant 1.000000e+00 : f32
    %125 = vector.broadcast %cst_40 : f32 to vector<8x128xf32>
    %126 = arith.addf %125, %124 : vector<8x128xf32>
    %127 = arith.divf %125, %126 : vector<8x128xf32>
    %128 = vector.extract_strided_slice %115 {offsets = [0, 256], sizes = [8, 128], strides = [1, 1]} : vector<8x512xf32> to vector<8x128xf32>
    %129 = math.tanh %128 : vector<8x128xf32>
    %130 = vector.extract_strided_slice %115 {offsets = [0, 384], sizes = [8, 128], strides = [1, 1]} : vector<8x512xf32> to vector<8x128xf32>
    %131 = arith.negf %130 : vector<8x128xf32>
    %132 = math.exp %131 : vector<8x128xf32>
    %cst_41 = arith.constant 1.000000e+00 : f32
    %133 = vector.broadcast %cst_41 : f32 to vector<8x128xf32>
    %134 = arith.addf %133, %132 : vector<8x128xf32>
    %135 = arith.divf %133, %134 : vector<8x128xf32>
    %136 = arith.mulf %127, %103 : vector<8x128xf32>
    %137 = arith.mulf %121, %129 : vector<8x128xf32>
    %138 = arith.addf %136, %137 : vector<8x128xf32>
    %139 = math.tanh %138 : vector<8x128xf32>
    %140 = arith.mulf %135, %139 : vector<8x128xf32>
    %141 = arith.index_cast %c3_i32 : i32 to index
    %c0_42 = arith.constant 0 : index
    %c0_43 = arith.constant 0 : index
    %142 = vector.load %arg6[%141, %c0_42, %c0_43] : memref<8x8x128xf32, #tpu.memory_space<vmem>>, vector<1x8x128xf32>
    %143 = vector.shape_cast %142 : vector<1x8x128xf32> to vector<8x128xf32>
    %144 = vector.shape_cast %140 : vector<8x128xf32> to vector<1x8x128xf32>
    tpu.vector_store %arg6[%141, %c0_42, %c0_43], %144 {strides = array<i32>} : memref<8x8x128xf32, #tpu.memory_space<vmem>>, vector<1x8x128xf32>,
    %c4_i32 = arith.constant 4 : i32
    %145 = arith.index_cast %c4_i32 : i32 to index
    %c0_44 = arith.constant 0 : index
    %c0_45 = arith.constant 0 : index
    %146 = vector.load %arg2[%145, %c0_44, %c0_45] : memref<8x8x512xf32, #tpu.memory_space<vmem>>, vector<1x8x512xf32>
    %147 = vector.shape_cast %146 : vector<1x8x512xf32> to vector<8x512xf32>
    %c0_46 = arith.constant 0 : index
    %c0_47 = arith.constant 0 : index
    %148 = vector.load %arg9[%c0_46, %c0_47] : memref<128x512xf32, #tpu.memory_space<vmem>>, vector<128x512xf32>
    %cst_48 = arith.constant dense<0.000000e+00> : vector<8x512xf32>
    %149 = tpu.matmul %140, %148, %cst_48 {dimension_numbers = #tpu.dot_dimension_numbers<[1], [0], [0], [1], [0, 0, 1, 1], [], []>} : vector<8x128xf32>, vector<128x512xf32>, vector<8x512xf32> -> vector<8x512xf32>
    %150 = arith.addf %147, %149 : vector<8x512xf32>
    %151 = vector.extract_strided_slice %150 {offsets = [0, 0], sizes = [8, 128], strides = [1, 1]} : vector<8x512xf32> to vector<8x128xf32>
    %152 = arith.negf %151 : vector<8x128xf32>
    %153 = math.exp %152 : vector<8x128xf32>
    %cst_49 = arith.constant 1.000000e+00 : f32
    %154 = vector.broadcast %cst_49 : f32 to vector<8x128xf32>
    %155 = arith.addf %154, %153 : vector<8x128xf32>
    %156 = arith.divf %154, %155 : vector<8x128xf32>
    %157 = vector.extract_strided_slice %150 {offsets = [0, 128], sizes = [8, 128], strides = [1, 1]} : vector<8x512xf32> to vector<8x128xf32>
    %158 = arith.negf %157 : vector<8x128xf32>
    %159 = math.exp %158 : vector<8x128xf32>
    %cst_50 = arith.constant 1.000000e+00 : f32
    %160 = vector.broadcast %cst_50 : f32 to vector<8x128xf32>
    %161 = arith.addf %160, %159 : vector<8x128xf32>
    %162 = arith.divf %160, %161 : vector<8x128xf32>
    %163 = vector.extract_strided_slice %150 {offsets = [0, 256], sizes = [8, 128], strides = [1, 1]} : vector<8x512xf32> to vector<8x128xf32>
    %164 = math.tanh %163 : vector<8x128xf32>
    %165 = vector.extract_strided_slice %150 {offsets = [0, 384], sizes = [8, 128], strides = [1, 1]} : vector<8x512xf32> to vector<8x128xf32>
    %166 = arith.negf %165 : vector<8x128xf32>
    %167 = math.exp %166 : vector<8x128xf32>
    %cst_51 = arith.constant 1.000000e+00 : f32
    %168 = vector.broadcast %cst_51 : f32 to vector<8x128xf32>
    %169 = arith.addf %168, %167 : vector<8x128xf32>
    %170 = arith.divf %168, %169 : vector<8x128xf32>
    %171 = arith.mulf %162, %138 : vector<8x128xf32>
    %172 = arith.mulf %156, %164 : vector<8x128xf32>
    %173 = arith.addf %171, %172 : vector<8x128xf32>
    %174 = math.tanh %173 : vector<8x128xf32>
    %175 = arith.mulf %170, %174 : vector<8x128xf32>
    %176 = arith.index_cast %c4_i32 : i32 to index
    %c0_52 = arith.constant 0 : index
    %c0_53 = arith.constant 0 : index
    %177 = vector.load %arg6[%176, %c0_52, %c0_53] : memref<8x8x128xf32, #tpu.memory_space<vmem>>, vector<1x8x128xf32>
    %178 = vector.shape_cast %177 : vector<1x8x128xf32> to vector<8x128xf32>
    %179 = vector.shape_cast %175 : vector<8x128xf32> to vector<1x8x128xf32>
    tpu.vector_store %arg6[%176, %c0_52, %c0_53], %179 {strides = array<i32>} : memref<8x8x128xf32, #tpu.memory_space<vmem>>, vector<1x8x128xf32>,
    %c5_i32 = arith.constant 5 : i32
    %180 = arith.index_cast %c5_i32 : i32 to index
    %c0_54 = arith.constant 0 : index
    %c0_55 = arith.constant 0 : index
    %181 = vector.load %arg2[%180, %c0_54, %c0_55] : memref<8x8x512xf32, #tpu.memory_space<vmem>>, vector<1x8x512xf32>
    %182 = vector.shape_cast %181 : vector<1x8x512xf32> to vector<8x512xf32>
    %c0_56 = arith.constant 0 : index
    %c0_57 = arith.constant 0 : index
    %183 = vector.load %arg9[%c0_56, %c0_57] : memref<128x512xf32, #tpu.memory_space<vmem>>, vector<128x512xf32>
    %cst_58 = arith.constant dense<0.000000e+00> : vector<8x512xf32>
    %184 = tpu.matmul %175, %183, %cst_58 {dimension_numbers = #tpu.dot_dimension_numbers<[1], [0], [0], [1], [0, 0, 1, 1], [], []>} : vector<8x128xf32>, vector<128x512xf32>, vector<8x512xf32> -> vector<8x512xf32>
    %185 = arith.addf %182, %184 : vector<8x512xf32>
    %186 = vector.extract_strided_slice %185 {offsets = [0, 0], sizes = [8, 128], strides = [1, 1]} : vector<8x512xf32> to vector<8x128xf32>
    %187 = arith.negf %186 : vector<8x128xf32>
    %188 = math.exp %187 : vector<8x128xf32>
    %cst_59 = arith.constant 1.000000e+00 : f32
    %189 = vector.broadcast %cst_59 : f32 to vector<8x128xf32>
    %190 = arith.addf %189, %188 : vector<8x128xf32>
    %191 = arith.divf %189, %190 : vector<8x128xf32>
    %192 = vector.extract_strided_slice %185 {offsets = [0, 128], sizes = [8, 128], strides = [1, 1]} : vector<8x512xf32> to vector<8x128xf32>
    %193 = arith.negf %192 : vector<8x128xf32>
    %194 = math.exp %193 : vector<8x128xf32>
    %cst_60 = arith.constant 1.000000e+00 : f32
    %195 = vector.broadcast %cst_60 : f32 to vector<8x128xf32>
    %196 = arith.addf %195, %194 : vector<8x128xf32>
    %197 = arith.divf %195, %196 : vector<8x128xf32>
    %198 = vector.extract_strided_slice %185 {offsets = [0, 256], sizes = [8, 128], strides = [1, 1]} : vector<8x512xf32> to vector<8x128xf32>
    %199 = math.tanh %198 : vector<8x128xf32>
    %200 = vector.extract_strided_slice %185 {offsets = [0, 384], sizes = [8, 128], strides = [1, 1]} : vector<8x512xf32> to vector<8x128xf32>
    %201 = arith.negf %200 : vector<8x128xf32>
    %202 = math.exp %201 : vector<8x128xf32>
    %cst_61 = arith.constant 1.000000e+00 : f32
    %203 = vector.broadcast %cst_61 : f32 to vector<8x128xf32>
    %204 = arith.addf %203, %202 : vector<8x128xf32>
    %205 = arith.divf %203, %204 : vector<8x128xf32>
    %206 = arith.mulf %197, %173 : vector<8x128xf32>
    %207 = arith.mulf %191, %199 : vector<8x128xf32>
    %208 = arith.addf %206, %207 : vector<8x128xf32>
    %209 = math.tanh %208 : vector<8x128xf32>
    %210 = arith.mulf %205, %209 : vector<8x128xf32>
    %211 = arith.index_cast %c5_i32 : i32 to index
    %c0_62 = arith.constant 0 : index
    %c0_63 = arith.constant 0 : index
    %212 = vector.load %arg6[%211, %c0_62, %c0_63] : memref<8x8x128xf32, #tpu.memory_space<vmem>>, vector<1x8x128xf32>
    %213 = vector.shape_cast %212 : vector<1x8x128xf32> to vector<8x128xf32>
    %214 = vector.shape_cast %210 : vector<8x128xf32> to vector<1x8x128xf32>
    tpu.vector_store %arg6[%211, %c0_62, %c0_63], %214 {strides = array<i32>} : memref<8x8x128xf32, #tpu.memory_space<vmem>>, vector<1x8x128xf32>,
    %c6_i32 = arith.constant 6 : i32
    %215 = arith.index_cast %c6_i32 : i32 to index
    %c0_64 = arith.constant 0 : index
    %c0_65 = arith.constant 0 : index
    %216 = vector.load %arg2[%215, %c0_64, %c0_65] : memref<8x8x512xf32, #tpu.memory_space<vmem>>, vector<1x8x512xf32>
    %217 = vector.shape_cast %216 : vector<1x8x512xf32> to vector<8x512xf32>
    %c0_66 = arith.constant 0 : index
    %c0_67 = arith.constant 0 : index
    %218 = vector.load %arg9[%c0_66, %c0_67] : memref<128x512xf32, #tpu.memory_space<vmem>>, vector<128x512xf32>
    %cst_68 = arith.constant dense<0.000000e+00> : vector<8x512xf32>
    %219 = tpu.matmul %210, %218, %cst_68 {dimension_numbers = #tpu.dot_dimension_numbers<[1], [0], [0], [1], [0, 0, 1, 1], [], []>} : vector<8x128xf32>, vector<128x512xf32>, vector<8x512xf32> -> vector<8x512xf32>
    %220 = arith.addf %217, %219 : vector<8x512xf32>
    %221 = vector.extract_strided_slice %220 {offsets = [0, 0], sizes = [8, 128], strides = [1, 1]} : vector<8x512xf32> to vector<8x128xf32>
    %222 = arith.negf %221 : vector<8x128xf32>
    %223 = math.exp %222 : vector<8x128xf32>
    %cst_69 = arith.constant 1.000000e+00 : f32
    %224 = vector.broadcast %cst_69 : f32 to vector<8x128xf32>
    %225 = arith.addf %224, %223 : vector<8x128xf32>
    %226 = arith.divf %224, %225 : vector<8x128xf32>
    %227 = vector.extract_strided_slice %220 {offsets = [0, 128], sizes = [8, 128], strides = [1, 1]} : vector<8x512xf32> to vector<8x128xf32>
    %228 = arith.negf %227 : vector<8x128xf32>
    %229 = math.exp %228 : vector<8x128xf32>
    %cst_70 = arith.constant 1.000000e+00 : f32
    %230 = vector.broadcast %cst_70 : f32 to vector<8x128xf32>
    %231 = arith.addf %230, %229 : vector<8x128xf32>
    %232 = arith.divf %230, %231 : vector<8x128xf32>
    %233 = vector.extract_strided_slice %220 {offsets = [0, 256], sizes = [8, 128], strides = [1, 1]} : vector<8x512xf32> to vector<8x128xf32>
    %234 = math.tanh %233 : vector<8x128xf32>
    %235 = vector.extract_strided_slice %220 {offsets = [0, 384], sizes = [8, 128], strides = [1, 1]} : vector<8x512xf32> to vector<8x128xf32>
    %236 = arith.negf %235 : vector<8x128xf32>
    %237 = math.exp %236 : vector<8x128xf32>
    %cst_71 = arith.constant 1.000000e+00 : f32
    %238 = vector.broadcast %cst_71 : f32 to vector<8x128xf32>
    %239 = arith.addf %238, %237 : vector<8x128xf32>
    %240 = arith.divf %238, %239 : vector<8x128xf32>
    %241 = arith.mulf %232, %208 : vector<8x128xf32>
    %242 = arith.mulf %226, %234 : vector<8x128xf32>
    %243 = arith.addf %241, %242 : vector<8x128xf32>
    %244 = math.tanh %243 : vector<8x128xf32>
    %245 = arith.mulf %240, %244 : vector<8x128xf32>
    %246 = arith.index_cast %c6_i32 : i32 to index
    %c0_72 = arith.constant 0 : index
    %c0_73 = arith.constant 0 : index
    %247 = vector.load %arg6[%246, %c0_72, %c0_73] : memref<8x8x128xf32, #tpu.memory_space<vmem>>, vector<1x8x128xf32>
    %248 = vector.shape_cast %247 : vector<1x8x128xf32> to vector<8x128xf32>
    %249 = vector.shape_cast %245 : vector<8x128xf32> to vector<1x8x128xf32>
    tpu.vector_store %arg6[%246, %c0_72, %c0_73], %249 {strides = array<i32>} : memref<8x8x128xf32, #tpu.memory_space<vmem>>, vector<1x8x128xf32>,
    %c7_i32 = arith.constant 7 : i32
    %250 = arith.index_cast %c7_i32 : i32 to index
    %c0_74 = arith.constant 0 : index
    %c0_75 = arith.constant 0 : index
    %251 = vector.load %arg2[%250, %c0_74, %c0_75] : memref<8x8x512xf32, #tpu.memory_space<vmem>>, vector<1x8x512xf32>
    %252 = vector.shape_cast %251 : vector<1x8x512xf32> to vector<8x512xf32>
    %c0_76 = arith.constant 0 : index
    %c0_77 = arith.constant 0 : index
    %253 = vector.load %arg9[%c0_76, %c0_77] : memref<128x512xf32, #tpu.memory_space<vmem>>, vector<128x512xf32>
    %cst_78 = arith.constant dense<0.000000e+00> : vector<8x512xf32>
    %254 = tpu.matmul %245, %253, %cst_78 {dimension_numbers = #tpu.dot_dimension_numbers<[1], [0], [0], [1], [0, 0, 1, 1], [], []>} : vector<8x128xf32>, vector<128x512xf32>, vector<8x512xf32> -> vector<8x512xf32>
    %255 = arith.addf %252, %254 : vector<8x512xf32>
    %256 = vector.extract_strided_slice %255 {offsets = [0, 0], sizes = [8, 128], strides = [1, 1]} : vector<8x512xf32> to vector<8x128xf32>
    %257 = arith.negf %256 : vector<8x128xf32>
    %258 = math.exp %257 : vector<8x128xf32>
    %cst_79 = arith.constant 1.000000e+00 : f32
    %259 = vector.broadcast %cst_79 : f32 to vector<8x128xf32>
    %260 = arith.addf %259, %258 : vector<8x128xf32>
    %261 = arith.divf %259, %260 : vector<8x128xf32>
    %262 = vector.extract_strided_slice %255 {offsets = [0, 128], sizes = [8, 128], strides = [1, 1]} : vector<8x512xf32> to vector<8x128xf32>
    %263 = arith.negf %262 : vector<8x128xf32>
    %264 = math.exp %263 : vector<8x128xf32>
    %cst_80 = arith.constant 1.000000e+00 : f32
    %265 = vector.broadcast %cst_80 : f32 to vector<8x128xf32>
    %266 = arith.addf %265, %264 : vector<8x128xf32>
    %267 = arith.divf %265, %266 : vector<8x128xf32>
    %268 = vector.extract_strided_slice %255 {offsets = [0, 256], sizes = [8, 128], strides = [1, 1]} : vector<8x512xf32> to vector<8x128xf32>
    %269 = math.tanh %268 : vector<8x128xf32>
    %270 = vector.extract_strided_slice %255 {offsets = [0, 384], sizes = [8, 128], strides = [1, 1]} : vector<8x512xf32> to vector<8x128xf32>
    %271 = arith.negf %270 : vector<8x128xf32>
    %272 = math.exp %271 : vector<8x128xf32>
    %cst_81 = arith.constant 1.000000e+00 : f32
    %273 = vector.broadcast %cst_81 : f32 to vector<8x128xf32>
    %274 = arith.addf %273, %272 : vector<8x128xf32>
    %275 = arith.divf %273, %274 : vector<8x128xf32>
    %276 = arith.mulf %267, %243 : vector<8x128xf32>
    %277 = arith.mulf %261, %269 : vector<8x128xf32>
    %278 = arith.addf %276, %277 : vector<8x128xf32>
    %279 = math.tanh %278 : vector<8x128xf32>
    %280 = arith.mulf %275, %279 : vector<8x128xf32>
    %281 = arith.index_cast %c7_i32 : i32 to index
    %c0_82 = arith.constant 0 : index
    %c0_83 = arith.constant 0 : index
    %282 = vector.load %arg6[%281, %c0_82, %c0_83] : memref<8x8x128xf32, #tpu.memory_space<vmem>>, vector<1x8x128xf32>
    %283 = vector.shape_cast %282 : vector<1x8x128xf32> to vector<8x128xf32>
    %284 = vector.shape_cast %280 : vector<8x128xf32> to vector<1x8x128xf32>
    tpu.vector_store %arg6[%281, %c0_82, %c0_83], %284 {strides = array<i32>} : memref<8x8x128xf32, #tpu.memory_space<vmem>>, vector<1x8x128xf32>,
    %c8_i32 = arith.constant 8 : i32
    %c0_84 = arith.constant 0 : index
    %c0_85 = arith.constant 0 : index
    %285 = vector.load %arg11[%c0_84, %c0_85] : memref<8x128xf32, #tpu.memory_space<vmem>>, vector<8x128xf32>
    tpu.vector_store %arg11[%c0_84, %c0_85], %280 {strides = array<i32>} : memref<8x128xf32, #tpu.memory_space<vmem>>, vector<8x128xf32>,
    %c0_86 = arith.constant 0 : index
    %c0_87 = arith.constant 0 : index
    %286 = vector.load %arg12[%c0_86, %c0_87] : memref<8x128xf32, #tpu.memory_space<vmem>>, vector<8x128xf32>
    tpu.vector_store %arg12[%c0_86, %c0_87], %278 {strides = array<i32>} : memref<8x128xf32, #tpu.memory_space<vmem>>, vector<8x128xf32>,
    %c0_i32_88 = arith.constant 0 : i32
    %287 = arith.cmpi eq, %arg1, %c0_i32_88 : i32
    %288 = arith.extui %287 : i1 to i32
    %c0_i32_89 = arith.constant 0 : i32
    %289 = arith.cmpi ne, %288, %c0_i32_89 : i32
    scf.if %289 {
      %c0_90 = arith.constant 0 : index
      %c0_91 = arith.constant 0 : index
      %290 = vector.load %arg11[%c0_90, %c0_91] : memref<8x128xf32, #tpu.memory_space<vmem>>, vector<8x128xf32>
      %c0_92 = arith.constant 0 : index
      %c0_93 = arith.constant 0 : index
      %291 = vector.load %arg7[%c0_92, %c0_93] : memref<8x128xf32, #tpu.memory_space<vmem>>, vector<8x128xf32>
      tpu.vector_store %arg7[%c0_92, %c0_93], %290 {strides = array<i32>} : memref<8x128xf32, #tpu.memory_space<vmem>>, vector<8x128xf32>,
      %c0_94 = arith.constant 0 : index
      %c0_95 = arith.constant 0 : index
      %292 = vector.load %arg12[%c0_94, %c0_95] : memref<8x128xf32, #tpu.memory_space<vmem>>, vector<8x128xf32>
      %c0_96 = arith.constant 0 : index
      %c0_97 = arith.constant 0 : index
      %293 = vector.load %arg8[%c0_96, %c0_97] : memref<8x128xf32, #tpu.memory_space<vmem>>, vector<8x128xf32>
      tpu.vector_store %arg8[%c0_96, %c0_97], %292 {strides = array<i32>} : memref<8x128xf32, #tpu.memory_space<vmem>>, vector<8x128xf32>,
    } else {
    }
    return
  }
  func.func @transform_0(%arg0: i32, %arg1: i32) -> (i32, i32, i32) {
    %c0_i32 = arith.constant 0 : i32
    %c0_i32_0 = arith.constant 0 : i32
    return %arg1, %arg0, %c0_i32 : i32, i32, i32
  }
  func.func @transform_2(%arg0: i32, %arg1: i32) -> (i32, i32) {
    %c0_i32 = arith.constant 0 : i32
    %c0_i32_0 = arith.constant 0 : i32
    return %arg0, %c0_i32 : i32, i32
  }
  func.func @transform_3(%arg0: i32, %arg1: i32) -> (i32, i32) {
    %c0_i32 = arith.constant 0 : i32
    %c0_i32_0 = arith.constant 0 : i32
    return %arg0, %c0_i32 : i32, i32
  }
  func.func @transform_4(%arg0: i32, %arg1: i32) -> (i32, i32, i32) {
    %c0_i32 = arith.constant 0 : i32
    %c0_i32_0 = arith.constant 0 : i32
    return %arg1, %arg0, %c0_i32 : i32, i32, i32
  }
  func.func @transform_5(%arg0: i32, %arg1: i32) -> (i32, i32) {
    %c0_i32 = arith.constant 0 : i32
    %c0_i32_0 = arith.constant 0 : i32
    return %arg0, %c0_i32 : i32, i32
  }
  func.func @transform_6(%arg0: i32, %arg1: i32) -> (i32, i32) {
    %c0_i32 = arith.constant 0 : i32
    %c0_i32_0 = arith.constant 0 : i32
    return %arg0, %c0_i32 : i32, i32
  }
}

</mosaic_0001>

<bundles_post_ra>
// kernel: _cpcar_forward.3
= control target key start
LH: loop header
LB: loop body
LE: loop exit
PB: predicated region body
PF: predicated region fallthrough
CT: control target
= control target key end

     0   :  { %s3400_s0 = inlined_call_operand.vmem [shape: f32[8,8,512], index: 0, kind: input, shape index: {}]   ;;  %s3401_s1 = inlined_call_operand.vmem [shape: f32[128,512], index: 1, kind: input, shape index: {}]   ;;  %s3402_s2 = inlined_call_operand.vmem [shape: f32[8,128], index: 2, kind: input, shape index: {}]   ;;  %s3403_s3 = inlined_call_operand.vmem [shape: f32[8,128], index: 3, kind: input, shape index: {}]   ;;  %s3404_s4 = inlined_call_operand.vmem [shape: f32[8,8,128], index: 4, kind: output, shape index: {0}]   ;;  %s3405_s5 = inlined_call_operand.vmem [shape: f32[8,128], index: 5, kind: output, shape index: {1}]   ;;  %s3406_s6 = inlined_call_operand.vmem [shape: f32[8,128], index: 6, kind: output, shape index: {2}]  }
   0x1   :  { %v2392_v0 = vld [vmem:[%s3401_s1] sm:$0xff]  ;;  %v2397_v1 = vld [vmem:[%s3401_s1 + $0x8] sm:$0xff]  ;;  %v2402_v2 = vld [vmem:[%s3401_s1 + $0x10] sm:$0xff] }
   0x2   :  { %3455 = vst [vmem:[#allocation8_spill] sm:$0xff] %v2392_v0  ;;  %3456 = vst [vmem:[#allocation9_spill] sm:$0xff] %v2397_v1  ;;  %v2407_v3 = vld [vmem:[%s3401_s1 + $0x18] sm:$0xff]  ;;  %v2412_v4 = vld [vmem:[%s3401_s1 + $0x20] sm:$0xff] }
   0x3   :  { %3457 = vst [vmem:[#allocation10_spill] sm:$0xff] %v2402_v2  ;;  %3458 = vst [vmem:[#allocation11_spill] sm:$0xff] %v2407_v3  ;;  %v2417_v5 = vld [vmem:[%s3401_s1 + $0x28] sm:$0xff]  ;;  %v2422_v6 = vld [vmem:[%s3401_s1 + $0x30] sm:$0xff] }
   0x4   :  { %3459 = vst [vmem:[#allocation12_spill] sm:$0xff] %v2412_v4  ;;  %3460 = vst [vmem:[#allocation13_spill] sm:$0xff] %v2417_v5  ;;  %v2427_v7 = vld [vmem:[%s3401_s1 + $0x38] sm:$0xff]  ;;  %v2432_v8 = vld [vmem:[%s3401_s1 + $0x40] sm:$0xff] }
   0x5   :  { %3461 = vst [vmem:[#allocation14_spill] sm:$0xff] %v2422_v6  ;;  %3462 = vst [vmem:[#allocation15_spill] sm:$0xff] %v2427_v7  ;;  %v2437_v9 = vld [vmem:[%s3401_s1 + $0x48] sm:$0xff]  ;;  %v2442_v10 = vld [vmem:[%s3401_s1 + $0x50] sm:$0xff] }
   0x6   :  { %3463 = vst [vmem:[#allocation16_spill] sm:$0xff] %v2432_v8  ;;  %3464 = vst [vmem:[#allocation17_spill] sm:$0xff] %v2437_v9  ;;  %v2447_v11 = vld [vmem:[%s3401_s1 + $0x58] sm:$0xff]  ;;  %v2452_v12 = vld [vmem:[%s3401_s1 + $0x60] sm:$0xff] }
   0x7   :  { %3465 = vst [vmem:[#allocation18_spill] sm:$0xff] %v2442_v10  ;;  %3466 = vst [vmem:[#allocation19_spill] sm:$0xff] %v2447_v11  ;;  %v2457_v13 = vld [vmem:[%s3401_s1 + $0x68] sm:$0xff]  ;;  %v2462_v14 = vld [vmem:[%s3401_s1 + $0x70] sm:$0xff] }
   0x8   :  { %3467 = vst [vmem:[#allocation20_spill] sm:$0xff] %v2452_v12  ;;  %3468 = vst [vmem:[#allocation21_spill] sm:$0xff] %v2457_v13  ;;  %v2467_v15 = vld [vmem:[%s3401_s1 + $0x78] sm:$0xff]  ;;  %v2472_v16 = vld [vmem:[%s3401_s1 + $0x80] sm:$0xff] }
   0x9   :  { %3469 = vst [vmem:[#allocation22_spill] sm:$0xff] %v2462_v14  ;;  %3470 = vst [vmem:[#allocation23_spill] sm:$0xff] %v2467_v15  ;;  %v2477_v17 = vld [vmem:[%s3401_s1 + $0x88] sm:$0xff]  ;;  %v2482_v18 = vld [vmem:[%s3401_s1 + $0x90] sm:$0xff] }
   0xa   :  { %3471 = vst [vmem:[#allocation24_spill] sm:$0xff] %v2482_v18  ;;  %v2487_v19 = vld [vmem:[%s3401_s1 + $0x98] sm:$0xff]  ;;  %v2492_v20 = vld [vmem:[%s3401_s1 + $0xa0] sm:$0xff]  ;;  %v2497_v21 = vld [vmem:[%s3401_s1 + $0xa8] sm:$0xff] }
   0xb   :  { %v2502_v22 = vld [vmem:[%s3401_s1 + $0xb0] sm:$0xff]  ;;  %v2507_v23 = vld [vmem:[%s3401_s1 + $0xb8] sm:$0xff]  ;;  %v2512_v24 = vld [vmem:[%s3401_s1 + $0xc0] sm:$0xff] }
   0xc   :  { %3472 = vst [vmem:[#allocation25_spill] sm:$0xff] %v2502_v22  ;;  %v2517_v25 = vld [vmem:[%s3401_s1 + $0xc8] sm:$0xff]  ;;  %v2522_v26 = vld [vmem:[%s3401_s1 + $0xd0] sm:$0xff]  ;;  %v2527_v27 = vld [vmem:[%s3401_s1 + $0xd8] sm:$0xff] }
   0xd   :  { %v2532_v28 = vld [vmem:[%s3401_s1 + $0xe0] sm:$0xff]  ;;  %v2537_v29 = vld [vmem:[%s3401_s1 + $0xe8] sm:$0xff]  ;;  %v2542_v30 = vld [vmem:[%s3401_s1 + $0xf0] sm:$0xff] }
   0xe   :  { %v2547_v31 = vld [vmem:[%s3401_s1 + $0xf8] sm:$0xff]  ;;  %v2552_v32 = vld [vmem:[%s3401_s1 + $0x100] sm:$0xff]  ;;  %v2557_v33 = vld [vmem:[%s3401_s1 + $0x108] sm:$0xff] }
   0xf   :  { %v2562_v34 = vld [vmem:[%s3401_s1 + $0x110] sm:$0xff]  ;;  %v2567_v35 = vld [vmem:[%s3401_s1 + $0x118] sm:$0xff]  ;;  %v2572_v36 = vld [vmem:[%s3401_s1 + $0x120] sm:$0xff] }
  0x10   :  { %v2577_v37 = vld [vmem:[%s3401_s1 + $0x128] sm:$0xff]  ;;  %v2582_v38 = vld [vmem:[%s3401_s1 + $0x130] sm:$0xff]  ;;  %v2587_v39 = vld [vmem:[%s3401_s1 + $0x138] sm:$0xff] }
  0x11   :  { %v2592_v40 = vld [vmem:[%s3401_s1 + $0x140] sm:$0xff]  ;;  %v2597_v41 = vld [vmem:[%s3401_s1 + $0x148] sm:$0xff]  ;;  %v2602_v42 = vld [vmem:[%s3401_s1 + $0x150] sm:$0xff] }
  0x12   :  { %v2607_v43 = vld [vmem:[%s3401_s1 + $0x158] sm:$0xff]  ;;  %v2612_v44 = vld [vmem:[%s3401_s1 + $0x160] sm:$0xff]  ;;  %v2617_v45 = vld [vmem:[%s3401_s1 + $0x168] sm:$0xff] }
  0x13   :  { %v2622_v46 = vld [vmem:[%s3401_s1 + $0x170] sm:$0xff]  ;;  %v2627_v47 = vld [vmem:[%s3401_s1 + $0x178] sm:$0xff]  ;;  %v2632_v48 = vld [vmem:[%s3401_s1 + $0x180] sm:$0xff] }
  0x14   :  { %v2637_v49 = vld [vmem:[%s3401_s1 + $0x188] sm:$0xff]  ;;  %v2642_v50 = vld [vmem:[%s3401_s1 + $0x190] sm:$0xff]  ;;  %v2647_v51 = vld [vmem:[%s3401_s1 + $0x198] sm:$0xff] }
  0x15   :  { %v2652_v52 = vld [vmem:[%s3401_s1 + $0x1a0] sm:$0xff]  ;;  %v2657_v53 = vld [vmem:[%s3401_s1 + $0x1a8] sm:$0xff]  ;;  %v2662_v54 = vld [vmem:[%s3401_s1 + $0x1b0] sm:$0xff] }
  0x16   :  { %v2667_v55 = vld [vmem:[%s3401_s1 + $0x1b8] sm:$0xff]  ;;  %v2672_v56 = vld [vmem:[%s3401_s1 + $0x1c0] sm:$0xff]  ;;  %v2677_v57 = vld [vmem:[%s3401_s1 + $0x1c8] sm:$0xff] }
  0x17   :  { %v2682_v58 = vld [vmem:[%s3401_s1 + $0x1d0] sm:$0xff]  ;;  %v2687_v59 = vld [vmem:[%s3401_s1 + $0x1d8] sm:$0xff]  ;;  %v2692_v60 = vld [vmem:[%s3401_s1 + $0x1e0] sm:$0xff] }
  0x18   :  { %v2697_v61 = vld [vmem:[%s3401_s1 + $0x1e8] sm:$0xff]  ;;  %v2702_v62 = vld [vmem:[%s3401_s1 + $0x1f0] sm:$0xff]  ;;  %v2707_v63 = vld [vmem:[%s3401_s1 + $0x1f8] sm:$0xff] }
  0x19   :  { %3473 = vst [vmem:[#allocation26_spill] sm:$0xff] %v2697_v61  ;;  %3474 = vst [vmem:[#allocation27_spill] sm:$0xff] %v2707_v63 }
  0x1a   :  { %190 = vsyncadd [#allocation3], 8192  ;;  %v2712_v2 = vld [vmem:[%s3402_s2] sm:$0xff]  ;;  %269 = vmatprep.subr.mxu0 %v2697_v61  ;;  %340 = vmatprep.subr.mxu1 %v2707_v63 }
  0x1b   :  { %v2717_v3 = vld [vmem:[%s3403_s3] sm:$0xff] }
  0x1c   :  { %3475 = vst [vmem:[#allocation28_spill] sm:$0xff] %v2717_v3 }
  0x1d   :  { %2351 = dma.done.wait [#allocation3], 8192 }
  0x1e   :  { %2352 = vsyncadd [#allocation3], 4294959104  ;;  %270 = vmatpush1.msra.mxu0 %v2692_v60  ;;  %341 = vmatpush1.msra.mxu1 %v2702_v62  ;;  %v3409_v3 = vmov 0.0  }
  0x1f   :  { %271 = vmatprep.subr.mxu0 %v2677_v57  ;;  %342 = vmatprep.subr.mxu1 %v2687_v59 }
  0x20   :  { %272 = vmatpush1.msra.mxu0 %v2672_v56  ;;  %343 = vmatpush1.msra.mxu1 %v2682_v58 }
  0x21   :  { %273 = vmatprep.subr.mxu0 %v2657_v53  ;;  %344 = vmatprep.subr.mxu1 %v2667_v55 }
  0x22   :  { %274 = vmatpush1.msra.mxu0 %v2652_v52  ;;  %345 = vmatpush1.msra.mxu1 %v2662_v54 }
  0x23   :  { %275 = vmatprep.subr.mxu0 %v2637_v49  ;;  %346 = vmatprep.subr.mxu1 %v2647_v51 }
  0x24   :  { %276 = vmatpush1.msra.mxu0 %v2632_v48  ;;  %347 = vmatpush1.msra.mxu1 %v2642_v50 }
  0x25   :  { %277 = vmatprep.subr.mxu0 %v2617_v45  ;;  %348 = vmatprep.subr.mxu1 %v2627_v47 }
  0x26   :  { %278 = vmatpush1.msra.mxu0 %v2612_v44  ;;  %349 = vmatpush1.msra.mxu1 %v2622_v46 }
  0x27   :  { %279 = vmatprep.subr.mxu0 %v2597_v41  ;;  %350 = vmatprep.subr.mxu1 %v2607_v43 }
  0x28   :  { %280 = vmatpush1.msra.mxu0 %v2592_v40  ;;  %351 = vmatpush1.msra.mxu1 %v2602_v42 }
  0x29   :  { %281 = vmatprep.subr.mxu0 %v2577_v37  ;;  %352 = vmatprep.subr.mxu1 %v2587_v39 }
  0x2a   :  { %282 = vmatpush1.msra.mxu0 %v2572_v36  ;;  %353 = vmatpush1.msra.mxu1 %v2582_v38 }
  0x2b   :  { %283 = vmatprep.subr.mxu0 %v2557_v33  ;;  %354 = vmatprep.subr.mxu1 %v2567_v35 }
  0x2c   :  { %284 = vmatpush1.msra.mxu0 %v2552_v32  ;;  %333 = vmatprep.mubr.f32.mxu0 %v3409_v3  ;;  %v3476_v3 = vld [vmem:[#allocation11_spill] sm:$0xff] }
  0x2d   :  { %285 = vmatprep.subr.mxu0 %v2537_v29  ;;  %355 = vmatpush1.msra.mxu1 %v2562_v34 }
  0x2e   :  { %286 = vmatpush1.msra.mxu0 %v2532_v28  ;;  %356 = vmatprep.subr.mxu1 %v2547_v31 }
  0x2f   :  { %287 = vmatprep.subr.mxu0 %v2517_v25  ;;  %357 = vmatpush1.msra.mxu1 %v2542_v30 }
  0x30   :  { %288 = vmatpush1.msra.mxu0 %v2512_v24  ;;  %358 = vmatprep.subr.mxu1 %v2527_v27 }
  0x31   :  { %289 = vmatprep.subr.mxu0 %v2497_v21  ;;  %359 = vmatpush1.msra.mxu1 %v2522_v26 }
  0x32   :  { %290 = vmatpush1.msra.mxu0 %v2492_v20  ;;  %360 = vmatprep.subr.mxu1 %v2507_v23 }
  0x33   :  { %291 = vmatprep.subr.mxu0 %v2477_v17  ;;  %361 = vmatpush1.msra.mxu1 %v2502_v22 }
  0x34   :  { %292 = vmatpush1.msra.mxu0 %v2472_v16  ;;  %362 = vmatprep.subr.mxu1 %v2487_v19 }
  0x35   :  { %293 = vmatprep.subr.mxu0 %v2457_v13  ;;  %363 = vmatpush1.msra.mxu1 %v2482_v18 }
  0x36   :  { %294 = vmatpush1.msra.mxu0 %v2452_v12  ;;  %364 = vmatprep.subr.mxu1 %v2467_v15 }
  0x37   :  { %295 = vmatprep.subr.mxu0 %v2437_v9  ;;  %365 = vmatpush1.msra.mxu1 %v2462_v14 }
  0x38   :  { %296 = vmatpush1.msra.mxu0 %v2432_v8  ;;  %366 = vmatprep.subr.mxu1 %v2447_v11  ;;  %v3477_v8 = vld [vmem:[#allocation10_spill] sm:$0xff]  ;;  %v3478_v11 = vmov 0.0  }
  0x39   :  { %297 = vmatprep.subr.mxu0 %v2417_v5  ;;  %367 = vmatpush1.msra.mxu1 %v2442_v10 }
  0x3a   :  { %298 = vmatpush1.msra.mxu0 %v2412_v4  ;;  %368 = vmatprep.subr.mxu1 %v2427_v7 }
  0x3b   :  { %299 = vmatprep.subr.mxu0 %v2397_v1  ;;  %369 = vmatpush1.msra.mxu1 %v2422_v6 }
  0x3c   :  { %300 = vmatpush1.msra.mxu0 %v2392_v0  ;;  %370 = vmatprep.subr.mxu1 %v3476_v3 }
  0x3d   :  { %334 = vmatmul.mubr.f32.vlgmr.msra.gmra.mxu0 %v2712_v2  ;;  %371 = vmatpush1.msra.mxu1 %v3477_v8 }
  0x3e   :  { %404 = vmatprep.mubr.f32.mxu1 %v3478_v11  ;;  %509 = vmatprep.subr.mxu0 %v2697_v61 }
  0x3f   :  { %405 = vmatmul.mubr.f32.vlgmr.msra.gmra.mxu1 %v2712_v2  ;;  %580 = vmatprep.subr.mxu1 %v2707_v63  ;;  %v3479_v2 = vld [vmem:[#allocation19_spill] sm:$0xff] }
  0x40   :  { %510 = vmatpush1.msra.mxu0 %v2692_v60  ;;  %581 = vmatpush1.msra.mxu1 %v2702_v62 }
  0x41   :  { %511 = vmatprep.subr.mxu0 %v2677_v57  ;;  %582 = vmatprep.subr.mxu1 %v2687_v59 }
  0x42   :  { %512 = vmatpush1.msra.mxu0 %v2672_v56  ;;  %583 = vmatpush1.msra.mxu1 %v2682_v58 }
  0x43   :  { %513 = vmatprep.subr.mxu0 %v2657_v53  ;;  %584 = vmatprep.subr.mxu1 %v2667_v55 }
  0x44   :  { %514 = vmatpush1.msra.mxu0 %v2652_v52  ;;  %585 = vmatpush1.msra.mxu1 %v2662_v54 }
  0x45   :  { %515 = vmatprep.subr.mxu0 %v2637_v49  ;;  %586 = vmatprep.subr.mxu1 %v2647_v51 }
  0x46   :  { %516 = vmatpush1.msra.mxu0 %v2632_v48  ;;  %587 = vmatpush1.msra.mxu1 %v2642_v50 }
  0x47   :  { %517 = vmatprep.subr.mxu0 %v2617_v45  ;;  %588 = vmatprep.subr.mxu1 %v2627_v47 }
  0x48   :  { %518 = vmatpush1.msra.mxu0 %v2612_v44  ;;  %589 = vmatpush1.msra.mxu1 %v2622_v46 }
  0x49   :  { %519 = vmatprep.subr.mxu0 %v2597_v41  ;;  %590 = vmatprep.subr.mxu1 %v2607_v43 }
  0x4a   :  { %520 = vmatpush1.msra.mxu0 %v2592_v40  ;;  %591 = vmatpush1.msra.mxu1 %v2602_v42 }
  0x4b   :  { %521 = vmatprep.subr.mxu0 %v2577_v37  ;;  %592 = vmatprep.subr.mxu1 %v2587_v39 }
  0x4c   :  { %522 = vmatpush1.msra.mxu0 %v2572_v36  ;;  %593 = vmatpush1.msra.mxu1 %v2582_v38 }
  0x4d   :  { %523 = vmatprep.subr.mxu0 %v2557_v33  ;;  %594 = vmatprep.subr.mxu1 %v2567_v35 }
  0x4e   :  { %524 = vmatpush1.msra.mxu0 %v2552_v32  ;;  %595 = vmatpush1.msra.mxu1 %v2562_v34 }
  0x4f   :  { %525 = vmatprep.subr.mxu0 %v2537_v29  ;;  %596 = vmatprep.subr.mxu1 %v2547_v31 }
  0x50   :  { %526 = vmatpush1.msra.mxu0 %v2532_v28  ;;  %597 = vmatpush1.msra.mxu1 %v2542_v30 }
  0x51   :  { %527 = vmatprep.subr.mxu0 %v2517_v25  ;;  %598 = vmatprep.subr.mxu1 %v2527_v27 }
  0x52   :  { %528 = vmatpush1.msra.mxu0 %v2512_v24  ;;  %599 = vmatpush1.msra.mxu1 %v2522_v26 }
  0x53   :  { %529 = vmatprep.subr.mxu0 %v2497_v21  ;;  %600 = vmatprep.subr.mxu1 %v2507_v23 }
  0x54   :  { %530 = vmatpush1.msra.mxu0 %v2492_v20  ;;  %601 = vmatpush1.msra.mxu1 %v2502_v22  ;;  %v3480_v22 = vld [vmem:[#allocation16_spill] sm:$0xff] }
  0x55   :  { %531 = vmatprep.subr.mxu0 %v2477_v17  ;;  %602 = vmatprep.subr.mxu1 %v2487_v19 }
  0x56   :  { %532 = vmatpush1.msra.mxu0 %v2472_v16  ;;  %603 = vmatpush1.msra.mxu1 %v2482_v18 }
  0x57   :  { %533 = vmatprep.subr.mxu0 %v2457_v13  ;;  %604 = vmatprep.subr.mxu1 %v2467_v15 }
  0x58   :  { %534 = vmatpush1.msra.mxu0 %v2452_v12  ;;  %605 = vmatpush1.msra.mxu1 %v2462_v14  ;;  %v3481_v12 = vld [vmem:[#allocation28_spill] sm:$0xff] }
  0x59   :  { %535 = vmatprep.subr.mxu0 %v2437_v9  ;;  %606 = vmatprep.subr.mxu1 %v3479_v2 }
  0x5a   :  { %536 = vmatpush1.msra.mxu0 %v3480_v22  ;;  %607 = vmatpush1.msra.mxu1 %v2442_v10  ;;  %v203_v10 = vld [vmem:[%s3400_s0 + $0x10] sm:$0xff] }
  0x5b   :  { %537 = vmatprep.subr.mxu0 %v2417_v5  ;;  %608 = vmatprep.subr.mxu1 %v2427_v7 }
  0x5c   :  { %538 = vmatpush1.msra.mxu0 %v2412_v4  ;;  %609 = vmatpush1.msra.mxu1 %v2422_v6  ;;  %v201_v6 = vld [vmem:[%s3400_s0] sm:$0xff] }
  0x5d   :  { %539 = vmatprep.subr.mxu0 %v2397_v1  ;;  %610 = vmatprep.subr.mxu1 %v3476_v3  ;;  %v202_v3 = vld [vmem:[%s3400_s0 + $0x8] sm:$0xff] }
  0x5e   :  { %540 = vmatpush1.msra.mxu0 %v2392_v0  ;;  %573 = vmatprep.mubr.f32.mxu0 %v3478_v11 }
  0x5f   :  { %611 = vmatpush1.msra.mxu1 %v3477_v8  ;;  %644 = vmatprep.mubr.f32.mxu1 %v3478_v11 }
  0x60   :  { %750 = vmatprep.subr.mxu0 %v2697_v61  ;;  %821 = vmatprep.subr.mxu1 %v2707_v63  ;;  %v204_v63 = vld [vmem:[%s3400_s0 + $0x18] sm:$0xff] }
  0xfd   :  { %v335_v4 = vpop.f32.mrf.mxu0 }
  0xfe   :  { %v411_v0 = vadd.f32 %v335_v4, %v201_v6 }
  0xff   :  { %v337_v1 = vpop.f32.mrf.mxu0  ;;  %v406_v11 = vpop.f32.mrf.mxu1 }
 0x100   :  { %v2162_v7 = vmul.f32 -1.442695, %v411_v0  ;;  %v412_v5 = vadd.f32 %v337_v1, %v202_v3  ;;  %v413_v2 = vadd.f32 %v406_v11, %v203_v10 }
 0x101   :  { %v408_v61 = vpop.f32.mrf.mxu1 }
 0x102   :  { %2223 = vpow2.f32 %v2162_v7  ;;  %v2163_v8 = vmul.f32 -1.442695, %v412_v5  ;;  %v414_v22 = vadd.f32 %v408_v61, %v204_v63  ;;  %v3487_v61 = vld [vmem:[#allocation22_spill] sm:$0xff]  ;;  %v3488_v63 = vld [vmem:[#allocation17_spill] sm:$0xff] }
 0x104   :  { %2225 = vpow2.f32 %v2163_v8  ;;  %v2164_v9 = vmul.f32 -1.442695, %v414_v22 }
 0x105   :  { %2227 = vtanh.f32 %v413_v2  ;;  %v3489_v2 = vld [vmem:[#allocation19_spill] sm:$0xff] }
 0x106   :  { %2229 = vpow2.f32 %v2164_v9  ;;  %v3482_v9 = vld [vmem:[#allocation25_spill] sm:$0xff] }
 0x10f   :  { %v2224_v4 = vpop.eup %2223 }
 0x110   :  { %v418_v6 = vadd.f32 1.0, %v2224_v4  ;;  %v3490_v4 = vld [vmem:[#allocation16_spill] sm:$0xff] }
 0x111   :  { %v2226_v0 = vpop.eup %2225 }
 0x112   :  { %2231 = vrcp.f32 %v418_v6  ;;  %v424_v1 = vadd.f32 1.0, %v2226_v0  ;;  %v2228_v3 = vpop.eup %2227  ;;  %v3491_v6 = vld [vmem:[#allocation18_spill] sm:$0xff]  ;;  %v3492_v0 = vld [vmem:[#allocation13_spill] sm:$0xff] }
 0x113   :  { %v2230_v5 = vpop.eup %2229 }
 0x114   :  { %2233 = vrcp.f32 %v424_v1  ;;  %v431_v14 = vadd.f32 1.0, %v2230_v5  ;;  %v3493_v1 = vld [vmem:[#allocation15_spill] sm:$0xff]  ;;  %v3495_v5 = vld [vmem:[#allocation14_spill] sm:$0xff] }
 0x116   :  { %2235 = vrcp.f32 %v431_v14  ;;  %v3485_v14 = vld [vmem:[#allocation23_spill] sm:$0xff] }
 0x11f   :  { %v2232_v7 = vpop.eup %2231 }
 0x120   :  { %v435_v13 = vmul.f32 %v2232_v7, %v2228_v3  ;;  %v3494_v3 = vld [vmem:[#allocation12_spill] sm:$0xff]  ;;  %v3496_v7 = vld [vmem:[#allocation9_spill] sm:$0xff] }
 0x121   :  { %v2234_v8 = vpop.eup %2233 }
 0x122   :  { %v434_v15 = vmul.f32 %v2234_v8, %v3481_v12  ;;  %v3483_v12 = vld [vmem:[#allocation24_spill] sm:$0xff]  ;;  %v3497_v8 = vld [vmem:[#allocation11_spill] sm:$0xff] }
 0x123   :  { %v2236_v10 = vpop.eup %2235 }
 0x124   :  { %v2868_v18 = vadd.f32 %v435_v13, %v434_v15  ;;  %v3484_v13 = vld [vmem:[#allocation21_spill] sm:$0xff]  ;;  %v3486_v15 = vld [vmem:[#allocation20_spill] sm:$0xff] }
 0x126   :  { %2237 = vtanh.f32 %v2868_v18 }
 0x133   :  { %v2238_v11 = vpop.eup %2237 }
 0x134   :  { %v438_v22 = vmul.f32 %v2238_v11, %v2236_v10  ;;  %v3498_v10 = vld [vmem:[#allocation8_spill] sm:$0xff]  ;;  %v3499_v11 = vmov 0.0  }
 0x136   :  { %439 = vst [vmem:[%s3404_s4] sm:$0xff] %v438_v22  ;;  %574 = vmatmul.mubr.f32.vlgmr.msra.gmra.mxu0 %v438_v22  ;;  %645 = vmatmul.mubr.f32.vlgmr.msra.gmra.mxu1 %v438_v22  ;;  %v3500_v22 = vld [vmem:[#allocation10_spill] sm:$0xff] }
 0x137   :  { %751 = vmatpush1.msra.mxu0 %v2692_v60  ;;  %822 = vmatpush1.msra.mxu1 %v2702_v62 }
 0x138   :  { %752 = vmatprep.subr.mxu0 %v2677_v57  ;;  %823 = vmatprep.subr.mxu1 %v2687_v59 }
 0x139   :  { %753 = vmatpush1.msra.mxu0 %v2672_v56  ;;  %824 = vmatpush1.msra.mxu1 %v2682_v58 }
 0x13a   :  { %754 = vmatprep.subr.mxu0 %v2657_v53  ;;  %825 = vmatprep.subr.mxu1 %v2667_v55 }
 0x13b   :  { %755 = vmatpush1.msra.mxu0 %v2652_v52  ;;  %826 = vmatpush1.msra.mxu1 %v2662_v54 }
 0x13c   :  { %756 = vmatprep.subr.mxu0 %v2637_v49  ;;  %827 = vmatprep.subr.mxu1 %v2647_v51 }
 0x13d   :  { %757 = vmatpush1.msra.mxu0 %v2632_v48  ;;  %828 = vmatpush1.msra.mxu1 %v2642_v50 }
 0x13e   :  { %758 = vmatprep.subr.mxu0 %v2617_v45  ;;  %829 = vmatprep.subr.mxu1 %v2627_v47 }
 0x13f   :  { %759 = vmatpush1.msra.mxu0 %v2612_v44  ;;  %830 = vmatpush1.msra.mxu1 %v2622_v46 }
 0x140   :  { %760 = vmatprep.subr.mxu0 %v2597_v41  ;;  %831 = vmatprep.subr.mxu1 %v2607_v43 }
 0x141   :  { %761 = vmatpush1.msra.mxu0 %v2592_v40  ;;  %832 = vmatpush1.msra.mxu1 %v2602_v42 }
 0x142   :  { %762 = vmatprep.subr.mxu0 %v2577_v37  ;;  %833 = vmatprep.subr.mxu1 %v2587_v39 }
 0x143   :  { %763 = vmatpush1.msra.mxu0 %v2572_v36  ;;  %834 = vmatpush1.msra.mxu1 %v2582_v38 }
 0x144   :  { %764 = vmatprep.subr.mxu0 %v2557_v33  ;;  %835 = vmatprep.subr.mxu1 %v2567_v35 }
 0x145   :  { %765 = vmatpush1.msra.mxu0 %v2552_v32  ;;  %836 = vmatpush1.msra.mxu1 %v2562_v34 }
 0x146   :  { %766 = vmatprep.subr.mxu0 %v2537_v29  ;;  %837 = vmatprep.subr.mxu1 %v2547_v31 }
 0x147   :  { %767 = vmatpush1.msra.mxu0 %v2532_v28  ;;  %838 = vmatpush1.msra.mxu1 %v2542_v30 }
 0x148   :  { %768 = vmatprep.subr.mxu0 %v2517_v25  ;;  %839 = vmatprep.subr.mxu1 %v2527_v27 }
 0x149   :  { %769 = vmatpush1.msra.mxu0 %v2512_v24  ;;  %840 = vmatpush1.msra.mxu1 %v2522_v26 }
 0x14a   :  { %770 = vmatprep.subr.mxu0 %v2497_v21  ;;  %841 = vmatprep.subr.mxu1 %v2507_v23 }
 0x14b   :  { %771 = vmatpush1.msra.mxu0 %v2492_v20  ;;  %842 = vmatpush1.msra.mxu1 %v3482_v9 }
 0x14c   :  { %772 = vmatprep.subr.mxu0 %v2477_v17  ;;  %843 = vmatprep.subr.mxu1 %v2487_v19 }
 0x14d   :  { %773 = vmatpush1.msra.mxu0 %v2472_v16  ;;  %844 = vmatpush1.msra.mxu1 %v3483_v12 }
 0x14e   :  { %774 = vmatprep.subr.mxu0 %v3484_v13  ;;  %845 = vmatprep.subr.mxu1 %v3485_v14 }
 0x14f   :  { %775 = vmatpush1.msra.mxu0 %v3486_v15  ;;  %846 = vmatpush1.msra.mxu1 %v3487_v61 }
 0x150   :  { %776 = vmatprep.subr.mxu0 %v3488_v63  ;;  %847 = vmatprep.subr.mxu1 %v3489_v2  ;;  %v2167_v63 = vld [vmem:[%s3400_s0 + $0x30] sm:$0xff] }
 0x151   :  { %777 = vmatpush1.msra.mxu0 %v3490_v4  ;;  %848 = vmatpush1.msra.mxu1 %v3491_v6  ;;  %v3501_v6 = vld [vmem:[#allocation26_spill] sm:$0xff] }
 0x152   :  { %778 = vmatprep.subr.mxu0 %v3492_v0  ;;  %849 = vmatprep.subr.mxu1 %v3493_v1  ;;  %v3502_v0 = vld [vmem:[#allocation27_spill] sm:$0xff] }
 0x153   :  { %779 = vmatpush1.msra.mxu0 %v3494_v3  ;;  %850 = vmatpush1.msra.mxu1 %v3495_v5  ;;  %v2165_v5 = vld [vmem:[%s3400_s0 + $0x20] sm:$0xff] }
 0x154   :  { %780 = vmatprep.subr.mxu0 %v3496_v7  ;;  %851 = vmatprep.subr.mxu1 %v3497_v8  ;;  %v2166_v8 = vld [vmem:[%s3400_s0 + $0x28] sm:$0xff] }
 0x155   :  { %781 = vmatpush1.msra.mxu0 %v3498_v10  ;;  %814 = vmatprep.mubr.f32.mxu0 %v3499_v11 }
 0x156   :  { %852 = vmatpush1.msra.mxu1 %v3500_v22  ;;  %885 = vmatprep.mubr.f32.mxu1 %v3499_v11 }
 0x157   :  { %991 = vmatprep.subr.mxu0 %v3501_v6  ;;  %1062 = vmatprep.subr.mxu1 %v3502_v0  ;;  %v2168_v0 = vld [vmem:[%s3400_s0 + $0x38] sm:$0xff] }
 0x1f6   :  { %v575_v3 = vpop.f32.mrf.mxu0  ;;  %v646_v22 = vpop.f32.mrf.mxu1 }
 0x1f7   :  { %v651_v10 = vadd.f32 %v2165_v5, %v575_v3  ;;  %v653_v3 = vadd.f32 %v2167_v63, %v646_v22  ;;  %v3506_v22 = vld [vmem:[#allocation22_spill] sm:$0xff] }
 0x1f8   :  { %v577_v7 = vpop.f32.mrf.mxu0  ;;  %v648_v6 = vpop.f32.mrf.mxu1 }
 0x1f9   :  { %v2169_v1 = vmul.f32 -1.442695, %v651_v10  ;;  %v652_v4 = vadd.f32 %v2166_v8, %v577_v7  ;;  %v654_v2 = vadd.f32 %v2168_v0, %v648_v6 }
 0x1fb   :  { %2239 = vpow2.f32 %v2169_v1  ;;  %v2170_v11 = vmul.f32 -1.442695, %v652_v4  ;;  %v2171_v61 = vmul.f32 -1.442695, %v654_v2  ;;  %v3505_v2 = vld [vmem:[#allocation20_spill] sm:$0xff] }
 0x1fd   :  { %2241 = vpow2.f32 %v2170_v11 }
 0x1fe   :  { %2243 = vpow2.f32 %v2171_v61 }
 0x208   :  { %v2240_v15 = vpop.eup %2239 }
 0x209   :  { %v658_v5 = vadd.f32 1.0, %v2240_v15 }
 0x20a   :  { %v2242_v10 = vpop.eup %2241 }
 0x20b   :  { %2245 = vrcp.f32 %v658_v5  ;;  %v664_v1 = vadd.f32 1.0, %v2242_v10  ;;  %v2244_v4 = vpop.eup %2243  ;;  %v3508_v5 = vld [vmem:[#allocation19_spill] sm:$0xff]  ;;  %v3509_v10 = vld [vmem:[#allocation16_spill] sm:$0xff] }
 0x20c   :  { %2247 = vtanh.f32 %v653_v3  ;;  %v671_v14 = vadd.f32 1.0, %v2244_v4  ;;  %v3507_v3 = vld [vmem:[#allocation17_spill] sm:$0xff] }
 0x20d   :  { %2249 = vrcp.f32 %v664_v1  ;;  %v3510_v1 = vld [vmem:[#allocation18_spill] sm:$0xff]  ;;  %v3511_v4 = vld [vmem:[#allocation13_spill] sm:$0xff] }
 0x20e   :  { %2251 = vrcp.f32 %v671_v14  ;;  %v3504_v14 = vld [vmem:[#allocation23_spill] sm:$0xff] }
 0x218   :  { %v2246_v7 = vpop.eup %2245 }
 0x219   :  { %v2248_v8 = vpop.eup %2247 }
 0x21a   :  { %v2250_v11 = vpop.eup %2249  ;;  %v675_v6 = vmul.f32 %v2248_v8, %v2246_v7  ;;  %v3512_v7 = vld [vmem:[#allocation15_spill] sm:$0xff]  ;;  %v3513_v8 = vld [vmem:[#allocation12_spill] sm:$0xff] }
 0x21b   :  { %v674_v0 = vmul.f32 %v2250_v11, %v2868_v18  ;;  %v2252_v15 = vpop.eup %2251  ;;  %v3503_v18 = vld [vmem:[#allocation21_spill] sm:$0xff]  ;;  %v3514_v11 = vld [vmem:[#allocation14_spill] sm:$0xff] }
 0x21d   :  { %v2953_v13 = vadd.f32 %v675_v6, %v674_v0  ;;  %v3515_v6 = vld [vmem:[#allocation9_spill] sm:$0xff]  ;;  %v3516_v0 = vld [vmem:[#allocation11_spill] sm:$0xff] }
 0x21f   :  { %2253 = vtanh.f32 %v2953_v13 }
 0x22c   :  { %v2254_v63 = vpop.eup %2253 }
 0x22d   :  { %v678_v61 = vmul.f32 %v2254_v63, %v2252_v15  ;;  %v3517_v15 = vld [vmem:[#allocation8_spill] sm:$0xff]  ;;  %v3518_v63 = vmov 0.0  }
 0x22f   :  { %2172 = vst [vmem:[%s3404_s4 + $0x8] sm:$0xff] %v678_v61  ;;  %815 = vmatmul.mubr.f32.vlgmr.msra.gmra.mxu0 %v678_v61  ;;  %886 = vmatmul.mubr.f32.vlgmr.msra.gmra.mxu1 %v678_v61  ;;  %v3519_v61 = vld [vmem:[#allocation10_spill] sm:$0xff] }
 0x230   :  { %992 = vmatpush1.msra.mxu0 %v2692_v60  ;;  %1063 = vmatpush1.msra.mxu1 %v2702_v62 }
 0x231   :  { %993 = vmatprep.subr.mxu0 %v2677_v57  ;;  %1064 = vmatprep.subr.mxu1 %v2687_v59 }
 0x232   :  { %994 = vmatpush1.msra.mxu0 %v2672_v56  ;;  %1065 = vmatpush1.msra.mxu1 %v2682_v58 }
 0x233   :  { %995 = vmatprep.subr.mxu0 %v2657_v53  ;;  %1066 = vmatprep.subr.mxu1 %v2667_v55 }
 0x234   :  { %996 = vmatpush1.msra.mxu0 %v2652_v52  ;;  %1067 = vmatpush1.msra.mxu1 %v2662_v54 }
 0x235   :  { %997 = vmatprep.subr.mxu0 %v2637_v49  ;;  %1068 = vmatprep.subr.mxu1 %v2647_v51 }
 0x236   :  { %998 = vmatpush1.msra.mxu0 %v2632_v48  ;;  %1069 = vmatpush1.msra.mxu1 %v2642_v50 }
 0x237   :  { %999 = vmatprep.subr.mxu0 %v2617_v45  ;;  %1070 = vmatprep.subr.mxu1 %v2627_v47 }
 0x238   :  { %1000 = vmatpush1.msra.mxu0 %v2612_v44  ;;  %1071 = vmatpush1.msra.mxu1 %v2622_v46 }
 0x239   :  { %1001 = vmatprep.subr.mxu0 %v2597_v41  ;;  %1072 = vmatprep.subr.mxu1 %v2607_v43 }
 0x23a   :  { %1002 = vmatpush1.msra.mxu0 %v2592_v40  ;;  %1073 = vmatpush1.msra.mxu1 %v2602_v42 }
 0x23b   :  { %1003 = vmatprep.subr.mxu0 %v2577_v37  ;;  %1074 = vmatprep.subr.mxu1 %v2587_v39 }
 0x23c   :  { %1004 = vmatpush1.msra.mxu0 %v2572_v36  ;;  %1075 = vmatpush1.msra.mxu1 %v2582_v38 }
 0x23d   :  { %1005 = vmatprep.subr.mxu0 %v2557_v33  ;;  %1076 = vmatprep.subr.mxu1 %v2567_v35 }
 0x23e   :  { %1006 = vmatpush1.msra.mxu0 %v2552_v32  ;;  %1077 = vmatpush1.msra.mxu1 %v2562_v34 }
 0x23f   :  { %1007 = vmatprep.subr.mxu0 %v2537_v29  ;;  %1078 = vmatprep.subr.mxu1 %v2547_v31 }
 0x240   :  { %1008 = vmatpush1.msra.mxu0 %v2532_v28  ;;  %1079 = vmatpush1.msra.mxu1 %v2542_v30 }
 0x241   :  { %1009 = vmatprep.subr.mxu0 %v2517_v25  ;;  %1080 = vmatprep.subr.mxu1 %v2527_v27 }
 0x242   :  { %1010 = vmatpush1.msra.mxu0 %v2512_v24  ;;  %1081 = vmatpush1.msra.mxu1 %v2522_v26 }
 0x243   :  { %1011 = vmatprep.subr.mxu0 %v2497_v21  ;;  %1082 = vmatprep.subr.mxu1 %v2507_v23 }
 0x244   :  { %1012 = vmatpush1.msra.mxu0 %v2492_v20  ;;  %1083 = vmatpush1.msra.mxu1 %v3482_v9 }
 0x245   :  { %1013 = vmatprep.subr.mxu0 %v2477_v17  ;;  %1084 = vmatprep.subr.mxu1 %v2487_v19 }
 0x246   :  { %1014 = vmatpush1.msra.mxu0 %v2472_v16  ;;  %1085 = vmatpush1.msra.mxu1 %v3483_v12 }
 0x247   :  { %1015 = vmatprep.subr.mxu0 %v3503_v18  ;;  %1086 = vmatprep.subr.mxu1 %v3504_v14 }
 0x248   :  { %1016 = vmatpush1.msra.mxu0 %v3505_v2  ;;  %1087 = vmatpush1.msra.mxu1 %v3506_v22 }
 0x249   :  { %1017 = vmatprep.subr.mxu0 %v3507_v3  ;;  %1088 = vmatprep.subr.mxu1 %v3508_v5  ;;  %v2175_v3 = vld [vmem:[%s3400_s0 + $0x50] sm:$0xff] }
 0x24a   :  { %1018 = vmatpush1.msra.mxu0 %v3509_v10  ;;  %1089 = vmatpush1.msra.mxu1 %v3510_v1  ;;  %v3520_v1 = vld [vmem:[#allocation26_spill] sm:$0xff] }
 0x24b   :  { %1019 = vmatprep.subr.mxu0 %v3511_v4  ;;  %1090 = vmatprep.subr.mxu1 %v3512_v7  ;;  %v3521_v4 = vld [vmem:[#allocation27_spill] sm:$0xff] }
 0x24c   :  { %1020 = vmatpush1.msra.mxu0 %v3513_v8  ;;  %1091 = vmatpush1.msra.mxu1 %v3514_v11  ;;  %v2173_v11 = vld [vmem:[%s3400_s0 + $0x40] sm:$0xff] }
 0x24d   :  { %1021 = vmatprep.subr.mxu0 %v3515_v6  ;;  %1092 = vmatprep.subr.mxu1 %v3516_v0  ;;  %v2174_v0 = vld [vmem:[%s3400_s0 + $0x48] sm:$0xff] }
 0x24e   :  { %1022 = vmatpush1.msra.mxu0 %v3517_v15  ;;  %1055 = vmatprep.mubr.f32.mxu0 %v3518_v63 }
 0x24f   :  { %1093 = vmatpush1.msra.mxu1 %v3519_v61  ;;  %1126 = vmatprep.mubr.f32.mxu1 %v3518_v63 }
 0x250   :  { %1232 = vmatprep.subr.mxu0 %v3520_v1  ;;  %1303 = vmatprep.subr.mxu1 %v3521_v4  ;;  %v2176_v4 = vld [vmem:[%s3400_s0 + $0x58] sm:$0xff] }
 0x2ef   :  { %v816_v8 = vpop.f32.mrf.mxu0  ;;  %v887_v61 = vpop.f32.mrf.mxu1 }
 0x2f0   :  { %v892_v15 = vadd.f32 %v2173_v11, %v816_v8  ;;  %v894_v8 = vadd.f32 %v2175_v3, %v887_v61  ;;  %v3525_v61 = vld [vmem:[#allocation22_spill] sm:$0xff] }
 0x2f1   :  { %v818_v6 = vpop.f32.mrf.mxu0  ;;  %v889_v1 = vpop.f32.mrf.mxu1 }
 0x2f2   :  { %v2177_v7 = vmul.f32 -1.442695, %v892_v15  ;;  %v893_v10 = vadd.f32 %v2174_v0, %v818_v6  ;;  %v895_v5 = vadd.f32 %v2176_v4, %v889_v1 }
 0x2f4   :  { %2255 = vpow2.f32 %v2177_v7  ;;  %v2178_v63 = vmul.f32 -1.442695, %v893_v10  ;;  %v2179_v22 = vmul.f32 -1.442695, %v895_v5  ;;  %v3524_v5 = vld [vmem:[#allocation20_spill] sm:$0xff] }
 0x2f6   :  { %2257 = vpow2.f32 %v2178_v63 }
 0x2f7   :  { %2259 = vpow2.f32 %v2179_v22 }
 0x301   :  { %v2256_v2 = vpop.eup %2255 }
 0x302   :  { %v899_v11 = vadd.f32 1.0, %v2256_v2 }
 0x303   :  { %v2258_v15 = vpop.eup %2257 }
 0x304   :  { %2261 = vrcp.f32 %v899_v11  ;;  %v905_v7 = vadd.f32 1.0, %v2258_v15  ;;  %v2260_v10 = vpop.eup %2259  ;;  %v3527_v11 = vld [vmem:[#allocation19_spill] sm:$0xff]  ;;  %v3528_v15 = vld [vmem:[#allocation16_spill] sm:$0xff] }
 0x305   :  { %2263 = vtanh.f32 %v894_v8  ;;  %v912_v14 = vadd.f32 1.0, %v2260_v10  ;;  %v3526_v8 = vld [vmem:[#allocation17_spill] sm:$0xff] }
 0x306   :  { %2265 = vrcp.f32 %v905_v7  ;;  %v3529_v7 = vld [vmem:[#allocation18_spill] sm:$0xff]  ;;  %v3530_v10 = vld [vmem:[#allocation13_spill] sm:$0xff] }
 0x307   :  { %2267 = vrcp.f32 %v912_v14  ;;  %v3523_v14 = vld [vmem:[#allocation23_spill] sm:$0xff] }
 0x311   :  { %v2262_v6 = vpop.eup %2261 }
 0x312   :  { %v2264_v0 = vpop.eup %2263 }
 0x313   :  { %v2266_v63 = vpop.eup %2265  ;;  %v916_v1 = vmul.f32 %v2264_v0, %v2262_v6  ;;  %v3531_v6 = vld [vmem:[#allocation15_spill] sm:$0xff]  ;;  %v3532_v0 = vld [vmem:[#allocation12_spill] sm:$0xff] }
 0x314   :  { %v915_v4 = vmul.f32 %v2266_v63, %v2953_v13  ;;  %v2268_v2 = vpop.eup %2267  ;;  %v3522_v13 = vld [vmem:[#allocation21_spill] sm:$0xff]  ;;  %v3533_v63 = vld [vmem:[#allocation14_spill] sm:$0xff] }
 0x316   :  { %v3038_v18 = vadd.f32 %v916_v1, %v915_v4  ;;  %v3534_v1 = vld [vmem:[#allocation9_spill] sm:$0xff]  ;;  %v3535_v4 = vld [vmem:[#allocation11_spill] sm:$0xff] }
 0x318   :  { %2269 = vtanh.f32 %v3038_v18 }
 0x325   :  { %v2270_v3 = vpop.eup %2269 }
 0x326   :  { %v919_v22 = vmul.f32 %v2270_v3, %v2268_v2  ;;  %v3536_v2 = vld [vmem:[#allocation8_spill] sm:$0xff]  ;;  %v3537_v3 = vmov 0.0  }
 0x328   :  { %2180 = vst [vmem:[%s3404_s4 + $0x10] sm:$0xff] %v919_v22  ;;  %1056 = vmatmul.mubr.f32.vlgmr.msra.gmra.mxu0 %v919_v22  ;;  %1127 = vmatmul.mubr.f32.vlgmr.msra.gmra.mxu1 %v919_v22  ;;  %v3538_v22 = vld [vmem:[#allocation10_spill] sm:$0xff] }
 0x329   :  { %1233 = vmatpush1.msra.mxu0 %v2692_v60  ;;  %1304 = vmatpush1.msra.mxu1 %v2702_v62 }
 0x32a   :  { %1234 = vmatprep.subr.mxu0 %v2677_v57  ;;  %1305 = vmatprep.subr.mxu1 %v2687_v59 }
 0x32b   :  { %1235 = vmatpush1.msra.mxu0 %v2672_v56  ;;  %1306 = vmatpush1.msra.mxu1 %v2682_v58 }
 0x32c   :  { %1236 = vmatprep.subr.mxu0 %v2657_v53  ;;  %1307 = vmatprep.subr.mxu1 %v2667_v55 }
 0x32d   :  { %1237 = vmatpush1.msra.mxu0 %v2652_v52  ;;  %1308 = vmatpush1.msra.mxu1 %v2662_v54 }
 0x32e   :  { %1238 = vmatprep.subr.mxu0 %v2637_v49  ;;  %1309 = vmatprep.subr.mxu1 %v2647_v51 }
 0x32f   :  { %1239 = vmatpush1.msra.mxu0 %v2632_v48  ;;  %1310 = vmatpush1.msra.mxu1 %v2642_v50 }
 0x330   :  { %1240 = vmatprep.subr.mxu0 %v2617_v45  ;;  %1311 = vmatprep.subr.mxu1 %v2627_v47 }
 0x331   :  { %1241 = vmatpush1.msra.mxu0 %v2612_v44  ;;  %1312 = vmatpush1.msra.mxu1 %v2622_v46 }
 0x332   :  { %1242 = vmatprep.subr.mxu0 %v2597_v41  ;;  %1313 = vmatprep.subr.mxu1 %v2607_v43 }
 0x333   :  { %1243 = vmatpush1.msra.mxu0 %v2592_v40  ;;  %1314 = vmatpush1.msra.mxu1 %v2602_v42 }
 0x334   :  { %1244 = vmatprep.subr.mxu0 %v2577_v37  ;;  %1315 = vmatprep.subr.mxu1 %v2587_v39 }
 0x335   :  { %1245 = vmatpush1.msra.mxu0 %v2572_v36  ;;  %1316 = vmatpush1.msra.mxu1 %v2582_v38 }
 0x336   :  { %1246 = vmatprep.subr.mxu0 %v2557_v33  ;;  %1317 = vmatprep.subr.mxu1 %v2567_v35 }
 0x337   :  { %1247 = vmatpush1.msra.mxu0 %v2552_v32  ;;  %1318 = vmatpush1.msra.mxu1 %v2562_v34 }
 0x338   :  { %1248 = vmatprep.subr.mxu0 %v2537_v29  ;;  %1319 = vmatprep.subr.mxu1 %v2547_v31 }
 0x339   :  { %1249 = vmatpush1.msra.mxu0 %v2532_v28  ;;  %1320 = vmatpush1.msra.mxu1 %v2542_v30 }
 0x33a   :  { %1250 = vmatprep.subr.mxu0 %v2517_v25  ;;  %1321 = vmatprep.subr.mxu1 %v2527_v27 }
 0x33b   :  { %1251 = vmatpush1.msra.mxu0 %v2512_v24  ;;  %1322 = vmatpush1.msra.mxu1 %v2522_v26 }
 0x33c   :  { %1252 = vmatprep.subr.mxu0 %v2497_v21  ;;  %1323 = vmatprep.subr.mxu1 %v2507_v23 }
 0x33d   :  { %1253 = vmatpush1.msra.mxu0 %v2492_v20  ;;  %1324 = vmatpush1.msra.mxu1 %v3482_v9 }
 0x33e   :  { %1254 = vmatprep.subr.mxu0 %v2477_v17  ;;  %1325 = vmatprep.subr.mxu1 %v2487_v19 }
 0x33f   :  { %1255 = vmatpush1.msra.mxu0 %v2472_v16  ;;  %1326 = vmatpush1.msra.mxu1 %v3483_v12 }
 0x340   :  { %1256 = vmatprep.subr.mxu0 %v3522_v13  ;;  %1327 = vmatprep.subr.mxu1 %v3523_v14 }
 0x341   :  { %1257 = vmatpush1.msra.mxu0 %v3524_v5  ;;  %1328 = vmatpush1.msra.mxu1 %v3525_v61 }
 0x342   :  { %1258 = vmatprep.subr.mxu0 %v3526_v8  ;;  %1329 = vmatprep.subr.mxu1 %v3527_v11  ;;  %v2183_v8 = vld [vmem:[%s3400_s0 + $0x70] sm:$0xff] }
 0x343   :  { %1259 = vmatpush1.msra.mxu0 %v3528_v15  ;;  %1330 = vmatpush1.msra.mxu1 %v3529_v7  ;;  %v3539_v7 = vld [vmem:[#allocation26_spill] sm:$0xff] }
 0x344   :  { %1260 = vmatprep.subr.mxu0 %v3530_v10  ;;  %1331 = vmatprep.subr.mxu1 %v3531_v6  ;;  %v3540_v10 = vld [vmem:[#allocation27_spill] sm:$0xff] }
 0x345   :  { %1261 = vmatpush1.msra.mxu0 %v3532_v0  ;;  %1332 = vmatpush1.msra.mxu1 %v3533_v63  ;;  %v2181_v63 = vld [vmem:[%s3400_s0 + $0x60] sm:$0xff] }
 0x346   :  { %1262 = vmatprep.subr.mxu0 %v3534_v1  ;;  %1333 = vmatprep.subr.mxu1 %v3535_v4  ;;  %v2182_v4 = vld [vmem:[%s3400_s0 + $0x68] sm:$0xff] }
 0x347   :  { %1263 = vmatpush1.msra.mxu0 %v3536_v2  ;;  %1296 = vmatprep.mubr.f32.mxu0 %v3537_v3 }
 0x348   :  { %1334 = vmatpush1.msra.mxu1 %v3538_v22  ;;  %1367 = vmatprep.mubr.f32.mxu1 %v3537_v3 }
 0x349   :  { %1473 = vmatprep.subr.mxu0 %v3539_v7  ;;  %1544 = vmatprep.subr.mxu1 %v3540_v10  ;;  %v2184_v10 = vld [vmem:[%s3400_s0 + $0x78] sm:$0xff] }
 0x3e8   :  { %v1057_v0 = vpop.f32.mrf.mxu0  ;;  %v1128_v22 = vpop.f32.mrf.mxu1 }
 0x3e9   :  { %v1133_v2 = vadd.f32 %v2181_v63, %v1057_v0  ;;  %v1135_v0 = vadd.f32 %v2183_v8, %v1128_v22  ;;  %v3544_v22 = vld [vmem:[#allocation22_spill] sm:$0xff] }
 0x3ea   :  { %v1059_v1 = vpop.f32.mrf.mxu0  ;;  %v1130_v7 = vpop.f32.mrf.mxu1 }
 0x3eb   :  { %v2185_v6 = vmul.f32 -1.442695, %v1133_v2  ;;  %v1134_v15 = vadd.f32 %v2182_v4, %v1059_v1  ;;  %v1136_v11 = vadd.f32 %v2184_v10, %v1130_v7 }
 0x3ed   :  { %2271 = vpow2.f32 %v2185_v6  ;;  %v2186_v3 = vmul.f32 -1.442695, %v1134_v15  ;;  %v2187_v61 = vmul.f32 -1.442695, %v1136_v11  ;;  %v3543_v11 = vld [vmem:[#allocation20_spill] sm:$0xff] }
 0x3ef   :  { %2273 = vpow2.f32 %v2186_v3 }
 0x3f0   :  { %2275 = vpow2.f32 %v2187_v61 }
 0x3fa   :  { %v2272_v5 = vpop.eup %2271 }
 0x3fb   :  { %v1140_v63 = vadd.f32 1.0, %v2272_v5 }
 0x3fc   :  { %v2274_v2 = vpop.eup %2273 }
 0x3fd   :  { %2277 = vrcp.f32 %v1140_v63  ;;  %v1146_v6 = vadd.f32 1.0, %v2274_v2  ;;  %v2276_v15 = vpop.eup %2275  ;;  %v3546_v63 = vld [vmem:[#allocation19_spill] sm:$0xff]  ;;  %v3547_v2 = vld [vmem:[#allocation16_spill] sm:$0xff] }
 0x3fe   :  { %2279 = vtanh.f32 %v1135_v0  ;;  %v1153_v14 = vadd.f32 1.0, %v2276_v15  ;;  %v3545_v0 = vld [vmem:[#allocation17_spill] sm:$0xff] }
 0x3ff   :  { %2281 = vrcp.f32 %v1146_v6  ;;  %v3548_v6 = vld [vmem:[#allocation18_spill] sm:$0xff]  ;;  %v3549_v15 = vld [vmem:[#allocation13_spill] sm:$0xff] }
 0x400   :  { %2283 = vrcp.f32 %v1153_v14  ;;  %v3542_v14 = vld [vmem:[#allocation23_spill] sm:$0xff] }
 0x40a   :  { %v2278_v1 = vpop.eup %2277 }
 0x40b   :  { %v2280_v4 = vpop.eup %2279 }
 0x40c   :  { %v2282_v3 = vpop.eup %2281  ;;  %v1157_v7 = vmul.f32 %v2280_v4, %v2278_v1  ;;  %v3550_v1 = vld [vmem:[#allocation15_spill] sm:$0xff]  ;;  %v3551_v4 = vld [vmem:[#allocation12_spill] sm:$0xff] }
 0x40d   :  { %v1156_v10 = vmul.f32 %v2282_v3, %v3038_v18  ;;  %v2284_v5 = vpop.eup %2283  ;;  %v3541_v18 = vld [vmem:[#allocation21_spill] sm:$0xff]  ;;  %v3552_v3 = vld [vmem:[#allocation14_spill] sm:$0xff] }
 0x40f   :  { %v3123_v13 = vadd.f32 %v1157_v7, %v1156_v10  ;;  %v3553_v7 = vld [vmem:[#allocation9_spill] sm:$0xff]  ;;  %v3554_v10 = vld [vmem:[#allocation11_spill] sm:$0xff] }
 0x411   :  { %2285 = vtanh.f32 %v3123_v13 }
 0x41e   :  { %v2286_v8 = vpop.eup %2285 }
 0x41f   :  { %v1160_v61 = vmul.f32 %v2286_v8, %v2284_v5  ;;  %v3555_v5 = vld [vmem:[#allocation8_spill] sm:$0xff]  ;;  %v3556_v8 = vmov 0.0  }
 0x421   :  { %2188 = vst [vmem:[%s3404_s4 + $0x18] sm:$0xff] %v1160_v61  ;;  %1297 = vmatmul.mubr.f32.vlgmr.msra.gmra.mxu0 %v1160_v61  ;;  %1368 = vmatmul.mubr.f32.vlgmr.msra.gmra.mxu1 %v1160_v61  ;;  %v3557_v61 = vld [vmem:[#allocation10_spill] sm:$0xff] }
 0x422   :  { %1474 = vmatpush1.msra.mxu0 %v2692_v60  ;;  %1545 = vmatpush1.msra.mxu1 %v2702_v62 }
 0x423   :  { %1475 = vmatprep.subr.mxu0 %v2677_v57  ;;  %1546 = vmatprep.subr.mxu1 %v2687_v59 }
 0x424   :  { %1476 = vmatpush1.msra.mxu0 %v2672_v56  ;;  %1547 = vmatpush1.msra.mxu1 %v2682_v58 }
 0x425   :  { %1477 = vmatprep.subr.mxu0 %v2657_v53  ;;  %1548 = vmatprep.subr.mxu1 %v2667_v55 }
 0x426   :  { %1478 = vmatpush1.msra.mxu0 %v2652_v52  ;;  %1549 = vmatpush1.msra.mxu1 %v2662_v54 }
 0x427   :  { %1479 = vmatprep.subr.mxu0 %v2637_v49  ;;  %1550 = vmatprep.subr.mxu1 %v2647_v51 }
 0x428   :  { %1480 = vmatpush1.msra.mxu0 %v2632_v48  ;;  %1551 = vmatpush1.msra.mxu1 %v2642_v50 }
 0x429   :  { %1481 = vmatprep.subr.mxu0 %v2617_v45  ;;  %1552 = vmatprep.subr.mxu1 %v2627_v47 }
 0x42a   :  { %1482 = vmatpush1.msra.mxu0 %v2612_v44  ;;  %1553 = vmatpush1.msra.mxu1 %v2622_v46 }
 0x42b   :  { %1483 = vmatprep.subr.mxu0 %v2597_v41  ;;  %1554 = vmatprep.subr.mxu1 %v2607_v43 }
 0x42c   :  { %1484 = vmatpush1.msra.mxu0 %v2592_v40  ;;  %1555 = vmatpush1.msra.mxu1 %v2602_v42 }
 0x42d   :  { %1485 = vmatprep.subr.mxu0 %v2577_v37  ;;  %1556 = vmatprep.subr.mxu1 %v2587_v39 }
 0x42e   :  { %1486 = vmatpush1.msra.mxu0 %v2572_v36  ;;  %1557 = vmatpush1.msra.mxu1 %v2582_v38 }
 0x42f   :  { %1487 = vmatprep.subr.mxu0 %v2557_v33  ;;  %1558 = vmatprep.subr.mxu1 %v2567_v35 }
 0x430   :  { %1488 = vmatpush1.msra.mxu0 %v2552_v32  ;;  %1559 = vmatpush1.msra.mxu1 %v2562_v34 }
 0x431   :  { %1489 = vmatprep.subr.mxu0 %v2537_v29  ;;  %1560 = vmatprep.subr.mxu1 %v2547_v31 }
 0x432   :  { %1490 = vmatpush1.msra.mxu0 %v2532_v28  ;;  %1561 = vmatpush1.msra.mxu1 %v2542_v30 }
 0x433   :  { %1491 = vmatprep.subr.mxu0 %v2517_v25  ;;  %1562 = vmatprep.subr.mxu1 %v2527_v27 }
 0x434   :  { %1492 = vmatpush1.msra.mxu0 %v2512_v24  ;;  %1563 = vmatpush1.msra.mxu1 %v2522_v26 }
 0x435   :  { %1493 = vmatprep.subr.mxu0 %v2497_v21  ;;  %1564 = vmatprep.subr.mxu1 %v2507_v23 }
 0x436   :  { %1494 = vmatpush1.msra.mxu0 %v2492_v20  ;;  %1565 = vmatpush1.msra.mxu1 %v3482_v9 }
 0x437   :  { %1495 = vmatprep.subr.mxu0 %v2477_v17  ;;  %1566 = vmatprep.subr.mxu1 %v2487_v19 }
 0x438   :  { %1496 = vmatpush1.msra.mxu0 %v2472_v16  ;;  %1567 = vmatpush1.msra.mxu1 %v3483_v12 }
 0x439   :  { %1497 = vmatprep.subr.mxu0 %v3541_v18  ;;  %1568 = vmatprep.subr.mxu1 %v3542_v14 }
 0x43a   :  { %1498 = vmatpush1.msra.mxu0 %v3543_v11  ;;  %1569 = vmatpush1.msra.mxu1 %v3544_v22 }
 0x43b   :  { %1499 = vmatprep.subr.mxu0 %v3545_v0  ;;  %1570 = vmatprep.subr.mxu1 %v3546_v63  ;;  %v2191_v0 = vld [vmem:[%s3400_s0 + $0x90] sm:$0xff] }
 0x43c   :  { %1500 = vmatpush1.msra.mxu0 %v3547_v2  ;;  %1571 = vmatpush1.msra.mxu1 %v3548_v6  ;;  %v3558_v6 = vld [vmem:[#allocation26_spill] sm:$0xff] }
 0x43d   :  { %1501 = vmatprep.subr.mxu0 %v3549_v15  ;;  %1572 = vmatprep.subr.mxu1 %v3550_v1  ;;  %v3559_v15 = vld [vmem:[#allocation27_spill] sm:$0xff] }
 0x43e   :  { %1502 = vmatpush1.msra.mxu0 %v3551_v4  ;;  %1573 = vmatpush1.msra.mxu1 %v3552_v3  ;;  %v2189_v3 = vld [vmem:[%s3400_s0 + $0x80] sm:$0xff] }
 0x43f   :  { %1503 = vmatprep.subr.mxu0 %v3553_v7  ;;  %1574 = vmatprep.subr.mxu1 %v3554_v10  ;;  %v2190_v10 = vld [vmem:[%s3400_s0 + $0x88] sm:$0xff] }
 0x440   :  { %1504 = vmatpush1.msra.mxu0 %v3555_v5  ;;  %1537 = vmatprep.mubr.f32.mxu0 %v3556_v8 }
 0x441   :  { %1575 = vmatpush1.msra.mxu1 %v3557_v61  ;;  %1608 = vmatprep.mubr.f32.mxu1 %v3556_v8 }
 0x442   :  { %1714 = vmatprep.subr.mxu0 %v3558_v6  ;;  %1785 = vmatprep.subr.mxu1 %v3559_v15  ;;  %v2192_v15 = vld [vmem:[%s3400_s0 + $0x98] sm:$0xff] }
 0x4e1   :  { %v1298_v4 = vpop.f32.mrf.mxu0  ;;  %v1369_v61 = vpop.f32.mrf.mxu1 }
 0x4e2   :  { %v1374_v5 = vadd.f32 %v2189_v3, %v1298_v4  ;;  %v1376_v4 = vadd.f32 %v2191_v0, %v1369_v61  ;;  %v3563_v61 = vld [vmem:[#allocation22_spill] sm:$0xff] }
 0x4e3   :  { %v1300_v7 = vpop.f32.mrf.mxu0  ;;  %v1371_v6 = vpop.f32.mrf.mxu1 }
 0x4e4   :  { %v2193_v1 = vmul.f32 -1.442695, %v1374_v5  ;;  %v1375_v2 = vadd.f32 %v2190_v10, %v1300_v7  ;;  %v1377_v63 = vadd.f32 %v2192_v15, %v1371_v6 }
 0x4e6   :  { %2287 = vpow2.f32 %v2193_v1  ;;  %v2194_v8 = vmul.f32 -1.442695, %v1375_v2  ;;  %v2195_v22 = vmul.f32 -1.442695, %v1377_v63  ;;  %v3562_v63 = vld [vmem:[#allocation20_spill] sm:$0xff] }
 0x4e8   :  { %2289 = vpow2.f32 %v2194_v8 }
 0x4e9   :  { %2291 = vpow2.f32 %v2195_v22 }
 0x4f3   :  { %v2288_v11 = vpop.eup %2287 }
 0x4f4   :  { %v1381_v3 = vadd.f32 1.0, %v2288_v11 }
 0x4f5   :  { %v2290_v5 = vpop.eup %2289 }
 0x4f6   :  { %2293 = vrcp.f32 %v1381_v3  ;;  %v1387_v1 = vadd.f32 1.0, %v2290_v5  ;;  %v2292_v2 = vpop.eup %2291  ;;  %v3565_v3 = vld [vmem:[#allocation19_spill] sm:$0xff]  ;;  %v3566_v5 = vld [vmem:[#allocation16_spill] sm:$0xff] }
 0x4f7   :  { %2295 = vtanh.f32 %v1376_v4  ;;  %v1394_v14 = vadd.f32 1.0, %v2292_v2  ;;  %v3564_v4 = vld [vmem:[#allocation17_spill] sm:$0xff] }
 0x4f8   :  { %2297 = vrcp.f32 %v1387_v1  ;;  %v3567_v1 = vld [vmem:[#allocation18_spill] sm:$0xff]  ;;  %v3568_v2 = vld [vmem:[#allocation13_spill] sm:$0xff] }
 0x4f9   :  { %2299 = vrcp.f32 %v1394_v14  ;;  %v3561_v14 = vld [vmem:[#allocation23_spill] sm:$0xff] }
 0x503   :  { %v2294_v7 = vpop.eup %2293 }
 0x504   :  { %v2296_v10 = vpop.eup %2295 }
 0x505   :  { %v2298_v8 = vpop.eup %2297  ;;  %v1398_v6 = vmul.f32 %v2296_v10, %v2294_v7  ;;  %v3569_v7 = vld [vmem:[#allocation15_spill] sm:$0xff]  ;;  %v3570_v10 = vld [vmem:[#allocation12_spill] sm:$0xff] }
 0x506   :  { %v1397_v15 = vmul.f32 %v2298_v8, %v3123_v13  ;;  %v2300_v11 = vpop.eup %2299  ;;  %v3560_v13 = vld [vmem:[#allocation21_spill] sm:$0xff]  ;;  %v3571_v8 = vld [vmem:[#allocation14_spill] sm:$0xff] }
 0x508   :  { %v3208_v18 = vadd.f32 %v1398_v6, %v1397_v15  ;;  %v3572_v6 = vld [vmem:[#allocation9_spill] sm:$0xff]  ;;  %v3573_v15 = vld [vmem:[#allocation11_spill] sm:$0xff] }
 0x50a   :  { %2301 = vtanh.f32 %v3208_v18 }
 0x517   :  { %v2302_v0 = vpop.eup %2301 }
 0x518   :  { %v1401_v22 = vmul.f32 %v2302_v0, %v2300_v11  ;;  %v3574_v11 = vld [vmem:[#allocation8_spill] sm:$0xff]  ;;  %v3575_v0 = vmov 0.0  }
 0x51a   :  { %2196 = vst [vmem:[%s3404_s4 + $0x20] sm:$0xff] %v1401_v22  ;;  %1538 = vmatmul.mubr.f32.vlgmr.msra.gmra.mxu0 %v1401_v22  ;;  %1609 = vmatmul.mubr.f32.vlgmr.msra.gmra.mxu1 %v1401_v22  ;;  %v3576_v22 = vld [vmem:[#allocation10_spill] sm:$0xff] }
 0x51b   :  { %1715 = vmatpush1.msra.mxu0 %v2692_v60  ;;  %1786 = vmatpush1.msra.mxu1 %v2702_v62 }
 0x51c   :  { %1716 = vmatprep.subr.mxu0 %v2677_v57  ;;  %1787 = vmatprep.subr.mxu1 %v2687_v59 }
 0x51d   :  { %1717 = vmatpush1.msra.mxu0 %v2672_v56  ;;  %1788 = vmatpush1.msra.mxu1 %v2682_v58 }
 0x51e   :  { %1718 = vmatprep.subr.mxu0 %v2657_v53  ;;  %1789 = vmatprep.subr.mxu1 %v2667_v55 }
 0x51f   :  { %1719 = vmatpush1.msra.mxu0 %v2652_v52  ;;  %1790 = vmatpush1.msra.mxu1 %v2662_v54 }
 0x520   :  { %1720 = vmatprep.subr.mxu0 %v2637_v49  ;;  %1791 = vmatprep.subr.mxu1 %v2647_v51 }
 0x521   :  { %1721 = vmatpush1.msra.mxu0 %v2632_v48  ;;  %1792 = vmatpush1.msra.mxu1 %v2642_v50 }
 0x522   :  { %1722 = vmatprep.subr.mxu0 %v2617_v45  ;;  %1793 = vmatprep.subr.mxu1 %v2627_v47 }
 0x523   :  { %1723 = vmatpush1.msra.mxu0 %v2612_v44  ;;  %1794 = vmatpush1.msra.mxu1 %v2622_v46 }
 0x524   :  { %1724 = vmatprep.subr.mxu0 %v2597_v41  ;;  %1795 = vmatprep.subr.mxu1 %v2607_v43 }
 0x525   :  { %1725 = vmatpush1.msra.mxu0 %v2592_v40  ;;  %1796 = vmatpush1.msra.mxu1 %v2602_v42 }
 0x526   :  { %1726 = vmatprep.subr.mxu0 %v2577_v37  ;;  %1797 = vmatprep.subr.mxu1 %v2587_v39 }
 0x527   :  { %1727 = vmatpush1.msra.mxu0 %v2572_v36  ;;  %1798 = vmatpush1.msra.mxu1 %v2582_v38 }
 0x528   :  { %1728 = vmatprep.subr.mxu0 %v2557_v33  ;;  %1799 = vmatprep.subr.mxu1 %v2567_v35 }
 0x529   :  { %1729 = vmatpush1.msra.mxu0 %v2552_v32  ;;  %1800 = vmatpush1.msra.mxu1 %v2562_v34 }
 0x52a   :  { %1730 = vmatprep.subr.mxu0 %v2537_v29  ;;  %1801 = vmatprep.subr.mxu1 %v2547_v31 }
 0x52b   :  { %1731 = vmatpush1.msra.mxu0 %v2532_v28  ;;  %1802 = vmatpush1.msra.mxu1 %v2542_v30 }
 0x52c   :  { %1732 = vmatprep.subr.mxu0 %v2517_v25  ;;  %1803 = vmatprep.subr.mxu1 %v2527_v27 }
 0x52d   :  { %1733 = vmatpush1.msra.mxu0 %v2512_v24  ;;  %1804 = vmatpush1.msra.mxu1 %v2522_v26 }
 0x52e   :  { %1734 = vmatprep.subr.mxu0 %v2497_v21  ;;  %1805 = vmatprep.subr.mxu1 %v2507_v23 }
 0x52f   :  { %1735 = vmatpush1.msra.mxu0 %v2492_v20  ;;  %1806 = vmatpush1.msra.mxu1 %v3482_v9 }
 0x530   :  { %1736 = vmatprep.subr.mxu0 %v2477_v17  ;;  %1807 = vmatprep.subr.mxu1 %v2487_v19 }
 0x531   :  { %1737 = vmatpush1.msra.mxu0 %v2472_v16  ;;  %1808 = vmatpush1.msra.mxu1 %v3483_v12 }
 0x532   :  { %1738 = vmatprep.subr.mxu0 %v3560_v13  ;;  %1809 = vmatprep.subr.mxu1 %v3561_v14 }
 0x533   :  { %1739 = vmatpush1.msra.mxu0 %v3562_v63  ;;  %1810 = vmatpush1.msra.mxu1 %v3563_v61 }
 0x534   :  { %1740 = vmatprep.subr.mxu0 %v3564_v4  ;;  %1811 = vmatprep.subr.mxu1 %v3565_v3  ;;  %v2199_v4 = vld [vmem:[%s3400_s0 + $0xb0] sm:$0xff] }
 0x535   :  { %1741 = vmatpush1.msra.mxu0 %v3566_v5  ;;  %1812 = vmatpush1.msra.mxu1 %v3567_v1  ;;  %v3577_v1 = vld [vmem:[#allocation26_spill] sm:$0xff] }
 0x536   :  { %1742 = vmatprep.subr.mxu0 %v3568_v2  ;;  %1813 = vmatprep.subr.mxu1 %v3569_v7  ;;  %v3578_v2 = vld [vmem:[#allocation27_spill] sm:$0xff] }
 0x537   :  { %1743 = vmatpush1.msra.mxu0 %v3570_v10  ;;  %1814 = vmatpush1.msra.mxu1 %v3571_v8  ;;  %v2197_v8 = vld [vmem:[%s3400_s0 + $0xa0] sm:$0xff] }
 0x538   :  { %1744 = vmatprep.subr.mxu0 %v3572_v6  ;;  %1815 = vmatprep.subr.mxu1 %v3573_v15  ;;  %v2198_v15 = vld [vmem:[%s3400_s0 + $0xa8] sm:$0xff] }
 0x539   :  { %1745 = vmatpush1.msra.mxu0 %v3574_v11  ;;  %1778 = vmatprep.mubr.f32.mxu0 %v3575_v0 }
 0x53a   :  { %1816 = vmatpush1.msra.mxu1 %v3576_v22  ;;  %1849 = vmatprep.mubr.f32.mxu1 %v3575_v0 }
 0x53b   :  { %1955 = vmatprep.subr.mxu0 %v3577_v1  ;;  %2026 = vmatprep.subr.mxu1 %v3578_v2  ;;  %v2200_v1 = vld [vmem:[%s3400_s0 + $0xb8] sm:$0xff] }
 0x5da   :  { %v1539_v10 = vpop.f32.mrf.mxu0  ;;  %v1610_v22 = vpop.f32.mrf.mxu1 }
 0x5db   :  { %v1615_v11 = vadd.f32 %v2197_v8, %v1539_v10  ;;  %v1617_v10 = vadd.f32 %v2199_v4, %v1610_v22 }
 0x5dc   :  { %v1541_v6 = vpop.f32.mrf.mxu0  ;;  %v1612_v2 = vpop.f32.mrf.mxu1 }
 0x5dd   :  { %v2201_v7 = vmul.f32 -1.442695, %v1615_v11  ;;  %v1616_v5 = vadd.f32 %v2198_v15, %v1541_v6  ;;  %v1618_v3 = vadd.f32 %v2200_v1, %v1612_v2 }
 0x5df   :  { %2303 = vpow2.f32 %v2201_v7  ;;  %v2202_v0 = vmul.f32 -1.442695, %v1616_v5  ;;  %v2203_v61 = vmul.f32 -1.442695, %v1618_v3 }
 0x5e1   :  { %2305 = vpow2.f32 %v2202_v0 }
 0x5e2   :  { %2307 = vpow2.f32 %v2203_v61 }
 0x5ec   :  { %v2304_v63 = vpop.eup %2303 }
 0x5ed   :  { %v1622_v8 = vadd.f32 1.0, %v2304_v63 }
 0x5ee   :  { %v2306_v11 = vpop.eup %2305 }
 0x5ef   :  { %2309 = vrcp.f32 %v1622_v8  ;;  %v1628_v7 = vadd.f32 1.0, %v2306_v11  ;;  %v2308_v5 = vpop.eup %2307 }
 0x5f0   :  { %2311 = vtanh.f32 %v1617_v10  ;;  %v1635_v14 = vadd.f32 1.0, %v2308_v5 }
 0x5f1   :  { %2313 = vrcp.f32 %v1628_v7 }
 0x5f2   :  { %2315 = vrcp.f32 %v1635_v14  ;;  %v2213_v14 = vld [vmem:[%s3400_s0 + $0xe0] sm:$0xff] }
 0x5fc   :  { %v2310_v6 = vpop.eup %2309 }
 0x5fd   :  { %v2312_v15 = vpop.eup %2311 }
 0x5fe   :  { %v2314_v0 = vpop.eup %2313  ;;  %v1639_v1 = vmul.f32 %v2312_v15, %v2310_v6  ;;  %v2216_v6 = vld [vmem:[%s3400_s0 + $0xf8] sm:$0xff] }
 0x5ff   :  { %v1638_v2 = vmul.f32 %v2314_v0, %v3208_v18  ;;  %v2316_v63 = vpop.eup %2315 }
 0x601   :  { %v3293_v13 = vadd.f32 %v1639_v1, %v1638_v2  ;;  %v2215_v1 = vld [vmem:[%s3400_s0 + $0xf0] sm:$0xff] }
 0x603   :  { %2317 = vtanh.f32 %v3293_v13 }
 0x610   :  { %v2318_v4 = vpop.eup %2317 }
 0x611   :  { %v1642_v61 = vmul.f32 %v2318_v4, %v2316_v63 }
 0x613   :  { %2204 = vst [vmem:[%s3404_s4 + $0x28] sm:$0xff] %v1642_v61  ;;  %1779 = vmatmul.mubr.f32.vlgmr.msra.gmra.mxu0 %v1642_v61  ;;  %1850 = vmatmul.mubr.f32.vlgmr.msra.gmra.mxu1 %v1642_v61 }
 0x614   :  { %1956 = vmatpush1.msra.mxu0 %v2692_v60  ;;  %2027 = vmatpush1.msra.mxu1 %v2702_v62 }
 0x615   :  { %1957 = vmatprep.subr.mxu0 %v2677_v57  ;;  %2028 = vmatprep.subr.mxu1 %v2687_v59 }
 0x616   :  { %1958 = vmatpush1.msra.mxu0 %v2672_v56  ;;  %2029 = vmatpush1.msra.mxu1 %v2682_v58 }
 0x617   :  { %1959 = vmatprep.subr.mxu0 %v2657_v53  ;;  %2030 = vmatprep.subr.mxu1 %v2667_v55 }
 0x618   :  { %1960 = vmatpush1.msra.mxu0 %v2652_v52  ;;  %2031 = vmatpush1.msra.mxu1 %v2662_v54 }
 0x619   :  { %1961 = vmatprep.subr.mxu0 %v2637_v49  ;;  %2032 = vmatprep.subr.mxu1 %v2647_v51 }
 0x61a   :  { %1962 = vmatpush1.msra.mxu0 %v2632_v48  ;;  %2033 = vmatpush1.msra.mxu1 %v2642_v50 }
 0x61b   :  { %1963 = vmatprep.subr.mxu0 %v2617_v45  ;;  %2034 = vmatprep.subr.mxu1 %v2627_v47  ;;  %v2207_v47 = vld [vmem:[%s3400_s0 + $0xd0] sm:$0xff] }
 0x61c   :  { %1964 = vmatpush1.msra.mxu0 %v2612_v44  ;;  %2035 = vmatpush1.msra.mxu1 %v2622_v46  ;;  %v2208_v44 = vld [vmem:[%s3400_s0 + $0xd8] sm:$0xff] }
 0x61d   :  { %1965 = vmatprep.subr.mxu0 %v2597_v41  ;;  %2036 = vmatprep.subr.mxu1 %v2607_v43 }
 0x61e   :  { %1966 = vmatpush1.msra.mxu0 %v2592_v40  ;;  %2037 = vmatpush1.msra.mxu1 %v2602_v42 }
 0x61f   :  { %1967 = vmatprep.subr.mxu0 %v2577_v37  ;;  %2038 = vmatprep.subr.mxu1 %v2587_v39  ;;  %v2206_v37 = vld [vmem:[%s3400_s0 + $0xc8] sm:$0xff] }
 0x620   :  { %1968 = vmatpush1.msra.mxu0 %v2572_v36  ;;  %2039 = vmatpush1.msra.mxu1 %v2582_v38 }
 0x621   :  { %1969 = vmatprep.subr.mxu0 %v2557_v33  ;;  %2040 = vmatprep.subr.mxu1 %v2567_v35  ;;  %v3594_v33 = vmov 0.0   ;;  %v2205_v35 = vld [vmem:[%s3400_s0 + $0xc0] sm:$0xff] }
 0x622   :  { %1970 = vmatpush1.msra.mxu0 %v2552_v32  ;;  %2041 = vmatpush1.msra.mxu1 %v2562_v34  ;;  %v3593_v32 = vld [vmem:[#allocation8_spill] sm:$0xff]  ;;  %v3595_v34 = vld [vmem:[#allocation10_spill] sm:$0xff] }
 0x623   :  { %1971 = vmatprep.subr.mxu0 %v2537_v29  ;;  %2042 = vmatprep.subr.mxu1 %v2547_v31  ;;  %v3590_v29 = vld [vmem:[#allocation14_spill] sm:$0xff]  ;;  %v3592_v31 = vld [vmem:[#allocation11_spill] sm:$0xff] }
 0x624   :  { %1972 = vmatpush1.msra.mxu0 %v2532_v28  ;;  %2043 = vmatpush1.msra.mxu1 %v2542_v30  ;;  %v3589_v28 = vld [vmem:[#allocation12_spill] sm:$0xff]  ;;  %v3591_v30 = vld [vmem:[#allocation9_spill] sm:$0xff] }
 0x625   :  { %1973 = vmatprep.subr.mxu0 %v2517_v25  ;;  %2044 = vmatprep.subr.mxu1 %v2527_v27  ;;  %v3579_v25 = vld [vmem:[#allocation21_spill] sm:$0xff]  ;;  %v3585_v27 = vld [vmem:[#allocation16_spill] sm:$0xff] }
 0x626   :  { %1974 = vmatpush1.msra.mxu0 %v2512_v24  ;;  %2045 = vmatpush1.msra.mxu1 %v2522_v26  ;;  %v3580_v24 = vld [vmem:[#allocation23_spill] sm:$0xff]  ;;  %v3581_v26 = vld [vmem:[#allocation20_spill] sm:$0xff] }
 0x627   :  { %1975 = vmatprep.subr.mxu0 %v2497_v21  ;;  %2046 = vmatprep.subr.mxu1 %v2507_v23  ;;  %v3582_v21 = vld [vmem:[#allocation22_spill] sm:$0xff]  ;;  %v3583_v23 = vld [vmem:[#allocation17_spill] sm:$0xff] }
 0x628   :  { %1976 = vmatpush1.msra.mxu0 %v2492_v20  ;;  %2047 = vmatpush1.msra.mxu1 %v3482_v9  ;;  %v3584_v20 = vld [vmem:[#allocation19_spill] sm:$0xff] }
 0x629   :  { %1977 = vmatprep.subr.mxu0 %v2477_v17  ;;  %2048 = vmatprep.subr.mxu1 %v2487_v19  ;;  %v3586_v17 = vld [vmem:[#allocation18_spill] sm:$0xff]  ;;  %v3587_v19 = vld [vmem:[#allocation13_spill] sm:$0xff] }
 0x62a   :  { %1978 = vmatpush1.msra.mxu0 %v2472_v16  ;;  %2049 = vmatpush1.msra.mxu1 %v3483_v12  ;;  %v3588_v16 = vld [vmem:[#allocation15_spill] sm:$0xff] }
 0x62b   :  { %1979 = vmatprep.subr.mxu0 %v3579_v25  ;;  %2050 = vmatprep.subr.mxu1 %v3580_v24 }
 0x62c   :  { %1980 = vmatpush1.msra.mxu0 %v3581_v26  ;;  %2051 = vmatpush1.msra.mxu1 %v3582_v21 }
 0x62d   :  { %1981 = vmatprep.subr.mxu0 %v3583_v23  ;;  %2052 = vmatprep.subr.mxu1 %v3584_v20 }
 0x62e   :  { %1982 = vmatpush1.msra.mxu0 %v3585_v27  ;;  %2053 = vmatpush1.msra.mxu1 %v3586_v17 }
 0x62f   :  { %1983 = vmatprep.subr.mxu0 %v3587_v19  ;;  %2054 = vmatprep.subr.mxu1 %v3588_v16 }
 0x630   :  { %1984 = vmatpush1.msra.mxu0 %v3589_v28  ;;  %2055 = vmatpush1.msra.mxu1 %v3590_v29 }
 0x631   :  { %1985 = vmatprep.subr.mxu0 %v3591_v30  ;;  %2056 = vmatprep.subr.mxu1 %v3592_v31 }
 0x632   :  { %1986 = vmatpush1.msra.mxu0 %v3593_v32  ;;  %2019 = vmatprep.mubr.f32.mxu0 %v3594_v33 }
 0x633   :  { %2057 = vmatpush1.msra.mxu1 %v3595_v34  ;;  %2090 = vmatprep.mubr.f32.mxu1 %v3594_v33 }
 0x6d3   :  { %v1780_v36 = vpop.f32.mrf.mxu0  ;;  %v1851_v42 = vpop.f32.mrf.mxu1 }
 0x6d4   :  { %v1856_v38 = vadd.f32 %v2205_v35, %v1780_v36  ;;  %v1858_v50 = vadd.f32 %v2207_v47, %v1851_v42 }
 0x6d5   :  { %v1782_v39 = vpop.f32.mrf.mxu0  ;;  %v1853_v45 = vpop.f32.mrf.mxu1 }
 0x6d6   :  { %v2209_v40 = vmul.f32 -1.442695, %v1856_v38  ;;  %v1857_v41 = vadd.f32 %v2206_v37, %v1782_v39  ;;  %v1859_v46 = vadd.f32 %v2208_v44, %v1853_v45 }
 0x6d8   :  { %2319 = vpow2.f32 %v2209_v40  ;;  %v2210_v43 = vmul.f32 -1.442695, %v1857_v41  ;;  %v2211_v48 = vmul.f32 -1.442695, %v1859_v46 }
 0x6da   :  { %2321 = vpow2.f32 %v2210_v43 }
 0x6db   :  { %2323 = vpow2.f32 %v2211_v48 }
 0x6e5   :  { %v2320_v49 = vpop.eup %2319 }
 0x6e6   :  { %v1863_v51 = vadd.f32 1.0, %v2320_v49 }
 0x6e7   :  { %v2322_v52 = vpop.eup %2321 }
 0x6e8   :  { %2325 = vrcp.f32 %v1863_v51  ;;  %v1869_v53 = vadd.f32 1.0, %v2322_v52  ;;  %v2324_v54 = vpop.eup %2323 }
 0x6e9   :  { %2327 = vtanh.f32 %v1858_v50  ;;  %v1876_v58 = vadd.f32 1.0, %v2324_v54 }
 0x6ea   :  { %2329 = vrcp.f32 %v1869_v53 }
 0x6eb   :  { %2331 = vrcp.f32 %v1876_v58 }
 0x6f5   :  { %v2326_v55 = vpop.eup %2325 }
 0x6f6   :  { %v2328_v56 = vpop.eup %2327 }
 0x6f7   :  { %v2330_v57 = vpop.eup %2329  ;;  %v1880_v59 = vmul.f32 %v2328_v56, %v2326_v55 }
 0x6f8   :  { %v1879_v60 = vmul.f32 %v2330_v57, %v3293_v13  ;;  %v2332_v9 = vpop.eup %2331  ;;  %v2214_v13 = vld [vmem:[%s3400_s0 + $0xe8] sm:$0xff] }
 0x6fa   :  { %v1881_v62 = vadd.f32 %v1880_v59, %v1879_v60 }
 0x6fc   :  { %2333 = vtanh.f32 %v1881_v62 }
 0x709   :  { %v2334_v12 = vpop.eup %2333 }
 0x70a   :  { %v1883_v18 = vmul.f32 %v2334_v12, %v2332_v9 }
 0x70c   :  { %2212 = vst [vmem:[%s3404_s4 + $0x30] sm:$0xff] %v1883_v18  ;;  %2020 = vmatmul.mubr.f32.vlgmr.msra.gmra.mxu0 %v1883_v18  ;;  %2091 = vmatmul.mubr.f32.vlgmr.msra.gmra.mxu1 %v1883_v18 }
 0x7cc   :  { %v2021_v3 = vpop.f32.mrf.mxu0  ;;  %v2092_v7 = vpop.f32.mrf.mxu1 }
 0x7cd   :  { %v2097_v22 = vadd.f32 %v2213_v14, %v2021_v3  ;;  %v2099_v4 = vadd.f32 %v2215_v1, %v2092_v7 }
 0x7ce   :  { %v2023_v10 = vpop.f32.mrf.mxu0  ;;  %v2094_v15 = vpop.f32.mrf.mxu1 }
 0x7cf   :  { %v2217_v8 = vmul.f32 -1.442695, %v2097_v22  ;;  %v2098_v11 = vadd.f32 %v2214_v13, %v2023_v10  ;;  %v2100_v0 = vadd.f32 %v2216_v6, %v2094_v15 }
 0x7d1   :  { %2335 = vpow2.f32 %v2217_v8  ;;  %v2218_v5 = vmul.f32 -1.442695, %v2098_v11  ;;  %v2219_v2 = vmul.f32 -1.442695, %v2100_v0 }
 0x7d3   :  { %2337 = vpow2.f32 %v2218_v5 }
 0x7d4   :  { %2339 = vpow2.f32 %v2219_v2 }
 0x7de   :  { %v2336_v63 = vpop.eup %2335 }
 0x7df   :  { %v2104_v61 = vadd.f32 1.0, %v2336_v63 }
 0x7e0   :  { %v2338_v25 = vpop.eup %2337 }
 0x7e1   :  { %2341 = vrcp.f32 %v2104_v61  ;;  %v2110_v24 = vadd.f32 1.0, %v2338_v25  ;;  %v2340_v26 = vpop.eup %2339 }
 0x7e2   :  { %2343 = vtanh.f32 %v2099_v4  ;;  %v2117_v27 = vadd.f32 1.0, %v2340_v26 }
 0x7e3   :  { %2345 = vrcp.f32 %v2110_v24 }
 0x7e4   :  { %2347 = vrcp.f32 %v2117_v27 }
 0x7ee   :  { %v2342_v21 = vpop.eup %2341 }
 0x7ef   :  { %v2344_v23 = vpop.eup %2343 }
 0x7f0   :  { %v2346_v20 = vpop.eup %2345  ;;  %v2121_v17 = vmul.f32 %v2344_v23, %v2342_v21 }
 0x7f1   :  { %v2120_v19 = vmul.f32 %v2346_v20, %v1881_v62  ;;  %v2348_v28 = vpop.eup %2347 }
 0x7f3   :  { %v2122_v16 = vadd.f32 %v2121_v17, %v2120_v19 }
 0x7f5   :  { %2349 = vtanh.f32 %v2122_v16  ;;  %2135 = vst [vmem:[%s3406_s6] sm:$0xff] %v2122_v16 }
 0x802   :  { %v2350_v29 = vpop.eup %2349 }
 0x803   :  { %v2124_v30 = vmul.f32 %v2350_v29, %v2348_v28 }
 0x805   :  { %2220 = vst [vmem:[%s3404_s4 + $0x38] sm:$0xff] %v2124_v30  ;;  %2133 = vst [vmem:[%s3405_s5] sm:$0xff] %v2124_v30 }
 0x806   :  { %2148 = vsyncmov [#allocation3] }
 0x809   :  { %s2149_s3 = vpop.sfrf %2148 }
 0x80a   :  { %p2221_p0 = scmp.ne.s32.totalorder %s2149_s3, 0 }
 0x80c   :  { %2153 = shalt.err (%p2221_p0)  }

// kernel: _cpcar_forward.2
= control target key start
LH: loop header
LB: loop body
LE: loop exit
PB: predicated region body
PF: predicated region fallthrough
CT: control target
= control target key end

     0   :  { %s2208_s21 = smov [#allocation2]   ;;  %s3176_s0 = inlined_call_operand.vmem [shape: f32[8,8,512], index: 0, kind: input, shape index: {}]   ;;  %s3177_s1 = inlined_call_operand.hbm [shape: f32[128,512], index: 1, kind: input, shape index: {}]   ;;  %s3178_s2 = inlined_call_operand.vmem [shape: f32[8,128], index: 2, kind: input, shape index: {}]   ;;  %s3179_s3 = inlined_call_operand.vmem [shape: f32[8,128], index: 3, kind: input, shape index: {}]   ;;  %s3180_s4 = inlined_call_operand.vmem [shape: f32[8,8,128], index: 4, kind: output, shape index: {0}]   ;;  %s3181_s5 = inlined_call_operand.vmem [shape: f32[8,128], index: 5, kind: output, shape index: {1}]   ;;  %s3182_s6 = inlined_call_operand.vmem [shape: f32[8,128], index: 6, kind: output, shape index: {2}]  }
   0x1   :  { %s29_s22 = sshll.u32 %s2208_s21, 4  ;;  %v2248_v0 = vld [vmem:[%s3178_s2] sm:$0xff]  ;;  %s30_s22 = int_to_ptr.vmem [resolvable:$true] %s29_s22 }
   0x2   :  { %v2253_v1 = vld [vmem:[%s3179_s3] sm:$0xff]  ;;  %s2194_s27 = scalar_lea.vmem %s30_s22, 8192  ;;  %p2199_p1 = scmp.lt.s32.totalorder %s30_s22, %s30_s22 }
   0x3   :  { %3254 = vst [vmem:[#allocation11_spill] sm:$0xff] %v2253_v1  ;;  %p2195_p0 = scmp.ne.s32.totalorder %s30_s22, %s2194_s27  ;;  %p2200_p2 = scmp.lt.s32.totalorder %s2194_s27, %s2194_s27 }
   0x5   :  { %p2201_p3 = por %p2200_p2, %p2199_p1 }
   0x7   :  { %p2202_p4 = pnand %p2201_p3, %p2195_p0 }
   0x9   :  { %2205 = shalt.err (!%p2202_p4)  }
   0xa   :  { %32 = dma.hbm_to_vmem [thread:$0]  %s3177_s1, 8192, %s30_s22, [#allocation3] }
   0xb   :  { %2206 = dma.done.wait [#allocation3], 8192 }
   0xc   :  { %2207 = vsyncadd [#allocation3], 4294959104  ;;  %v3183_v2 = vmov 0.0   ;;  %v2260_v3 = vld [vmem:[#allocation2 + $0x1e8] sm:$0xff]  ;;  %v2262_v4 = vld [vmem:[#allocation2 + $0x1e0] sm:$0xff] }
   0xd   :  { %175 = vmatprep.mubr.f32.mxu0 %v3183_v2  ;;  %246 = vmatprep.mubr.f32.mxu1 %v3183_v2  ;;  %3255 = vst [vmem:[#allocation12_spill] sm:$0xff] %v2260_v3  ;;  %v2264_v5 = vld [vmem:[#allocation2 + $0x1c8] sm:$0xff]  ;;  %v2267_v6 = vld [vmem:[#allocation2 + $0x1c0] sm:$0xff]  ;;  %v2281_v11 = vld [vmem:[#allocation2 + $0x1f8] sm:$0xff] }
   0xe   :  { %111 = vmatprep.subr.mxu0 %v2260_v3  ;;  %v2270_v7 = vld [vmem:[#allocation2 + $0x1a8] sm:$0xff]  ;;  %v2273_v8 = vld [vmem:[#allocation2 + $0x1a0] sm:$0xff]  ;;  %3256 = vst [vmem:[#allocation13_spill] sm:$0xff] %v2281_v11  ;;  %182 = vmatprep.subr.mxu1 %v2281_v11  ;;  %v2287_v13 = vld [vmem:[#allocation2 + $0x1f0] sm:$0xff] }
   0xf   :  { %112 = vmatpush1.msra.mxu0 %v2262_v4  ;;  %v2276_v9 = vld [vmem:[#allocation2 + $0x188] sm:$0xff]  ;;  %v2279_v10 = vld [vmem:[#allocation2 + $0x180] sm:$0xff]  ;;  %183 = vmatpush1.msra.mxu1 %v2287_v13  ;;  %v2293_v15 = vld [vmem:[#allocation2 + $0x1d8] sm:$0xff] }
  0x10   :  { %113 = vmatprep.subr.mxu0 %v2264_v5  ;;  %v2284_v12 = vld [vmem:[#allocation2 + $0x168] sm:$0xff]  ;;  %v2290_v14 = vld [vmem:[#allocation2 + $0x160] sm:$0xff]  ;;  %v2295_v16 = vld [vmem:[#allocation2 + $0x1d0] sm:$0xff]  ;;  %184 = vmatprep.subr.mxu1 %v2293_v15 }
  0x11   :  { %114 = vmatpush1.msra.mxu0 %v2267_v6  ;;  %v2298_v17 = vld [vmem:[#allocation2 + $0x148] sm:$0xff]  ;;  %v2301_v18 = vld [vmem:[#allocation2 + $0x1b8] sm:$0xff]  ;;  %v2304_v19 = vld [vmem:[#allocation2 + $0x140] sm:$0xff]  ;;  %185 = vmatpush1.msra.mxu1 %v2295_v16 }
  0x12   :  { %115 = vmatprep.subr.mxu0 %v2270_v7  ;;  %v2307_v20 = vld [vmem:[#allocation2 + $0x1b0] sm:$0xff]  ;;  %v2309_v21 = vld [vmem:[#allocation2 + $0x198] sm:$0xff]  ;;  %v2312_v22 = vld [vmem:[#allocation2 + $0x128] sm:$0xff]  ;;  %186 = vmatprep.subr.mxu1 %v2301_v18 }
  0x13   :  { %116 = vmatpush1.msra.mxu0 %v2273_v8  ;;  %v2315_v23 = vld [vmem:[#allocation2 + $0x190] sm:$0xff]  ;;  %v2318_v24 = vld [vmem:[#allocation2 + $0x120] sm:$0xff]  ;;  %187 = vmatpush1.msra.mxu1 %v2307_v20  ;;  %v2321_v25 = vld [vmem:[#allocation2 + $0x178] sm:$0xff] }
  0x14   :  { %117 = vmatprep.subr.mxu0 %v2276_v9  ;;  %v2324_v26 = vld [vmem:[#allocation2 + $0x108] sm:$0xff]  ;;  %188 = vmatprep.subr.mxu1 %v2309_v21  ;;  %v2327_v27 = vld [vmem:[#allocation2 + $0x170] sm:$0xff]  ;;  %v2330_v28 = vld [vmem:[#allocation2 + $0x100] sm:$0xff] }
  0x15   :  { %118 = vmatpush1.msra.mxu0 %v2279_v10  ;;  %189 = vmatpush1.msra.mxu1 %v2315_v23  ;;  %v2333_v29 = vld [vmem:[#allocation2 + $0x158] sm:$0xff]  ;;  %v2336_v30 = vld [vmem:[#allocation2 + $0xe8] sm:$0xff]  ;;  %v2339_v31 = vld [vmem:[#allocation2 + $0x150] sm:$0xff] }
  0x16   :  { %119 = vmatprep.subr.mxu0 %v2284_v12  ;;  %190 = vmatprep.subr.mxu1 %v2321_v25  ;;  %v2342_v32 = vld [vmem:[#allocation2 + $0xe0] sm:$0xff]  ;;  %v2345_v33 = vld [vmem:[#allocation2 + $0x138] sm:$0xff]  ;;  %v2348_v34 = vld [vmem:[#allocation2 + $0xc8] sm:$0xff] }
  0x17   :  { %120 = vmatpush1.msra.mxu0 %v2290_v14  ;;  %191 = vmatpush1.msra.mxu1 %v2327_v27  ;;  %v2351_v35 = vld [vmem:[#allocation2 + $0x130] sm:$0xff]  ;;  %v2354_v36 = vld [vmem:[#allocation2 + $0xc0] sm:$0xff]  ;;  %v2357_v37 = vld [vmem:[#allocation2 + $0x118] sm:$0xff] }
  0x18   :  { %121 = vmatprep.subr.mxu0 %v2298_v17  ;;  %192 = vmatprep.subr.mxu1 %v2333_v29  ;;  %v2360_v38 = vld [vmem:[#allocation2 + $0xa8] sm:$0xff]  ;;  %v2363_v39 = vld [vmem:[#allocation2 + $0x110] sm:$0xff]  ;;  %v2366_v40 = vld [vmem:[#allocation2 + $0xa0] sm:$0xff] }
  0x19   :  { %122 = vmatpush1.msra.mxu0 %v2304_v19  ;;  %193 = vmatpush1.msra.mxu1 %v2339_v31  ;;  %v2369_v41 = vld [vmem:[#allocation2 + $0xf8] sm:$0xff]  ;;  %v2372_v42 = vld [vmem:[#allocation2 + $0x88] sm:$0xff]  ;;  %v2375_v43 = vld [vmem:[#allocation2 + $0xf0] sm:$0xff] }
  0x1a   :  { %123 = vmatprep.subr.mxu0 %v2312_v22  ;;  %194 = vmatprep.subr.mxu1 %v2345_v33  ;;  %v2378_v44 = vld [vmem:[#allocation2 + $0x80] sm:$0xff]  ;;  %v2381_v45 = vld [vmem:[#allocation2 + $0xd8] sm:$0xff]  ;;  %v2384_v46 = vld [vmem:[#allocation2 + $0x68] sm:$0xff] }
  0x1b   :  { %124 = vmatpush1.msra.mxu0 %v2318_v24  ;;  %195 = vmatpush1.msra.mxu1 %v2351_v35  ;;  %3257 = vst [vmem:[#allocation14_spill] sm:$0xff] %v2378_v44  ;;  %3258 = vst [vmem:[#allocation15_spill] sm:$0xff] %v2384_v46  ;;  %v2387_v47 = vld [vmem:[#allocation2 + $0xd0] sm:$0xff]  ;;  %v2390_v48 = vld [vmem:[#allocation2 + $0x60] sm:$0xff] }
  0x1c   :  { %125 = vmatprep.subr.mxu0 %v2324_v26  ;;  %196 = vmatprep.subr.mxu1 %v2357_v37  ;;  %3259 = vst [vmem:[#allocation16_spill] sm:$0xff] %v2390_v48  ;;  %v2393_v49 = vld [vmem:[#allocation2 + $0xb8] sm:$0xff]  ;;  %v2396_v50 = vld [vmem:[#allocation2 + $0x48] sm:$0xff]  ;;  %v2399_v51 = vld [vmem:[#allocation2 + $0xb0] sm:$0xff] }
  0x1d   :  { %126 = vmatpush1.msra.mxu0 %v2330_v28  ;;  %197 = vmatpush1.msra.mxu1 %v2363_v39  ;;  %3260 = vst [vmem:[#allocation17_spill] sm:$0xff] %v2396_v50  ;;  %v2402_v52 = vld [vmem:[#allocation2 + $0x40] sm:$0xff]  ;;  %v2405_v53 = vld [vmem:[#allocation2 + $0x98] sm:$0xff]  ;;  %v2408_v54 = vld [vmem:[#allocation2 + $0x28] sm:$0xff] }
  0x1e   :  { %127 = vmatprep.subr.mxu0 %v2336_v30  ;;  %198 = vmatprep.subr.mxu1 %v2369_v41  ;;  %3261 = vst [vmem:[#allocation18_spill] sm:$0xff] %v2402_v52  ;;  %3262 = vst [vmem:[#allocation19_spill] sm:$0xff] %v2408_v54  ;;  %v2411_v55 = vld [vmem:[#allocation2 + $0x90] sm:$0xff]  ;;  %v2414_v56 = vld [vmem:[#allocation2 + $0x20] sm:$0xff] }
  0x1f   :  { %128 = vmatpush1.msra.mxu0 %v2342_v32  ;;  %199 = vmatpush1.msra.mxu1 %v2375_v43  ;;  %3263 = vst [vmem:[#allocation20_spill] sm:$0xff] %v2411_v55  ;;  %3264 = vst [vmem:[#allocation21_spill] sm:$0xff] %v2414_v56  ;;  %v2417_v57 = vld [vmem:[#allocation2 + $0x78] sm:$0xff]  ;;  %v2420_v58 = vld [vmem:[#allocation2 + $0x8] sm:$0xff] }
  0x20   :  { %129 = vmatprep.subr.mxu0 %v2348_v34  ;;  %200 = vmatprep.subr.mxu1 %v2381_v45  ;;  %3265 = vst [vmem:[#allocation22_spill] sm:$0xff] %v2417_v57  ;;  %3266 = vst [vmem:[#allocation23_spill] sm:$0xff] %v2420_v58  ;;  %v2423_v59 = vld [vmem:[#allocation2 + $0x70] sm:$0xff]  ;;  %v2426_v60 = vld [vmem:[#allocation2] sm:$0xff] }
  0x21   :  { %130 = vmatpush1.msra.mxu0 %v2354_v36  ;;  %201 = vmatpush1.msra.mxu1 %v2387_v47  ;;  %3267 = vst [vmem:[#allocation24_spill] sm:$0xff] %v2423_v59  ;;  %3268 = vst [vmem:[#allocation25_spill] sm:$0xff] %v2426_v60  ;;  %v2429_v61 = vld [vmem:[#allocation2 + $0x58] sm:$0xff]  ;;  %v2433_v62 = vld [vmem:[#allocation2 + $0x50] sm:$0xff] }
  0x22   :  { %131 = vmatprep.subr.mxu0 %v2360_v38  ;;  %202 = vmatprep.subr.mxu1 %v2393_v49  ;;  %3269 = vst [vmem:[#allocation26_spill] sm:$0xff] %v2429_v61  ;;  %3270 = vst [vmem:[#allocation27_spill] sm:$0xff] %v2433_v62  ;;  %v2437_v63 = vld [vmem:[#allocation2 + $0x38] sm:$0xff]  ;;  %v2441_v2 = vld [vmem:[#allocation2 + $0x30] sm:$0xff] }
  0x23   :  { %132 = vmatpush1.msra.mxu0 %v2366_v40  ;;  %203 = vmatpush1.msra.mxu1 %v2399_v51  ;;  %3271 = vst [vmem:[#allocation28_spill] sm:$0xff] %v2437_v63  ;;  %3272 = vst [vmem:[#allocation29_spill] sm:$0xff] %v2441_v2  ;;  %v2445_v1 = vld [vmem:[#allocation2 + $0x18] sm:$0xff] }
  0x24   :  { %133 = vmatprep.subr.mxu0 %v2372_v42  ;;  %204 = vmatprep.subr.mxu1 %v2405_v53  ;;  %3273 = vst [vmem:[#allocation30_spill] sm:$0xff] %v2445_v1 }
  0x25   :  { %134 = vmatpush1.msra.mxu0 %v2378_v44  ;;  %205 = vmatpush1.msra.mxu1 %v2411_v55 }
  0x26   :  { %135 = vmatprep.subr.mxu0 %v2384_v46  ;;  %206 = vmatprep.subr.mxu1 %v2417_v57 }
  0x27   :  { %136 = vmatpush1.msra.mxu0 %v2390_v48  ;;  %207 = vmatpush1.msra.mxu1 %v2423_v59 }
  0x28   :  { %137 = vmatprep.subr.mxu0 %v2396_v50  ;;  %208 = vmatprep.subr.mxu1 %v2429_v61 }
  0x29   :  { %138 = vmatpush1.msra.mxu0 %v2402_v52  ;;  %209 = vmatpush1.msra.mxu1 %v2433_v62 }
  0x2a   :  { %139 = vmatprep.subr.mxu0 %v2408_v54  ;;  %210 = vmatprep.subr.mxu1 %v2437_v63 }
  0x2b   :  { %140 = vmatpush1.msra.mxu0 %v2414_v56  ;;  %v2448_v56 = vld [vmem:[#allocation2 + $0x10] sm:$0xff]  ;;  %211 = vmatpush1.msra.mxu1 %v2441_v2 }
  0x2c   :  { %141 = vmatprep.subr.mxu0 %v2420_v58  ;;  %3274 = vst [vmem:[#allocation31_spill] sm:$0xff] %v2448_v56  ;;  %212 = vmatprep.subr.mxu1 %v2445_v1 }
  0x2d   :  { %142 = vmatpush1.msra.mxu0 %v2426_v60  ;;  %213 = vmatpush1.msra.mxu1 %v2448_v56 }
  0x2e   :  { %176 = vmatmul.mubr.f32.vlgmr.msra.gmra.mxu0 %v2248_v0  ;;  %351 = vmatprep.subr.mxu0 %v2260_v3 }
  0x2f   :  { %352 = vmatpush1.msra.mxu0 %v2262_v4  ;;  %247 = vmatmul.mubr.f32.vlgmr.msra.gmra.mxu1 %v2248_v0  ;;  %v3275_v0 = vld [vmem:[#allocation21_spill] sm:$0xff] }
  0x30   :  { %353 = vmatprep.subr.mxu0 %v2264_v5  ;;  %422 = vmatprep.subr.mxu1 %v2281_v11 }
  0x31   :  { %354 = vmatpush1.msra.mxu0 %v2267_v6  ;;  %423 = vmatpush1.msra.mxu1 %v2287_v13 }
  0x32   :  { %355 = vmatprep.subr.mxu0 %v2270_v7  ;;  %424 = vmatprep.subr.mxu1 %v2293_v15 }
  0x33   :  { %356 = vmatpush1.msra.mxu0 %v2273_v8  ;;  %425 = vmatpush1.msra.mxu1 %v2295_v16 }
  0x34   :  { %357 = vmatprep.subr.mxu0 %v2276_v9  ;;  %426 = vmatprep.subr.mxu1 %v2301_v18 }
  0x35   :  { %358 = vmatpush1.msra.mxu0 %v2279_v10  ;;  %427 = vmatpush1.msra.mxu1 %v2307_v20 }
  0x36   :  { %359 = vmatprep.subr.mxu0 %v2284_v12  ;;  %428 = vmatprep.subr.mxu1 %v2309_v21 }
  0x37   :  { %360 = vmatpush1.msra.mxu0 %v2290_v14  ;;  %429 = vmatpush1.msra.mxu1 %v2315_v23 }
  0x38   :  { %361 = vmatprep.subr.mxu0 %v2298_v17  ;;  %430 = vmatprep.subr.mxu1 %v2321_v25 }
  0x39   :  { %362 = vmatpush1.msra.mxu0 %v2304_v19  ;;  %431 = vmatpush1.msra.mxu1 %v2327_v27 }
  0x3a   :  { %363 = vmatprep.subr.mxu0 %v2312_v22  ;;  %432 = vmatprep.subr.mxu1 %v2333_v29 }
  0x3b   :  { %364 = vmatpush1.msra.mxu0 %v2318_v24  ;;  %433 = vmatpush1.msra.mxu1 %v2339_v31 }
  0x3c   :  { %365 = vmatprep.subr.mxu0 %v2324_v26  ;;  %434 = vmatprep.subr.mxu1 %v2345_v33 }
  0x3d   :  { %366 = vmatpush1.msra.mxu0 %v2330_v28  ;;  %435 = vmatpush1.msra.mxu1 %v2351_v35 }
  0x3e   :  { %367 = vmatprep.subr.mxu0 %v2336_v30  ;;  %436 = vmatprep.subr.mxu1 %v2357_v37 }
  0x3f   :  { %368 = vmatpush1.msra.mxu0 %v2342_v32  ;;  %437 = vmatpush1.msra.mxu1 %v2363_v39 }
  0x40   :  { %369 = vmatprep.subr.mxu0 %v2348_v34  ;;  %438 = vmatprep.subr.mxu1 %v2369_v41 }
  0x41   :  { %370 = vmatpush1.msra.mxu0 %v2354_v36  ;;  %439 = vmatpush1.msra.mxu1 %v2375_v43 }
  0x42   :  { %371 = vmatprep.subr.mxu0 %v2360_v38  ;;  %440 = vmatprep.subr.mxu1 %v2381_v45 }
  0x43   :  { %372 = vmatpush1.msra.mxu0 %v2366_v40  ;;  %441 = vmatpush1.msra.mxu1 %v2387_v47 }
  0x44   :  { %373 = vmatprep.subr.mxu0 %v2372_v42  ;;  %442 = vmatprep.subr.mxu1 %v2393_v49 }
  0x45   :  { %374 = vmatpush1.msra.mxu0 %v2378_v44  ;;  %443 = vmatpush1.msra.mxu1 %v2399_v51 }
  0x46   :  { %375 = vmatprep.subr.mxu0 %v2384_v46  ;;  %444 = vmatprep.subr.mxu1 %v2405_v53 }
  0x47   :  { %376 = vmatpush1.msra.mxu0 %v2390_v48  ;;  %445 = vmatpush1.msra.mxu1 %v2411_v55 }
  0x48   :  { %377 = vmatprep.subr.mxu0 %v2396_v50  ;;  %446 = vmatprep.subr.mxu1 %v2417_v57  ;;  %v3276_v50 = vmov 0.0   ;;  %v3277_v57 = vld [vmem:[#allocation11_spill] sm:$0xff] }
  0x49   :  { %378 = vmatpush1.msra.mxu0 %v2402_v52  ;;  %447 = vmatpush1.msra.mxu1 %v2423_v59 }
  0x4a   :  { %379 = vmatprep.subr.mxu0 %v2408_v54  ;;  %448 = vmatprep.subr.mxu1 %v2429_v61 }
  0x4b   :  { %380 = vmatpush1.msra.mxu0 %v3275_v0  ;;  %449 = vmatpush1.msra.mxu1 %v2433_v62  ;;  %v45_v62 = vld [vmem:[%s3176_s0 + $0x10] sm:$0xff] }
  0x4c   :  { %381 = vmatprep.subr.mxu0 %v2420_v58  ;;  %450 = vmatprep.subr.mxu1 %v2437_v63  ;;  %v43_v58 = vld [vmem:[%s3176_s0] sm:$0xff] }
  0x4d   :  { %382 = vmatpush1.msra.mxu0 %v2426_v60  ;;  %451 = vmatpush1.msra.mxu1 %v2441_v2  ;;  %v44_v60 = vld [vmem:[%s3176_s0 + $0x8] sm:$0xff] }
  0x4e   :  { %415 = vmatprep.mubr.f32.mxu0 %v3276_v50  ;;  %452 = vmatprep.subr.mxu1 %v2445_v1 }
  0x4f   :  { %486 = vmatprep.mubr.f32.mxu1 %v3276_v50  ;;  %453 = vmatpush1.msra.mxu1 %v2448_v56 }
  0x50   :  { %592 = vmatprep.subr.mxu0 %v2260_v3  ;;  %663 = vmatprep.subr.mxu1 %v2281_v11  ;;  %v46_v11 = vld [vmem:[%s3176_s0 + $0x18] sm:$0xff] }
  0xee   :  { %v177_v0 = vpop.f32.mrf.mxu0 }
  0xef   :  { %v253_v2 = vadd.f32 %v177_v0, %v43_v58  ;;  %v248_v56 = vpop.f32.mrf.mxu1 }
  0xf0   :  { %v179_v63 = vpop.f32.mrf.mxu0  ;;  %v255_v61 = vadd.f32 %v248_v56, %v45_v62  ;;  %v3291_v56 = vld [vmem:[#allocation29_spill] sm:$0xff]  ;;  %v3295_v62 = vmov 0.0  }
  0xf1   :  { %v1996_v1 = vmul.f32 -1.442695, %v253_v2  ;;  %v254_v54 = vadd.f32 %v179_v63, %v44_v60  ;;  %v250_v3 = vpop.f32.mrf.mxu1 }
  0xf2   :  { %v256_v52 = vadd.f32 %v250_v3, %v46_v11 }
  0xf3   :  { %2058 = vpow2.f32 %v1996_v1  ;;  %v1997_v50 = vmul.f32 -1.442695, %v254_v54 }
  0xf4   :  { %v1998_v59 = vmul.f32 -1.442695, %v256_v52 }
  0xf5   :  { %2060 = vpow2.f32 %v1997_v50 }
  0xf6   :  { %2062 = vtanh.f32 %v255_v61  ;;  %v3294_v61 = vld [vmem:[#allocation25_spill] sm:$0xff] }
  0xf7   :  { %2064 = vpow2.f32 %v1998_v59  ;;  %v3293_v59 = vld [vmem:[#allocation30_spill] sm:$0xff] }
 0x100   :  { %v2059_v58 = vpop.eup %2058 }
 0x101   :  { %v260_v0 = vadd.f32 1.0, %v2059_v58  ;;  %v3296_v58 = vld [vmem:[#allocation31_spill] sm:$0xff] }
 0x102   :  { %v2061_v2 = vpop.eup %2060 }
 0x103   :  { %2066 = vrcp.f32 %v260_v0  ;;  %v266_v1 = vadd.f32 1.0, %v2061_v2  ;;  %v2063_v50 = vpop.eup %2062  ;;  %v3297_v0 = vld [vmem:[#allocation12_spill] sm:$0xff]  ;;  %v3298_v2 = vld [vmem:[#allocation13_spill] sm:$0xff] }
 0x104   :  { %v2065_v54 = vpop.eup %2064 }
 0x105   :  { %2068 = vrcp.f32 %v266_v1  ;;  %v273_v48 = vadd.f32 1.0, %v2065_v54  ;;  %v1999_v1 = vld [vmem:[%s3176_s0 + $0x20] sm:$0xff]  ;;  %v2000_v54 = vld [vmem:[%s3176_s0 + $0x28] sm:$0xff] }
 0x107   :  { %2070 = vrcp.f32 %v273_v48  ;;  %v3289_v48 = vld [vmem:[#allocation28_spill] sm:$0xff] }
 0x110   :  { %v2067_v60 = vpop.eup %2066 }
 0x111   :  { %v277_v55 = vmul.f32 %v2067_v60, %v2063_v50 }
 0x112   :  { %v2069_v63 = vpop.eup %2068 }
 0x113   :  { %v276_v46 = vmul.f32 %v2069_v63, %v3277_v57  ;;  %v3292_v57 = vld [vmem:[#allocation23_spill] sm:$0xff] }
 0x114   :  { %v2071_v3 = vpop.eup %2070 }
 0x115   :  { %v2535_v44 = vadd.f32 %v277_v55, %v276_v46  ;;  %v3288_v46 = vld [vmem:[#allocation19_spill] sm:$0xff]  ;;  %v3290_v55 = vld [vmem:[#allocation21_spill] sm:$0xff] }
 0x117   :  { %2072 = vtanh.f32 %v2535_v44 }
 0x124   :  { %v2073_v11 = vpop.eup %2072 }
 0x125   :  { %v280_v52 = vmul.f32 %v2073_v11, %v2071_v3 }
 0x127   :  { %281 = vst [vmem:[%s3180_s4] sm:$0xff] %v280_v52  ;;  %416 = vmatmul.mubr.f32.vlgmr.msra.gmra.mxu0 %v280_v52  ;;  %487 = vmatmul.mubr.f32.vlgmr.msra.gmra.mxu1 %v280_v52 }
 0x128   :  { %593 = vmatpush1.msra.mxu0 %v2262_v4  ;;  %664 = vmatpush1.msra.mxu1 %v2287_v13 }
 0x129   :  { %594 = vmatprep.subr.mxu0 %v2264_v5  ;;  %665 = vmatprep.subr.mxu1 %v2293_v15 }
 0x12a   :  { %595 = vmatpush1.msra.mxu0 %v2267_v6  ;;  %666 = vmatpush1.msra.mxu1 %v2295_v16 }
 0x12b   :  { %596 = vmatprep.subr.mxu0 %v2270_v7  ;;  %667 = vmatprep.subr.mxu1 %v2301_v18 }
 0x12c   :  { %597 = vmatpush1.msra.mxu0 %v2273_v8  ;;  %668 = vmatpush1.msra.mxu1 %v2307_v20 }
 0x12d   :  { %598 = vmatprep.subr.mxu0 %v2276_v9  ;;  %669 = vmatprep.subr.mxu1 %v2309_v21 }
 0x12e   :  { %599 = vmatpush1.msra.mxu0 %v2279_v10  ;;  %670 = vmatpush1.msra.mxu1 %v2315_v23 }
 0x12f   :  { %600 = vmatprep.subr.mxu0 %v2284_v12  ;;  %671 = vmatprep.subr.mxu1 %v2321_v25 }
 0x130   :  { %601 = vmatpush1.msra.mxu0 %v2290_v14  ;;  %672 = vmatpush1.msra.mxu1 %v2327_v27 }
 0x131   :  { %602 = vmatprep.subr.mxu0 %v2298_v17  ;;  %673 = vmatprep.subr.mxu1 %v2333_v29 }
 0x132   :  { %603 = vmatpush1.msra.mxu0 %v2304_v19  ;;  %674 = vmatpush1.msra.mxu1 %v2339_v31 }
 0x133   :  { %604 = vmatprep.subr.mxu0 %v2312_v22  ;;  %675 = vmatprep.subr.mxu1 %v2345_v33 }
 0x134   :  { %605 = vmatpush1.msra.mxu0 %v2318_v24  ;;  %676 = vmatpush1.msra.mxu1 %v2351_v35  ;;  %v3278_v24 = vld [vmem:[#allocation14_spill] sm:$0xff] }
 0x135   :  { %606 = vmatprep.subr.mxu0 %v2324_v26  ;;  %677 = vmatprep.subr.mxu1 %v2357_v37  ;;  %v3279_v26 = vld [vmem:[#allocation20_spill] sm:$0xff] }
 0x136   :  { %607 = vmatpush1.msra.mxu0 %v2330_v28  ;;  %678 = vmatpush1.msra.mxu1 %v2363_v39  ;;  %v3280_v28 = vld [vmem:[#allocation15_spill] sm:$0xff] }
 0x137   :  { %608 = vmatprep.subr.mxu0 %v2336_v30  ;;  %679 = vmatprep.subr.mxu1 %v2369_v41  ;;  %v3281_v30 = vld [vmem:[#allocation22_spill] sm:$0xff] }
 0x138   :  { %609 = vmatpush1.msra.mxu0 %v2342_v32  ;;  %680 = vmatpush1.msra.mxu1 %v2375_v43  ;;  %v3282_v32 = vld [vmem:[#allocation16_spill] sm:$0xff] }
 0x139   :  { %610 = vmatprep.subr.mxu0 %v2348_v34  ;;  %681 = vmatprep.subr.mxu1 %v2381_v45  ;;  %v3283_v34 = vld [vmem:[#allocation24_spill] sm:$0xff] }
 0x13a   :  { %611 = vmatpush1.msra.mxu0 %v2354_v36  ;;  %682 = vmatpush1.msra.mxu1 %v2387_v47  ;;  %v3284_v36 = vld [vmem:[#allocation17_spill] sm:$0xff] }
 0x13b   :  { %612 = vmatprep.subr.mxu0 %v2360_v38  ;;  %683 = vmatprep.subr.mxu1 %v2393_v49  ;;  %v3285_v38 = vld [vmem:[#allocation26_spill] sm:$0xff] }
 0x13c   :  { %613 = vmatpush1.msra.mxu0 %v2366_v40  ;;  %684 = vmatpush1.msra.mxu1 %v2399_v51  ;;  %v3286_v40 = vld [vmem:[#allocation18_spill] sm:$0xff] }
 0x13d   :  { %614 = vmatprep.subr.mxu0 %v2372_v42  ;;  %685 = vmatprep.subr.mxu1 %v2405_v53  ;;  %v3287_v42 = vld [vmem:[#allocation27_spill] sm:$0xff] }
 0x13e   :  { %615 = vmatpush1.msra.mxu0 %v3278_v24  ;;  %686 = vmatpush1.msra.mxu1 %v3279_v26 }
 0x13f   :  { %616 = vmatprep.subr.mxu0 %v3280_v28  ;;  %687 = vmatprep.subr.mxu1 %v3281_v30  ;;  %v2002_v28 = vld [vmem:[%s3176_s0 + $0x38] sm:$0xff] }
 0x140   :  { %617 = vmatpush1.msra.mxu0 %v3282_v32  ;;  %688 = vmatpush1.msra.mxu1 %v3283_v34 }
 0x141   :  { %618 = vmatprep.subr.mxu0 %v3284_v36  ;;  %689 = vmatprep.subr.mxu1 %v3285_v38 }
 0x142   :  { %619 = vmatpush1.msra.mxu0 %v3286_v40  ;;  %690 = vmatpush1.msra.mxu1 %v3287_v42  ;;  %v2001_v40 = vld [vmem:[%s3176_s0 + $0x30] sm:$0xff] }
 0x143   :  { %620 = vmatprep.subr.mxu0 %v3288_v46  ;;  %691 = vmatprep.subr.mxu1 %v3289_v48 }
 0x144   :  { %621 = vmatpush1.msra.mxu0 %v3290_v55  ;;  %692 = vmatpush1.msra.mxu1 %v3291_v56 }
 0x145   :  { %622 = vmatprep.subr.mxu0 %v3292_v57  ;;  %693 = vmatprep.subr.mxu1 %v3293_v59 }
 0x146   :  { %623 = vmatpush1.msra.mxu0 %v3294_v61  ;;  %656 = vmatprep.mubr.f32.mxu0 %v3295_v62 }
 0x147   :  { %694 = vmatpush1.msra.mxu1 %v3296_v58  ;;  %727 = vmatprep.mubr.f32.mxu1 %v3295_v62 }
 0x148   :  { %833 = vmatprep.subr.mxu0 %v3297_v0  ;;  %904 = vmatprep.subr.mxu1 %v3298_v2 }
 0x1e7   :  { %v417_v50 = vpop.f32.mrf.mxu0  ;;  %v488_v52 = vpop.f32.mrf.mxu1 }
 0x1e8   :  { %v493_v60 = vadd.f32 %v1999_v1, %v417_v50  ;;  %v495_v57 = vadd.f32 %v2001_v40, %v488_v52 }
 0x1e9   :  { %v419_v63 = vpop.f32.mrf.mxu0  ;;  %v490_v32 = vpop.f32.mrf.mxu1 }
 0x1ea   :  { %v2003_v3 = vmul.f32 -1.442695, %v493_v60  ;;  %v494_v11 = vadd.f32 %v2000_v54, %v419_v63  ;;  %v496_v36 = vadd.f32 %v2002_v28, %v490_v32 }
 0x1ec   :  { %2074 = vpow2.f32 %v2003_v3  ;;  %v2004_v24 = vmul.f32 -1.442695, %v494_v11  ;;  %v2005_v46 = vmul.f32 -1.442695, %v496_v36 }
 0x1ee   :  { %2076 = vpow2.f32 %v2004_v24 }
 0x1ef   :  { %2078 = vpow2.f32 %v2005_v46 }
 0x1f9   :  { %v2075_v55 = vpop.eup %2074 }
 0x1fa   :  { %v500_v61 = vadd.f32 1.0, %v2075_v55 }
 0x1fb   :  { %v2077_v0 = vpop.eup %2076 }
 0x1fc   :  { %2080 = vrcp.f32 %v500_v61  ;;  %v506_v2 = vadd.f32 1.0, %v2077_v0  ;;  %v2079_v1 = vpop.eup %2078  ;;  %v2749_v61 = vld [vmem:[#allocation2 + $0x1e8] sm:$0xff]  ;;  %v2751_v0 = vld [vmem:[#allocation2 + $0x1f8] sm:$0xff] }
 0x1fd   :  { %2082 = vtanh.f32 %v495_v57  ;;  %v513_v63 = vadd.f32 1.0, %v2079_v1  ;;  %3307 = vst [vmem:[#allocation26_spill] sm:$0xff] %v2749_v61  ;;  %3308 = vst [vmem:[#allocation18_spill] sm:$0xff] %v2751_v0  ;;  %v2757_v1 = vld [vmem:[#allocation2 + $0x1f0] sm:$0xff] }
 0x1fe   :  { %2084 = vrcp.f32 %v506_v2  ;;  %v2755_v2 = vld [vmem:[#allocation2 + $0x1e0] sm:$0xff] }
 0x1ff   :  { %2086 = vrcp.f32 %v513_v63  ;;  %v2769_v63 = vld [vmem:[#allocation2 + $0x1d0] sm:$0xff] }
 0x209   :  { %v2081_v50 = vpop.eup %2080 }
 0x20a   :  { %v2083_v54 = vpop.eup %2082 }
 0x20b   :  { %v2085_v60 = vpop.eup %2084  ;;  %v517_v3 = vmul.f32 %v2083_v54, %v2081_v50  ;;  %v2761_v50 = vld [vmem:[#allocation2 + $0x1c8] sm:$0xff]  ;;  %v2763_v54 = vld [vmem:[#allocation2 + $0x1d8] sm:$0xff] }
 0x20c   :  { %v516_v11 = vmul.f32 %v2085_v60, %v2535_v44  ;;  %v2087_v52 = vpop.eup %2086  ;;  %v2767_v60 = vld [vmem:[#allocation2 + $0x1c0] sm:$0xff] }
 0x20e   :  { %v2620_v24 = vadd.f32 %v517_v3, %v516_v11  ;;  %v2773_v3 = vld [vmem:[#allocation2 + $0x1a8] sm:$0xff]  ;;  %v2775_v11 = vld [vmem:[#allocation2 + $0x1b8] sm:$0xff] }
 0x210   :  { %2088 = vtanh.f32 %v2620_v24 }
 0x21d   :  { %v2089_v28 = vpop.eup %2088 }
 0x21e   :  { %v520_v32 = vmul.f32 %v2089_v28, %v2087_v52  ;;  %v2781_v52 = vld [vmem:[#allocation2 + $0x1b0] sm:$0xff]  ;;  %v2785_v28 = vld [vmem:[#allocation2 + $0x188] sm:$0xff] }
 0x220   :  { %2006 = vst [vmem:[%s3180_s4 + $0x8] sm:$0xff] %v520_v32  ;;  %657 = vmatmul.mubr.f32.vlgmr.msra.gmra.mxu0 %v520_v32  ;;  %728 = vmatmul.mubr.f32.vlgmr.msra.gmra.mxu1 %v520_v32  ;;  %v2787_v32 = vld [vmem:[#allocation2 + $0x198] sm:$0xff] }
 0x221   :  { %834 = vmatpush1.msra.mxu0 %v2262_v4  ;;  %905 = vmatpush1.msra.mxu1 %v2287_v13  ;;  %v2671_v4 = vld [vmem:[#allocation2 + $0x120] sm:$0xff] }
 0x222   :  { %835 = vmatprep.subr.mxu0 %v2264_v5  ;;  %906 = vmatprep.subr.mxu1 %v2293_v15  ;;  %v2674_v5 = vld [vmem:[#allocation2 + $0x108] sm:$0xff]  ;;  %v2693_v13 = vld [vmem:[#allocation2 + $0xa0] sm:$0xff] }
 0x223   :  { %836 = vmatpush1.msra.mxu0 %v2267_v6  ;;  %907 = vmatpush1.msra.mxu1 %v2295_v16  ;;  %v2676_v6 = vld [vmem:[#allocation2 + $0x100] sm:$0xff]  ;;  %v2702_v16 = vld [vmem:[#allocation2 + $0x68] sm:$0xff] }
 0x224   :  { %837 = vmatprep.subr.mxu0 %v2270_v7  ;;  %908 = vmatprep.subr.mxu1 %v2301_v18  ;;  %v2678_v7 = vld [vmem:[#allocation2 + $0xe8] sm:$0xff]  ;;  %v2699_v15 = vld [vmem:[#allocation2 + $0x80] sm:$0xff]  ;;  %3299 = vst [vmem:[#allocation11_spill] sm:$0xff] %v2702_v16 }
 0x225   :  { %838 = vmatpush1.msra.mxu0 %v2273_v8  ;;  %909 = vmatpush1.msra.mxu1 %v2307_v20  ;;  %v2681_v8 = vld [vmem:[#allocation2 + $0xe0] sm:$0xff]  ;;  %v2708_v18 = vld [vmem:[#allocation2 + $0x48] sm:$0xff] }
 0x226   :  { %839 = vmatprep.subr.mxu0 %v2276_v9  ;;  %910 = vmatprep.subr.mxu1 %v2309_v21  ;;  %v2684_v9 = vld [vmem:[#allocation2 + $0xc8] sm:$0xff]  ;;  %3301 = vst [vmem:[#allocation20_spill] sm:$0xff] %v2708_v18  ;;  %v2717_v21 = vld [vmem:[#allocation2 + $0x20] sm:$0xff] }
 0x227   :  { %840 = vmatpush1.msra.mxu0 %v2279_v10  ;;  %911 = vmatpush1.msra.mxu1 %v2315_v23  ;;  %v2687_v10 = vld [vmem:[#allocation2 + $0xc0] sm:$0xff]  ;;  %v2714_v20 = vld [vmem:[#allocation2 + $0x28] sm:$0xff]  ;;  %3304 = vst [vmem:[#allocation16_spill] sm:$0xff] %v2717_v21 }
 0x228   :  { %841 = vmatprep.subr.mxu0 %v2284_v12  ;;  %912 = vmatprep.subr.mxu1 %v2321_v25  ;;  %v2690_v12 = vld [vmem:[#allocation2 + $0xa8] sm:$0xff]  ;;  %3303 = vst [vmem:[#allocation22_spill] sm:$0xff] %v2714_v20  ;;  %v2723_v23 = vld [vmem:[#allocation2] sm:$0xff] }
 0x229   :  { %842 = vmatpush1.msra.mxu0 %v2290_v14  ;;  %913 = vmatpush1.msra.mxu1 %v2327_v27  ;;  %v2696_v14 = vld [vmem:[#allocation2 + $0x88] sm:$0xff]  ;;  %3306 = vst [vmem:[#allocation17_spill] sm:$0xff] %v2723_v23  ;;  %v2007_v25 = vld [vmem:[%s3176_s0 + $0x40] sm:$0xff] }
 0x22a   :  { %843 = vmatprep.subr.mxu0 %v2298_v17  ;;  %914 = vmatprep.subr.mxu1 %v2333_v29  ;;  %v2705_v17 = vld [vmem:[#allocation2 + $0x60] sm:$0xff]  ;;  %v2008_v29 = vld [vmem:[%s3176_s0 + $0x48] sm:$0xff] }
 0x22b   :  { %844 = vmatpush1.msra.mxu0 %v2304_v19  ;;  %915 = vmatpush1.msra.mxu1 %v2339_v31  ;;  %3300 = vst [vmem:[#allocation14_spill] sm:$0xff] %v2705_v17  ;;  %v2711_v19 = vld [vmem:[#allocation2 + $0x40] sm:$0xff] }
 0x22c   :  { %845 = vmatprep.subr.mxu0 %v2312_v22  ;;  %916 = vmatprep.subr.mxu1 %v2345_v33  ;;  %3302 = vst [vmem:[#allocation15_spill] sm:$0xff] %v2711_v19  ;;  %v2720_v22 = vld [vmem:[#allocation2 + $0x8] sm:$0xff] }
 0x22d   :  { %917 = vmatpush1.msra.mxu1 %v2351_v35  ;;  %897 = vmatprep.mubr.f32.mxu0 %v3295_v62  ;;  %3305 = vst [vmem:[#allocation24_spill] sm:$0xff] %v2720_v22 }
 0x22e   :  { %918 = vmatprep.subr.mxu1 %v2357_v37  ;;  %968 = vmatprep.mubr.f32.mxu1 %v3295_v62 }
 0x22f   :  { %919 = vmatpush1.msra.mxu1 %v2363_v39  ;;  %846 = vmatpush1.msra.mxu0 %v2671_v4 }
 0x230   :  { %920 = vmatprep.subr.mxu1 %v2369_v41  ;;  %847 = vmatprep.subr.mxu0 %v2674_v5 }
 0x231   :  { %921 = vmatpush1.msra.mxu1 %v2375_v43  ;;  %848 = vmatpush1.msra.mxu0 %v2676_v6  ;;  %v2010_v43 = vld [vmem:[%s3176_s0 + $0x58] sm:$0xff] }
 0x232   :  { %922 = vmatprep.subr.mxu1 %v2381_v45  ;;  %849 = vmatprep.subr.mxu0 %v2678_v7 }
 0x233   :  { %923 = vmatpush1.msra.mxu1 %v2387_v47  ;;  %850 = vmatpush1.msra.mxu0 %v2681_v8  ;;  %v2009_v47 = vld [vmem:[%s3176_s0 + $0x50] sm:$0xff] }
 0x234   :  { %924 = vmatprep.subr.mxu1 %v2393_v49  ;;  %851 = vmatprep.subr.mxu0 %v2684_v9 }
 0x235   :  { %925 = vmatpush1.msra.mxu1 %v2399_v51  ;;  %852 = vmatpush1.msra.mxu0 %v2687_v10 }
 0x236   :  { %926 = vmatprep.subr.mxu1 %v2405_v53  ;;  %853 = vmatprep.subr.mxu0 %v2690_v12 }
 0x237   :  { %927 = vmatpush1.msra.mxu1 %v3279_v26  ;;  %854 = vmatpush1.msra.mxu0 %v2693_v13 }
 0x238   :  { %928 = vmatprep.subr.mxu1 %v3281_v30  ;;  %855 = vmatprep.subr.mxu0 %v2696_v14 }
 0x239   :  { %929 = vmatpush1.msra.mxu1 %v3283_v34  ;;  %856 = vmatpush1.msra.mxu0 %v2699_v15 }
 0x23a   :  { %930 = vmatprep.subr.mxu1 %v3285_v38  ;;  %857 = vmatprep.subr.mxu0 %v2702_v16 }
 0x23b   :  { %931 = vmatpush1.msra.mxu1 %v3287_v42  ;;  %858 = vmatpush1.msra.mxu0 %v2705_v17 }
 0x23c   :  { %932 = vmatprep.subr.mxu1 %v3289_v48  ;;  %859 = vmatprep.subr.mxu0 %v2708_v18 }
 0x23d   :  { %933 = vmatpush1.msra.mxu1 %v3291_v56  ;;  %860 = vmatpush1.msra.mxu0 %v2711_v19 }
 0x23e   :  { %934 = vmatprep.subr.mxu1 %v3293_v59  ;;  %861 = vmatprep.subr.mxu0 %v2714_v20 }
 0x23f   :  { %935 = vmatpush1.msra.mxu1 %v3296_v58  ;;  %862 = vmatpush1.msra.mxu0 %v2717_v21 }
 0x240   :  { %863 = vmatprep.subr.mxu0 %v2720_v22  ;;  %1145 = vmatprep.subr.mxu1 %v2751_v0 }
 0x241   :  { %864 = vmatpush1.msra.mxu0 %v2723_v23 }
 0x242   :  { %1074 = vmatprep.subr.mxu0 %v2749_v61 }
 0x2e0   :  { %v658_v27 = vpop.f32.mrf.mxu0  ;;  %v729_v39 = vpop.f32.mrf.mxu1 }
 0x2e1   :  { %v734_v31 = vadd.f32 %v2007_v25, %v658_v27  ;;  %v736_v53 = vadd.f32 %v2009_v47, %v729_v39  ;;  %v2791_v25 = vld [vmem:[#allocation2 + $0x180] sm:$0xff]  ;;  %v2793_v27 = vld [vmem:[#allocation2 + $0x190] sm:$0xff]  ;;  %v2811_v39 = vld [vmem:[#allocation2 + $0x158] sm:$0xff] }
 0x2e2   :  { %v660_v33 = vpop.f32.mrf.mxu0  ;;  %v731_v44 = vpop.f32.mrf.mxu1  ;;  %v2827_v47 = vld [vmem:[#allocation2 + $0x130] sm:$0xff] }
 0x2e3   :  { %v2011_v35 = vmul.f32 -1.442695, %v734_v31  ;;  %v735_v37 = vadd.f32 %v2008_v29, %v660_v33  ;;  %v737_v45 = vadd.f32 %v2010_v43, %v731_v44  ;;  %v2797_v29 = vld [vmem:[#allocation2 + $0x168] sm:$0xff]  ;;  %v2799_v31 = vld [vmem:[#allocation2 + $0x178] sm:$0xff]  ;;  %v2803_v33 = vld [vmem:[#allocation2 + $0x160] sm:$0xff] }
 0x2e4   :  { %v2817_v43 = vld [vmem:[#allocation2 + $0x150] sm:$0xff]  ;;  %v2821_v44 = vld [vmem:[#allocation2 + $0x128] sm:$0xff] }
 0x2e5   :  { %2090 = vpow2.f32 %v2011_v35  ;;  %v2012_v41 = vmul.f32 -1.442695, %v735_v37  ;;  %v2013_v49 = vmul.f32 -1.442695, %v737_v45  ;;  %v2805_v35 = vld [vmem:[#allocation2 + $0x170] sm:$0xff]  ;;  %v2809_v37 = vld [vmem:[#allocation2 + $0x148] sm:$0xff] }
 0x2e6   :  { %v2823_v45 = vld [vmem:[#allocation2 + $0x138] sm:$0xff] }
 0x2e7   :  { %2092 = vpow2.f32 %v2012_v41  ;;  %v2815_v41 = vld [vmem:[#allocation2 + $0x140] sm:$0xff] }
 0x2e8   :  { %2094 = vpow2.f32 %v2013_v49  ;;  %v2831_v49 = vld [vmem:[#allocation2 + $0x118] sm:$0xff] }
 0x2f2   :  { %v2091_v51 = vpop.eup %2090 }
 0x2f3   :  { %v741_v26 = vadd.f32 1.0, %v2091_v51  ;;  %v2833_v51 = vld [vmem:[#allocation2 + $0x110] sm:$0xff] }
 0x2f4   :  { %v2093_v30 = vpop.eup %2092 }
 0x2f5   :  { %2096 = vrcp.f32 %v741_v26  ;;  %v747_v34 = vadd.f32 1.0, %v2093_v30  ;;  %v2095_v38 = vpop.eup %2094  ;;  %v2839_v26 = vld [vmem:[#allocation2 + $0xf0] sm:$0xff]  ;;  %v2843_v30 = vld [vmem:[#allocation2 + $0xd8] sm:$0xff] }
 0x2f6   :  { %2098 = vtanh.f32 %v736_v53  ;;  %v754_v59 = vadd.f32 1.0, %v2095_v38  ;;  %v2835_v53 = vld [vmem:[#allocation2 + $0xf8] sm:$0xff] }
 0x2f7   :  { %2100 = vrcp.f32 %v747_v34  ;;  %v2847_v34 = vld [vmem:[#allocation2 + $0xd0] sm:$0xff]  ;;  %v2851_v38 = vld [vmem:[#allocation2 + $0xb8] sm:$0xff] }
 0x2f8   :  { %2102 = vrcp.f32 %v754_v59  ;;  %v2867_v59 = vld [vmem:[#allocation2 + $0x78] sm:$0xff] }
 0x2f9   :  { %3309 = vst [vmem:[#allocation27_spill] sm:$0xff] %v2867_v59 }
 0x302   :  { %v2097_v42 = vpop.eup %2096 }
 0x303   :  { %v2099_v48 = vpop.eup %2098 }
 0x304   :  { %v2101_v56 = vpop.eup %2100  ;;  %v758_v58 = vmul.f32 %v2099_v48, %v2097_v42  ;;  %v2855_v42 = vld [vmem:[#allocation2 + $0xb0] sm:$0xff]  ;;  %v2859_v48 = vld [vmem:[#allocation2 + $0x98] sm:$0xff] }
 0x305   :  { %v757_v36 = vmul.f32 %v2101_v56, %v2620_v24  ;;  %v2103_v46 = vpop.eup %2102  ;;  %v2779_v24 = vld [vmem:[#allocation2 + $0x1a0] sm:$0xff]  ;;  %v2863_v56 = vld [vmem:[#allocation2 + $0x90] sm:$0xff] }
 0x307   :  { %v2741_v40 = vadd.f32 %v758_v58, %v757_v36  ;;  %v2871_v58 = vld [vmem:[#allocation2 + $0x70] sm:$0xff]  ;;  %v2875_v36 = vld [vmem:[#allocation2 + $0x58] sm:$0xff] }
 0x308   :  { %3310 = vst [vmem:[#allocation19_spill] sm:$0xff] %v2871_v58  ;;  %3311 = vst [vmem:[#allocation28_spill] sm:$0xff] %v2875_v36 }
 0x309   :  { %2104 = vtanh.f32 %v2741_v40 }
 0x316   :  { %v2105_v55 = vpop.eup %2104 }
 0x317   :  { %v761_v57 = vmul.f32 %v2105_v55, %v2103_v46  ;;  %v2879_v46 = vld [vmem:[#allocation2 + $0x50] sm:$0xff]  ;;  %v2883_v55 = vld [vmem:[#allocation2 + $0x38] sm:$0xff] }
 0x318   :  { %3312 = vst [vmem:[#allocation21_spill] sm:$0xff] %v2879_v46  ;;  %3313 = vst [vmem:[#allocation29_spill] sm:$0xff] %v2883_v55 }
 0x319   :  { %2014 = vst [vmem:[%s3180_s4 + $0x10] sm:$0xff] %v761_v57  ;;  %898 = vmatmul.mubr.f32.vlgmr.msra.gmra.mxu0 %v761_v57  ;;  %969 = vmatmul.mubr.f32.vlgmr.msra.gmra.mxu1 %v761_v57  ;;  %v2887_v57 = vld [vmem:[#allocation2 + $0x30] sm:$0xff] }
 0x31a   :  { %1138 = vmatprep.mubr.f32.mxu0 %v3295_v62  ;;  %1209 = vmatprep.mubr.f32.mxu1 %v3295_v62  ;;  %3314 = vst [vmem:[#allocation23_spill] sm:$0xff] %v2887_v57  ;;  %v2891_v62 = vld [vmem:[#allocation2 + $0x18] sm:$0xff] }
 0x31b   :  { %1075 = vmatpush1.msra.mxu0 %v2755_v2  ;;  %1146 = vmatpush1.msra.mxu1 %v2757_v1  ;;  %3315 = vst [vmem:[#allocation30_spill] sm:$0xff] %v2891_v62 }
 0x31c   :  { %1076 = vmatprep.subr.mxu0 %v2761_v50  ;;  %1147 = vmatprep.subr.mxu1 %v2763_v54 }
 0x31d   :  { %1077 = vmatpush1.msra.mxu0 %v2767_v60  ;;  %1148 = vmatpush1.msra.mxu1 %v2769_v63 }
 0x31e   :  { %1078 = vmatprep.subr.mxu0 %v2773_v3  ;;  %1149 = vmatprep.subr.mxu1 %v2775_v11 }
 0x31f   :  { %1079 = vmatpush1.msra.mxu0 %v2779_v24  ;;  %1150 = vmatpush1.msra.mxu1 %v2781_v52 }
 0x320   :  { %1080 = vmatprep.subr.mxu0 %v2785_v28  ;;  %1151 = vmatprep.subr.mxu1 %v2787_v32 }
 0x321   :  { %1081 = vmatpush1.msra.mxu0 %v2791_v25  ;;  %1152 = vmatpush1.msra.mxu1 %v2793_v27 }
 0x322   :  { %1082 = vmatprep.subr.mxu0 %v2797_v29  ;;  %1153 = vmatprep.subr.mxu1 %v2799_v31 }
 0x323   :  { %1083 = vmatpush1.msra.mxu0 %v2803_v33  ;;  %1154 = vmatpush1.msra.mxu1 %v2805_v35 }
 0x324   :  { %1084 = vmatprep.subr.mxu0 %v2809_v37  ;;  %1155 = vmatprep.subr.mxu1 %v2811_v39 }
 0x325   :  { %1085 = vmatpush1.msra.mxu0 %v2815_v41  ;;  %1156 = vmatpush1.msra.mxu1 %v2817_v43 }
 0x326   :  { %1086 = vmatprep.subr.mxu0 %v2821_v44  ;;  %1157 = vmatprep.subr.mxu1 %v2823_v45 }
 0x327   :  { %1087 = vmatpush1.msra.mxu0 %v2671_v4  ;;  %1158 = vmatpush1.msra.mxu1 %v2827_v47 }
 0x328   :  { %1088 = vmatprep.subr.mxu0 %v2674_v5  ;;  %1159 = vmatprep.subr.mxu1 %v2831_v49 }
 0x329   :  { %1089 = vmatpush1.msra.mxu0 %v2676_v6  ;;  %1160 = vmatpush1.msra.mxu1 %v2833_v51 }
 0x32a   :  { %1090 = vmatprep.subr.mxu0 %v2678_v7  ;;  %1161 = vmatprep.subr.mxu1 %v2835_v53 }
 0x32b   :  { %1091 = vmatpush1.msra.mxu0 %v2681_v8  ;;  %1162 = vmatpush1.msra.mxu1 %v2839_v26 }
 0x32c   :  { %1092 = vmatprep.subr.mxu0 %v2684_v9  ;;  %1163 = vmatprep.subr.mxu1 %v2843_v30 }
 0x32d   :  { %1093 = vmatpush1.msra.mxu0 %v2687_v10  ;;  %1164 = vmatpush1.msra.mxu1 %v2847_v34 }
 0x32e   :  { %1094 = vmatprep.subr.mxu0 %v2690_v12  ;;  %1165 = vmatprep.subr.mxu1 %v2851_v38 }
 0x32f   :  { %1095 = vmatpush1.msra.mxu0 %v2693_v13  ;;  %1166 = vmatpush1.msra.mxu1 %v2855_v42 }
 0x330   :  { %1096 = vmatprep.subr.mxu0 %v2696_v14  ;;  %1167 = vmatprep.subr.mxu1 %v2859_v48 }
 0x331   :  { %1097 = vmatpush1.msra.mxu0 %v2699_v15  ;;  %1168 = vmatpush1.msra.mxu1 %v2863_v56 }
 0x332   :  { %1098 = vmatprep.subr.mxu0 %v2702_v16  ;;  %1169 = vmatprep.subr.mxu1 %v2867_v59 }
 0x333   :  { %1099 = vmatpush1.msra.mxu0 %v2705_v17  ;;  %1170 = vmatpush1.msra.mxu1 %v2871_v58  ;;  %v2895_v17 = vld [vmem:[#allocation2 + $0x10] sm:$0xff] }
 0x334   :  { %1100 = vmatprep.subr.mxu0 %v2708_v18  ;;  %1171 = vmatprep.subr.mxu1 %v2875_v36  ;;  %3316 = vst [vmem:[#allocation25_spill] sm:$0xff] %v2895_v17  ;;  %v2017_v36 = vld [vmem:[%s3176_s0 + $0x70] sm:$0xff] }
 0x335   :  { %1101 = vmatpush1.msra.mxu0 %v2711_v19  ;;  %1172 = vmatpush1.msra.mxu1 %v2879_v46 }
 0x336   :  { %1102 = vmatprep.subr.mxu0 %v2714_v20  ;;  %1173 = vmatprep.subr.mxu1 %v2883_v55  ;;  %v2015_v55 = vld [vmem:[%s3176_s0 + $0x60] sm:$0xff] }
 0x337   :  { %1103 = vmatpush1.msra.mxu0 %v2717_v21  ;;  %1174 = vmatpush1.msra.mxu1 %v2887_v57  ;;  %v2016_v57 = vld [vmem:[%s3176_s0 + $0x68] sm:$0xff] }
 0x338   :  { %1104 = vmatprep.subr.mxu0 %v2720_v22  ;;  %1175 = vmatprep.subr.mxu1 %v2891_v62 }
 0x339   :  { %1105 = vmatpush1.msra.mxu0 %v2723_v23  ;;  %1176 = vmatpush1.msra.mxu1 %v2895_v17 }
 0x33a   :  { %1315 = vmatprep.subr.mxu0 %v2749_v61  ;;  %1386 = vmatprep.subr.mxu1 %v2751_v0  ;;  %v2018_v0 = vld [vmem:[%s3176_s0 + $0x78] sm:$0xff] }
 0x3d9   :  { %v899_v20 = vpop.f32.mrf.mxu0  ;;  %v970_v23 = vpop.f32.mrf.mxu1 }
 0x3da   :  { %v975_v22 = vadd.f32 %v2015_v55, %v899_v20  ;;  %v977_v20 = vadd.f32 %v2017_v36, %v970_v23  ;;  %v3320_v36 = vld [vmem:[#allocation19_spill] sm:$0xff] }
 0x3db   :  { %v901_v21 = vpop.f32.mrf.mxu0  ;;  %v972_v61 = vpop.f32.mrf.mxu1 }
 0x3dc   :  { %v2019_v62 = vmul.f32 -1.442695, %v975_v22  ;;  %v976_v46 = vadd.f32 %v2016_v57, %v901_v21  ;;  %v978_v19 = vadd.f32 %v2018_v0, %v972_v61 }
 0x3de   :  { %2106 = vpow2.f32 %v2019_v62  ;;  %v2020_v17 = vmul.f32 -1.442695, %v976_v46  ;;  %v2021_v18 = vmul.f32 -1.442695, %v978_v19 }
 0x3e0   :  { %2108 = vpow2.f32 %v2020_v17 }
 0x3e1   :  { %2110 = vpow2.f32 %v2021_v18 }
 0x3eb   :  { %v2107_v58 = vpop.eup %2106 }
 0x3ec   :  { %v982_v55 = vadd.f32 1.0, %v2107_v58  ;;  %v3319_v58 = vld [vmem:[#allocation14_spill] sm:$0xff] }
 0x3ed   :  { %v2109_v22 = vpop.eup %2108 }
 0x3ee   :  { %2112 = vrcp.f32 %v982_v55  ;;  %v988_v62 = vadd.f32 1.0, %v2109_v22  ;;  %v2111_v17 = vpop.eup %2110  ;;  %v3322_v55 = vld [vmem:[#allocation28_spill] sm:$0xff]  ;;  %v3323_v22 = vld [vmem:[#allocation15_spill] sm:$0xff] }
 0x3ef   :  { %2114 = vtanh.f32 %v977_v20  ;;  %v995_v59 = vadd.f32 1.0, %v2111_v17  ;;  %v3321_v20 = vld [vmem:[#allocation20_spill] sm:$0xff]  ;;  %v3325_v17 = vld [vmem:[#allocation22_spill] sm:$0xff] }
 0x3f0   :  { %2116 = vrcp.f32 %v988_v62  ;;  %v3324_v62 = vld [vmem:[#allocation21_spill] sm:$0xff] }
 0x3f1   :  { %2118 = vrcp.f32 %v995_v59  ;;  %v3318_v59 = vld [vmem:[#allocation27_spill] sm:$0xff] }
 0x3fb   :  { %v2113_v21 = vpop.eup %2112 }
 0x3fc   :  { %v2115_v46 = vpop.eup %2114 }
 0x3fd   :  { %v2117_v57 = vpop.eup %2116  ;;  %v999_v61 = vmul.f32 %v2115_v46, %v2113_v21  ;;  %v3326_v21 = vld [vmem:[#allocation29_spill] sm:$0xff]  ;;  %v3327_v46 = vld [vmem:[#allocation16_spill] sm:$0xff] }
 0x3fe   :  { %v998_v0 = vmul.f32 %v2117_v57, %v2741_v40  ;;  %v2119_v19 = vpop.eup %2118  ;;  %v3317_v40 = vld [vmem:[#allocation11_spill] sm:$0xff] }
 0x3ff   :  { %v3328_v57 = vld [vmem:[#allocation23_spill] sm:$0xff] }
 0x400   :  { %v2918_v16 = vadd.f32 %v999_v61, %v998_v0  ;;  %v3329_v61 = vld [vmem:[#allocation24_spill] sm:$0xff]  ;;  %v3330_v0 = vld [vmem:[#allocation30_spill] sm:$0xff] }
 0x402   :  { %2120 = vtanh.f32 %v2918_v16 }
 0x40f   :  { %v2121_v23 = vpop.eup %2120 }
 0x410   :  { %v1002_v18 = vmul.f32 %v2121_v23, %v2119_v19  ;;  %v3331_v19 = vld [vmem:[#allocation17_spill] sm:$0xff]  ;;  %v3332_v23 = vmov 0.0  }
 0x412   :  { %2022 = vst [vmem:[%s3180_s4 + $0x18] sm:$0xff] %v1002_v18  ;;  %1139 = vmatmul.mubr.f32.vlgmr.msra.gmra.mxu0 %v1002_v18  ;;  %1210 = vmatmul.mubr.f32.vlgmr.msra.gmra.mxu1 %v1002_v18  ;;  %v3333_v18 = vld [vmem:[#allocation25_spill] sm:$0xff] }
 0x413   :  { %1316 = vmatpush1.msra.mxu0 %v2755_v2  ;;  %1387 = vmatpush1.msra.mxu1 %v2757_v1 }
 0x414   :  { %1317 = vmatprep.subr.mxu0 %v2761_v50  ;;  %1388 = vmatprep.subr.mxu1 %v2763_v54 }
 0x415   :  { %1318 = vmatpush1.msra.mxu0 %v2767_v60  ;;  %1389 = vmatpush1.msra.mxu1 %v2769_v63 }
 0x416   :  { %1319 = vmatprep.subr.mxu0 %v2773_v3  ;;  %1390 = vmatprep.subr.mxu1 %v2775_v11 }
 0x417   :  { %1320 = vmatpush1.msra.mxu0 %v2779_v24  ;;  %1391 = vmatpush1.msra.mxu1 %v2781_v52 }
 0x418   :  { %1321 = vmatprep.subr.mxu0 %v2785_v28  ;;  %1392 = vmatprep.subr.mxu1 %v2787_v32 }
 0x419   :  { %1322 = vmatpush1.msra.mxu0 %v2791_v25  ;;  %1393 = vmatpush1.msra.mxu1 %v2793_v27 }
 0x41a   :  { %1323 = vmatprep.subr.mxu0 %v2797_v29  ;;  %1394 = vmatprep.subr.mxu1 %v2799_v31 }
 0x41b   :  { %1324 = vmatpush1.msra.mxu0 %v2803_v33  ;;  %1395 = vmatpush1.msra.mxu1 %v2805_v35 }
 0x41c   :  { %1325 = vmatprep.subr.mxu0 %v2809_v37  ;;  %1396 = vmatprep.subr.mxu1 %v2811_v39 }
 0x41d   :  { %1326 = vmatpush1.msra.mxu0 %v2815_v41  ;;  %1397 = vmatpush1.msra.mxu1 %v2817_v43 }
 0x41e   :  { %1327 = vmatprep.subr.mxu0 %v2821_v44  ;;  %1398 = vmatprep.subr.mxu1 %v2823_v45 }
 0x41f   :  { %1328 = vmatpush1.msra.mxu0 %v2671_v4  ;;  %1399 = vmatpush1.msra.mxu1 %v2827_v47 }
 0x420   :  { %1329 = vmatprep.subr.mxu0 %v2674_v5  ;;  %1400 = vmatprep.subr.mxu1 %v2831_v49 }
 0x421   :  { %1330 = vmatpush1.msra.mxu0 %v2676_v6  ;;  %1401 = vmatpush1.msra.mxu1 %v2833_v51 }
 0x422   :  { %1331 = vmatprep.subr.mxu0 %v2678_v7  ;;  %1402 = vmatprep.subr.mxu1 %v2835_v53 }
 0x423   :  { %1332 = vmatpush1.msra.mxu0 %v2681_v8  ;;  %1403 = vmatpush1.msra.mxu1 %v2839_v26 }
 0x424   :  { %1333 = vmatprep.subr.mxu0 %v2684_v9  ;;  %1404 = vmatprep.subr.mxu1 %v2843_v30 }
 0x425   :  { %1334 = vmatpush1.msra.mxu0 %v2687_v10  ;;  %1405 = vmatpush1.msra.mxu1 %v2847_v34 }
 0x426   :  { %1335 = vmatprep.subr.mxu0 %v2690_v12  ;;  %1406 = vmatprep.subr.mxu1 %v2851_v38 }
 0x427   :  { %1336 = vmatpush1.msra.mxu0 %v2693_v13  ;;  %1407 = vmatpush1.msra.mxu1 %v2855_v42 }
 0x428   :  { %1337 = vmatprep.subr.mxu0 %v2696_v14  ;;  %1408 = vmatprep.subr.mxu1 %v2859_v48 }
 0x429   :  { %1338 = vmatpush1.msra.mxu0 %v2699_v15  ;;  %1409 = vmatpush1.msra.mxu1 %v2863_v56 }
 0x42a   :  { %1339 = vmatprep.subr.mxu0 %v3317_v40  ;;  %1410 = vmatprep.subr.mxu1 %v3318_v59 }
 0x42b   :  { %1340 = vmatpush1.msra.mxu0 %v3319_v58  ;;  %1411 = vmatpush1.msra.mxu1 %v3320_v36 }
 0x42c   :  { %1341 = vmatprep.subr.mxu0 %v3321_v20  ;;  %1412 = vmatprep.subr.mxu1 %v3322_v55  ;;  %v2025_v20 = vld [vmem:[%s3176_s0 + $0x90] sm:$0xff] }
 0x42d   :  { %1342 = vmatpush1.msra.mxu0 %v3323_v22  ;;  %1413 = vmatpush1.msra.mxu1 %v3324_v62  ;;  %v3334_v62 = vld [vmem:[#allocation26_spill] sm:$0xff] }
 0x42e   :  { %1343 = vmatprep.subr.mxu0 %v3325_v17  ;;  %1414 = vmatprep.subr.mxu1 %v3326_v21  ;;  %v3335_v17 = vld [vmem:[#allocation18_spill] sm:$0xff] }
 0x42f   :  { %1344 = vmatpush1.msra.mxu0 %v3327_v46  ;;  %1415 = vmatpush1.msra.mxu1 %v3328_v57  ;;  %v2023_v57 = vld [vmem:[%s3176_s0 + $0x80] sm:$0xff] }
 0x430   :  { %1345 = vmatprep.subr.mxu0 %v3329_v61  ;;  %1416 = vmatprep.subr.mxu1 %v3330_v0  ;;  %v2024_v0 = vld [vmem:[%s3176_s0 + $0x88] sm:$0xff] }
 0x431   :  { %1346 = vmatpush1.msra.mxu0 %v3331_v19  ;;  %1379 = vmatprep.mubr.f32.mxu0 %v3332_v23 }
 0x432   :  { %1417 = vmatpush1.msra.mxu1 %v3333_v18  ;;  %1450 = vmatprep.mubr.f32.mxu1 %v3332_v23 }
 0x433   :  { %1556 = vmatprep.subr.mxu0 %v3334_v62  ;;  %1627 = vmatprep.subr.mxu1 %v3335_v17  ;;  %v2026_v17 = vld [vmem:[%s3176_s0 + $0x98] sm:$0xff] }
 0x4d2   :  { %v1140_v46 = vpop.f32.mrf.mxu0  ;;  %v1211_v18 = vpop.f32.mrf.mxu1 }
 0x4d3   :  { %v1216_v19 = vadd.f32 %v2023_v57, %v1140_v46  ;;  %v1218_v46 = vadd.f32 %v2025_v20, %v1211_v18  ;;  %v3350_v18 = vld [vmem:[#allocation17_spill] sm:$0xff] }
 0x4d4   :  { %v1142_v61 = vpop.f32.mrf.mxu0  ;;  %v1213_v62 = vpop.f32.mrf.mxu1 }
 0x4d5   :  { %v2027_v21 = vmul.f32 -1.442695, %v1216_v19  ;;  %v1217_v22 = vadd.f32 %v2024_v0, %v1142_v61  ;;  %v1219_v55 = vadd.f32 %v2026_v17, %v1213_v62 }
 0x4d7   :  { %2122 = vpow2.f32 %v2027_v21  ;;  %v2028_v23 = vmul.f32 -1.442695, %v1217_v22  ;;  %v2029_v36 = vmul.f32 -1.442695, %v1219_v55  ;;  %v3349_v55 = vld [vmem:[#allocation30_spill] sm:$0xff] }
 0x4d9   :  { %2124 = vpow2.f32 %v2028_v23 }
 0x4da   :  { %2126 = vpow2.f32 %v2029_v36 }
 0x4e4   :  { %v2123_v58 = vpop.eup %2122 }
 0x4e5   :  { %v1223_v57 = vadd.f32 1.0, %v2123_v58 }
 0x4e6   :  { %v2125_v19 = vpop.eup %2124 }
 0x4e7   :  { %2128 = vrcp.f32 %v1223_v57  ;;  %v1229_v21 = vadd.f32 1.0, %v2125_v19  ;;  %v2127_v22 = vpop.eup %2126  ;;  %v3352_v57 = vld [vmem:[#allocation25_spill] sm:$0xff]  ;;  %v3353_v19 = vld [vmem:[#allocation26_spill] sm:$0xff] }
 0x4e8   :  { %2130 = vtanh.f32 %v1218_v46  ;;  %v1236_v59 = vadd.f32 1.0, %v2127_v22  ;;  %v3351_v46 = vmov 0.0   ;;  %v2031_v22 = vld [vmem:[%s3176_s0 + $0xa0] sm:$0xff] }
 0x4e9   :  { %2132 = vrcp.f32 %v1229_v21  ;;  %v3354_v21 = vld [vmem:[#allocation18_spill] sm:$0xff] }
 0x4ea   :  { %2134 = vrcp.f32 %v1236_v59  ;;  %v3348_v59 = vld [vmem:[#allocation24_spill] sm:$0xff] }
 0x4f4   :  { %v2129_v61 = vpop.eup %2128 }
 0x4f5   :  { %v2131_v0 = vpop.eup %2130 }
 0x4f6   :  { %v2133_v23 = vpop.eup %2132  ;;  %v1240_v62 = vmul.f32 %v2131_v0, %v2129_v61  ;;  %v2032_v0 = vld [vmem:[%s3176_s0 + $0xa8] sm:$0xff] }
 0x4f7   :  { %v1239_v17 = vmul.f32 %v2133_v23, %v2918_v16  ;;  %v2135_v58 = vpop.eup %2134  ;;  %v3347_v16 = vld [vmem:[#allocation23_spill] sm:$0xff] }
 0x4f9   :  { %v3003_v40 = vadd.f32 %v1240_v62, %v1239_v17 }
 0x4fb   :  { %2136 = vtanh.f32 %v3003_v40 }
 0x508   :  { %v2137_v20 = vpop.eup %2136 }
 0x509   :  { %v1243_v36 = vmul.f32 %v2137_v20, %v2135_v58 }
 0x50b   :  { %2030 = vst [vmem:[%s3180_s4 + $0x20] sm:$0xff] %v1243_v36  ;;  %1380 = vmatmul.mubr.f32.vlgmr.msra.gmra.mxu0 %v1243_v36  ;;  %1451 = vmatmul.mubr.f32.vlgmr.msra.gmra.mxu1 %v1243_v36 }
 0x50c   :  { %1557 = vmatpush1.msra.mxu0 %v2755_v2  ;;  %1628 = vmatpush1.msra.mxu1 %v2757_v1 }
 0x50d   :  { %1558 = vmatprep.subr.mxu0 %v2761_v50  ;;  %1629 = vmatprep.subr.mxu1 %v2763_v54 }
 0x50e   :  { %1559 = vmatpush1.msra.mxu0 %v2767_v60  ;;  %1630 = vmatpush1.msra.mxu1 %v2769_v63 }
 0x50f   :  { %1560 = vmatprep.subr.mxu0 %v2773_v3  ;;  %1631 = vmatprep.subr.mxu1 %v2775_v11 }
 0x510   :  { %1561 = vmatpush1.msra.mxu0 %v2779_v24  ;;  %1632 = vmatpush1.msra.mxu1 %v2781_v52 }
 0x511   :  { %1562 = vmatprep.subr.mxu0 %v2785_v28  ;;  %1633 = vmatprep.subr.mxu1 %v2787_v32 }
 0x512   :  { %1563 = vmatpush1.msra.mxu0 %v2791_v25  ;;  %1634 = vmatpush1.msra.mxu1 %v2793_v27 }
 0x513   :  { %1564 = vmatprep.subr.mxu0 %v2797_v29  ;;  %1635 = vmatprep.subr.mxu1 %v2799_v31 }
 0x514   :  { %1565 = vmatpush1.msra.mxu0 %v2803_v33  ;;  %1636 = vmatpush1.msra.mxu1 %v2805_v35 }
 0x515   :  { %1566 = vmatprep.subr.mxu0 %v2809_v37  ;;  %1637 = vmatprep.subr.mxu1 %v2811_v39 }
 0x516   :  { %1567 = vmatpush1.msra.mxu0 %v2815_v41  ;;  %1638 = vmatpush1.msra.mxu1 %v2817_v43 }
 0x517   :  { %1568 = vmatprep.subr.mxu0 %v2821_v44  ;;  %1639 = vmatprep.subr.mxu1 %v2823_v45 }
 0x518   :  { %1569 = vmatpush1.msra.mxu0 %v2671_v4  ;;  %1640 = vmatpush1.msra.mxu1 %v2827_v47  ;;  %v3336_v4 = vld [vmem:[#allocation11_spill] sm:$0xff] }
 0x519   :  { %1570 = vmatprep.subr.mxu0 %v2674_v5  ;;  %1641 = vmatprep.subr.mxu1 %v2831_v49  ;;  %v3337_v5 = vld [vmem:[#allocation27_spill] sm:$0xff] }
 0x51a   :  { %1571 = vmatpush1.msra.mxu0 %v2676_v6  ;;  %1642 = vmatpush1.msra.mxu1 %v2833_v51  ;;  %v3338_v6 = vld [vmem:[#allocation14_spill] sm:$0xff] }
 0x51b   :  { %1572 = vmatprep.subr.mxu0 %v2678_v7  ;;  %1643 = vmatprep.subr.mxu1 %v2835_v53  ;;  %v3339_v7 = vld [vmem:[#allocation19_spill] sm:$0xff] }
 0x51c   :  { %1573 = vmatpush1.msra.mxu0 %v2681_v8  ;;  %1644 = vmatpush1.msra.mxu1 %v2839_v26  ;;  %v3340_v8 = vld [vmem:[#allocation20_spill] sm:$0xff] }
 0x51d   :  { %1574 = vmatprep.subr.mxu0 %v2684_v9  ;;  %1645 = vmatprep.subr.mxu1 %v2843_v30  ;;  %v3341_v9 = vld [vmem:[#allocation28_spill] sm:$0xff] }
 0x51e   :  { %1575 = vmatpush1.msra.mxu0 %v2687_v10  ;;  %1646 = vmatpush1.msra.mxu1 %v2847_v34  ;;  %v3342_v10 = vld [vmem:[#allocation15_spill] sm:$0xff] }
 0x51f   :  { %1576 = vmatprep.subr.mxu0 %v2690_v12  ;;  %1647 = vmatprep.subr.mxu1 %v2851_v38  ;;  %v3343_v12 = vld [vmem:[#allocation21_spill] sm:$0xff] }
 0x520   :  { %1577 = vmatpush1.msra.mxu0 %v2693_v13  ;;  %1648 = vmatpush1.msra.mxu1 %v2855_v42  ;;  %v3344_v13 = vld [vmem:[#allocation22_spill] sm:$0xff] }
 0x521   :  { %1578 = vmatprep.subr.mxu0 %v2696_v14  ;;  %1649 = vmatprep.subr.mxu1 %v2859_v48  ;;  %v3345_v14 = vld [vmem:[#allocation29_spill] sm:$0xff] }
 0x522   :  { %1579 = vmatpush1.msra.mxu0 %v2699_v15  ;;  %1650 = vmatpush1.msra.mxu1 %v2863_v56  ;;  %v3346_v15 = vld [vmem:[#allocation16_spill] sm:$0xff] }
 0x523   :  { %1580 = vmatprep.subr.mxu0 %v3336_v4  ;;  %1651 = vmatprep.subr.mxu1 %v3337_v5  ;;  %v2034_v4 = vld [vmem:[%s3176_s0 + $0xb8] sm:$0xff] }
 0x524   :  { %1581 = vmatpush1.msra.mxu0 %v3338_v6  ;;  %1652 = vmatpush1.msra.mxu1 %v3339_v7 }
 0x525   :  { %1582 = vmatprep.subr.mxu0 %v3340_v8  ;;  %1653 = vmatprep.subr.mxu1 %v3341_v9 }
 0x526   :  { %1583 = vmatpush1.msra.mxu0 %v3342_v10  ;;  %1654 = vmatpush1.msra.mxu1 %v3343_v12  ;;  %v2033_v10 = vld [vmem:[%s3176_s0 + $0xb0] sm:$0xff] }
 0x527   :  { %1584 = vmatprep.subr.mxu0 %v3344_v13  ;;  %1655 = vmatprep.subr.mxu1 %v3345_v14 }
 0x528   :  { %1585 = vmatpush1.msra.mxu0 %v3346_v15  ;;  %1656 = vmatpush1.msra.mxu1 %v3347_v16 }
 0x529   :  { %1586 = vmatprep.subr.mxu0 %v3348_v59  ;;  %1657 = vmatprep.subr.mxu1 %v3349_v55 }
 0x52a   :  { %1587 = vmatpush1.msra.mxu0 %v3350_v18  ;;  %1620 = vmatprep.mubr.f32.mxu0 %v3351_v46 }
 0x52b   :  { %1658 = vmatpush1.msra.mxu1 %v3352_v57  ;;  %1691 = vmatprep.mubr.f32.mxu1 %v3351_v46 }
 0x52c   :  { %1797 = vmatprep.subr.mxu0 %v3353_v19  ;;  %1868 = vmatprep.subr.mxu1 %v3354_v21 }
 0x5cb   :  { %v1381_v61 = vpop.f32.mrf.mxu0  ;;  %v1452_v20 = vpop.f32.mrf.mxu1 }
 0x5cc   :  { %v1457_v23 = vadd.f32 %v2031_v22, %v1381_v61  ;;  %v1459_v59 = vadd.f32 %v2033_v10, %v1452_v20 }
 0x5cd   :  { %v1383_v62 = vpop.f32.mrf.mxu0  ;;  %v1454_v6 = vpop.f32.mrf.mxu1 }
 0x5ce   :  { %v2035_v17 = vmul.f32 -1.442695, %v1457_v23  ;;  %v1458_v58 = vadd.f32 %v2032_v0, %v1383_v62  ;;  %v1460_v8 = vadd.f32 %v2034_v4, %v1454_v6 }
 0x5d0   :  { %2138 = vpow2.f32 %v2035_v17  ;;  %v2036_v36 = vmul.f32 -1.442695, %v1458_v58  ;;  %v2037_v13 = vmul.f32 -1.442695, %v1460_v8 }
 0x5d2   :  { %2140 = vpow2.f32 %v2036_v36 }
 0x5d3   :  { %2142 = vpow2.f32 %v2037_v13 }
 0x5dd   :  { %v2139_v15 = vpop.eup %2138 }
 0x5de   :  { %v1464_v18 = vadd.f32 1.0, %v2139_v15 }
 0x5df   :  { %v2141_v19 = vpop.eup %2140 }
 0x5e0   :  { %2144 = vrcp.f32 %v1464_v18  ;;  %v1470_v21 = vadd.f32 1.0, %v2141_v19  ;;  %v2143_v22 = vpop.eup %2142  ;;  %v2048_v19 = vld [vmem:[%s3176_s0 + $0xe8] sm:$0xff] }
 0x5e1   :  { %2146 = vtanh.f32 %v1459_v59  ;;  %v1477_v62 = vadd.f32 1.0, %v2143_v22  ;;  %v2047_v59 = vld [vmem:[%s3176_s0 + $0xe0] sm:$0xff] }
 0x5e2   :  { %2148 = vrcp.f32 %v1470_v21 }
 0x5e3   :  { %2150 = vrcp.f32 %v1477_v62 }
 0x5ed   :  { %v2145_v61 = vpop.eup %2144 }
 0x5ee   :  { %v2147_v0 = vpop.eup %2146 }
 0x5ef   :  { %v2149_v23 = vpop.eup %2148  ;;  %v1481_v17 = vmul.f32 %v2147_v0, %v2145_v61 }
 0x5f0   :  { %v1480_v58 = vmul.f32 %v2149_v23, %v3003_v40  ;;  %v2151_v20 = vpop.eup %2150 }
 0x5f2   :  { %v3088_v36 = vadd.f32 %v1481_v17, %v1480_v58  ;;  %v2050_v17 = vld [vmem:[%s3176_s0 + $0xf8] sm:$0xff] }
 0x5f4   :  { %2152 = vtanh.f32 %v3088_v36 }
 0x601   :  { %v2153_v4 = vpop.eup %2152 }
 0x602   :  { %v1484_v6 = vmul.f32 %v2153_v4, %v2151_v20  ;;  %v2049_v20 = vld [vmem:[%s3176_s0 + $0xf0] sm:$0xff] }
 0x604   :  { %2038 = vst [vmem:[%s3180_s4 + $0x28] sm:$0xff] %v1484_v6  ;;  %1621 = vmatmul.mubr.f32.vlgmr.msra.gmra.mxu0 %v1484_v6  ;;  %1692 = vmatmul.mubr.f32.vlgmr.msra.gmra.mxu1 %v1484_v6 }
 0x605   :  { %1798 = vmatpush1.msra.mxu0 %v2755_v2  ;;  %1869 = vmatpush1.msra.mxu1 %v2757_v1  ;;  %v1769_v2 = vld [vmem:[#allocation2 + $0x120] sm:$0xff]  ;;  %v1766_v1 = vld [vmem:[#allocation2 + $0x108] sm:$0xff] }
 0x606   :  { %1799 = vmatprep.subr.mxu0 %v2761_v50  ;;  %1870 = vmatprep.subr.mxu1 %v2763_v54  ;;  %v1765_v50 = vld [vmem:[#allocation2 + $0x100] sm:$0xff]  ;;  %v1762_v54 = vld [vmem:[#allocation2 + $0xe8] sm:$0xff] }
 0x607   :  { %1800 = vmatpush1.msra.mxu0 %v2767_v60  ;;  %1871 = vmatpush1.msra.mxu1 %v2769_v63  ;;  %v1761_v60 = vld [vmem:[#allocation2 + $0xe0] sm:$0xff]  ;;  %v1758_v63 = vld [vmem:[#allocation2 + $0xc8] sm:$0xff] }
 0x608   :  { %1801 = vmatprep.subr.mxu0 %v2773_v3  ;;  %1872 = vmatprep.subr.mxu1 %v2775_v11  ;;  %v1757_v3 = vld [vmem:[#allocation2 + $0xc0] sm:$0xff]  ;;  %v1754_v11 = vld [vmem:[#allocation2 + $0xa8] sm:$0xff] }
 0x609   :  { %1802 = vmatpush1.msra.mxu0 %v2779_v24  ;;  %1873 = vmatpush1.msra.mxu1 %v2781_v52  ;;  %v1753_v24 = vld [vmem:[#allocation2 + $0xa0] sm:$0xff]  ;;  %v1750_v52 = vld [vmem:[#allocation2 + $0x88] sm:$0xff] }
 0x60a   :  { %1803 = vmatprep.subr.mxu0 %v2785_v28  ;;  %1874 = vmatprep.subr.mxu1 %v2787_v32  ;;  %v1749_v28 = vld [vmem:[#allocation2 + $0x80] sm:$0xff]  ;;  %v1746_v32 = vld [vmem:[#allocation2 + $0x68] sm:$0xff] }
 0x60b   :  { %1804 = vmatpush1.msra.mxu0 %v2791_v25  ;;  %1875 = vmatpush1.msra.mxu1 %v2793_v27  ;;  %v1745_v25 = vld [vmem:[#allocation2 + $0x60] sm:$0xff]  ;;  %v1742_v27 = vld [vmem:[#allocation2 + $0x48] sm:$0xff] }
 0x60c   :  { %1805 = vmatprep.subr.mxu0 %v2797_v29  ;;  %1876 = vmatprep.subr.mxu1 %v2799_v31  ;;  %v1741_v29 = vld [vmem:[#allocation2 + $0x40] sm:$0xff]  ;;  %v1738_v31 = vld [vmem:[#allocation2 + $0x28] sm:$0xff] }
 0x60d   :  { %1806 = vmatpush1.msra.mxu0 %v2803_v33  ;;  %1877 = vmatpush1.msra.mxu1 %v2805_v35  ;;  %v1737_v33 = vld [vmem:[#allocation2 + $0x20] sm:$0xff]  ;;  %v1734_v35 = vld [vmem:[#allocation2 + $0x8] sm:$0xff] }
 0x60e   :  { %1807 = vmatprep.subr.mxu0 %v2809_v37  ;;  %1878 = vmatprep.subr.mxu1 %v2811_v39  ;;  %v1733_v37 = vld [vmem:[#allocation2] sm:$0xff] }
 0x60f   :  { %1808 = vmatpush1.msra.mxu0 %v2815_v41  ;;  %1879 = vmatpush1.msra.mxu1 %v2817_v43  ;;  %v2039_v39 = vld [vmem:[%s3176_s0 + $0xc0] sm:$0xff]  ;;  %v2040_v43 = vld [vmem:[%s3176_s0 + $0xc8] sm:$0xff] }
 0x610   :  { %1809 = vmatprep.subr.mxu0 %v2821_v44  ;;  %1880 = vmatprep.subr.mxu1 %v2823_v45 }
 0x611   :  { %1881 = vmatpush1.msra.mxu1 %v2827_v47  ;;  %1861 = vmatprep.mubr.f32.mxu0 %v3351_v46 }
 0x612   :  { %1882 = vmatprep.subr.mxu1 %v2831_v49  ;;  %1932 = vmatprep.mubr.f32.mxu1 %v3351_v46 }
 0x613   :  { %1883 = vmatpush1.msra.mxu1 %v2833_v51  ;;  %1810 = vmatpush1.msra.mxu0 %v1769_v2 }
 0x614   :  { %1884 = vmatprep.subr.mxu1 %v2835_v53  ;;  %1811 = vmatprep.subr.mxu0 %v1766_v1 }
 0x615   :  { %1885 = vmatpush1.msra.mxu1 %v2839_v26  ;;  %1812 = vmatpush1.msra.mxu0 %v1765_v50  ;;  %v2042_v26 = vld [vmem:[%s3176_s0 + $0xd8] sm:$0xff] }
 0x616   :  { %1886 = vmatprep.subr.mxu1 %v2843_v30  ;;  %1813 = vmatprep.subr.mxu0 %v1762_v54 }
 0x617   :  { %1887 = vmatpush1.msra.mxu1 %v2847_v34  ;;  %1814 = vmatpush1.msra.mxu0 %v1761_v60 }
 0x618   :  { %1888 = vmatprep.subr.mxu1 %v2851_v38  ;;  %1815 = vmatprep.subr.mxu0 %v1758_v63  ;;  %v2041_v38 = vld [vmem:[%s3176_s0 + $0xd0] sm:$0xff] }
 0x619   :  { %1889 = vmatpush1.msra.mxu1 %v2855_v42  ;;  %1816 = vmatpush1.msra.mxu0 %v1757_v3 }
 0x61a   :  { %1890 = vmatprep.subr.mxu1 %v2859_v48  ;;  %1817 = vmatprep.subr.mxu0 %v1754_v11 }
 0x61b   :  { %1891 = vmatpush1.msra.mxu1 %v2863_v56  ;;  %1818 = vmatpush1.msra.mxu0 %v1753_v24 }
 0x61c   :  { %1892 = vmatprep.subr.mxu1 %v3337_v5  ;;  %1819 = vmatprep.subr.mxu0 %v1750_v52 }
 0x61d   :  { %1893 = vmatpush1.msra.mxu1 %v3339_v7  ;;  %1820 = vmatpush1.msra.mxu0 %v1749_v28 }
 0x61e   :  { %1894 = vmatprep.subr.mxu1 %v3341_v9  ;;  %1821 = vmatprep.subr.mxu0 %v1746_v32 }
 0x61f   :  { %1895 = vmatpush1.msra.mxu1 %v3343_v12  ;;  %1822 = vmatpush1.msra.mxu0 %v1745_v25 }
 0x620   :  { %1896 = vmatprep.subr.mxu1 %v3345_v14  ;;  %1823 = vmatprep.subr.mxu0 %v1742_v27 }
 0x621   :  { %1897 = vmatpush1.msra.mxu1 %v3347_v16  ;;  %1824 = vmatpush1.msra.mxu0 %v1741_v29 }
 0x622   :  { %1898 = vmatprep.subr.mxu1 %v3349_v55  ;;  %1825 = vmatprep.subr.mxu0 %v1738_v31 }
 0x623   :  { %1899 = vmatpush1.msra.mxu1 %v3352_v57  ;;  %1826 = vmatpush1.msra.mxu0 %v1737_v33 }
 0x624   :  { %1827 = vmatprep.subr.mxu0 %v1734_v35 }
 0x625   :  { %1828 = vmatpush1.msra.mxu0 %v1733_v37 }
 0x6c4   :  { %v1622_v41 = vpop.f32.mrf.mxu0  ;;  %v1693_v51 = vpop.f32.mrf.mxu1 }
 0x6c5   :  { %v1698_v44 = vadd.f32 %v2039_v39, %v1622_v41  ;;  %v1700_v56 = vadd.f32 %v2041_v38, %v1693_v51 }
 0x6c6   :  { %v1624_v45 = vpop.f32.mrf.mxu0  ;;  %v1695_v30 = vpop.f32.mrf.mxu1 }
 0x6c7   :  { %v2043_v47 = vmul.f32 -1.442695, %v1698_v44  ;;  %v1699_v49 = vadd.f32 %v2040_v43, %v1624_v45  ;;  %v1701_v34 = vadd.f32 %v2042_v26, %v1695_v30 }
 0x6c9   :  { %2154 = vpow2.f32 %v2043_v47  ;;  %v2044_v53 = vmul.f32 -1.442695, %v1699_v49  ;;  %v2045_v42 = vmul.f32 -1.442695, %v1701_v34 }
 0x6cb   :  { %2156 = vpow2.f32 %v2044_v53 }
 0x6cc   :  { %2158 = vpow2.f32 %v2045_v42 }
 0x6d6   :  { %v2155_v48 = vpop.eup %2154 }
 0x6d7   :  { %v1705_v40 = vadd.f32 1.0, %v2155_v48 }
 0x6d8   :  { %v2157_v5 = vpop.eup %2156 }
 0x6d9   :  { %2160 = vrcp.f32 %v1705_v40  ;;  %v1711_v7 = vadd.f32 1.0, %v2157_v5  ;;  %v2159_v9 = vpop.eup %2158 }
 0x6da   :  { %2162 = vtanh.f32 %v1700_v56  ;;  %v1718_v55 = vadd.f32 1.0, %v2159_v9 }
 0x6db   :  { %2164 = vrcp.f32 %v1711_v7 }
 0x6dc   :  { %2166 = vrcp.f32 %v1718_v55 }
 0x6e6   :  { %v2161_v12 = vpop.eup %2160 }
 0x6e7   :  { %v2163_v14 = vpop.eup %2162 }
 0x6e8   :  { %v2165_v16 = vpop.eup %2164  ;;  %v1722_v46 = vmul.f32 %v2163_v14, %v2161_v12 }
 0x6e9   :  { %v1721_v57 = vmul.f32 %v2165_v16, %v3088_v36  ;;  %v2167_v10 = vpop.eup %2166 }
 0x6eb   :  { %v1723_v8 = vadd.f32 %v1722_v46, %v1721_v57 }
 0x6ed   :  { %2168 = vtanh.f32 %v1723_v8 }
 0x6fa   :  { %v2169_v13 = vpop.eup %2168 }
 0x6fb   :  { %v1725_v15 = vmul.f32 %v2169_v13, %v2167_v10 }
 0x6fd   :  { %2046 = vst [vmem:[%s3180_s4 + $0x30] sm:$0xff] %v1725_v15  ;;  %1862 = vmatmul.mubr.f32.vlgmr.msra.gmra.mxu0 %v1725_v15  ;;  %1933 = vmatmul.mubr.f32.vlgmr.msra.gmra.mxu1 %v1725_v15 }
 0x7bd   :  { %v1863_v18 = vpop.f32.mrf.mxu0  ;;  %v1934_v23 = vpop.f32.mrf.mxu1 }
 0x7be   :  { %v1939_v21 = vadd.f32 %v2047_v59, %v1863_v18  ;;  %v1941_v2 = vadd.f32 %v2049_v20, %v1934_v23 }
 0x7bf   :  { %v1865_v22 = vpop.f32.mrf.mxu0  ;;  %v1936_v58 = vpop.f32.mrf.mxu1 }
 0x7c0   :  { %v2051_v61 = vmul.f32 -1.442695, %v1939_v21  ;;  %v1940_v0 = vadd.f32 %v2048_v19, %v1865_v22  ;;  %v1942_v36 = vadd.f32 %v2050_v17, %v1936_v58 }
 0x7c2   :  { %2170 = vpow2.f32 %v2051_v61  ;;  %v2052_v62 = vmul.f32 -1.442695, %v1940_v0  ;;  %v2053_v4 = vmul.f32 -1.442695, %v1942_v36 }
 0x7c4   :  { %2172 = vpow2.f32 %v2052_v62 }
 0x7c5   :  { %2174 = vpow2.f32 %v2053_v4 }
 0x7cf   :  { %v2171_v6 = vpop.eup %2170 }
 0x7d0   :  { %v1946_v1 = vadd.f32 1.0, %v2171_v6 }
 0x7d1   :  { %v2173_v50 = vpop.eup %2172 }
 0x7d2   :  { %2176 = vrcp.f32 %v1946_v1  ;;  %v1952_v54 = vadd.f32 1.0, %v2173_v50  ;;  %v2175_v60 = vpop.eup %2174 }
 0x7d3   :  { %2178 = vtanh.f32 %v1941_v2  ;;  %v1959_v24 = vadd.f32 1.0, %v2175_v60 }
 0x7d4   :  { %2180 = vrcp.f32 %v1952_v54 }
 0x7d5   :  { %2182 = vrcp.f32 %v1959_v24 }
 0x7df   :  { %v2177_v63 = vpop.eup %2176 }
 0x7e0   :  { %v2179_v3 = vpop.eup %2178 }
 0x7e1   :  { %v2181_v11 = vpop.eup %2180  ;;  %v1963_v52 = vmul.f32 %v2179_v3, %v2177_v63 }
 0x7e2   :  { %v1962_v28 = vmul.f32 %v2181_v11, %v1723_v8  ;;  %v2183_v25 = vpop.eup %2182 }
 0x7e4   :  { %v1964_v32 = vadd.f32 %v1963_v52, %v1962_v28 }
 0x7e6   :  { %2184 = vtanh.f32 %v1964_v32  ;;  %1977 = vst [vmem:[%s3182_s6] sm:$0xff] %v1964_v32 }
 0x7f3   :  { %v2185_v27 = vpop.eup %2184 }
 0x7f4   :  { %v1966_v29 = vmul.f32 %v2185_v27, %v2183_v25 }
 0x7f6   :  { %2054 = vst [vmem:[%s3180_s4 + $0x38] sm:$0xff] %v1966_v29  ;;  %1975 = vst [vmem:[%s3181_s5] sm:$0xff] %v1966_v29 }
 0x7f7   :  { %1990 = vsyncmov [#allocation3] }
 0x7fa   :  { %s1991_s3 = vpop.sfrf %1990 }
 0x7fb   :  { %p2055_p5 = scmp.ne.s32.totalorder %s1991_s3, 0 }
 0x7fd   :  { %1995 = shalt.err (%p2055_p5)  }

</bundles_post_ra>
